<compile_context>
chip_gen: v6e
topology: v6e:2x2x1
jax: 0.10.0
libtpu: 0.0.40
codegen_flags: <defaults>
</compile_context>

<pallas_src>
import functools
import math

import jax
import jax.numpy as jnp
from jax.experimental import pallas as pl
from jax.experimental.pallas import tpu as pltpu

EPS_LN = 1e-5
EPS_BN = 1e-5

# Raw (PyTorch-style) parameter names produced by init_params / consumed by the reference.
PARAM_NAMES = [
    "ff1_ln_g", "ff1_ln_b", "ff1_w1", "ff1_b1", "ff1_w2", "ff1_b2",
    "attn_ln_g", "attn_ln_b", "wq", "bq", "wk", "bk", "wv", "bv", "wo", "bo",
    "conv_ln_g", "conv_ln_b", "pw1_w", "pw1_b", "dw_w", "dw_b",
    "bn_g", "bn_b", "bn_m", "bn_v", "pw2_w", "pw2_b",
    "ff2_ln_g", "ff2_ln_b", "ff2_w1", "ff2_b1", "ff2_w2", "ff2_b2",
    "fin_ln_g", "fin_ln_b",
]

# Row indices inside the packed (NUM_VEC_D, D) vector-parameter table.
(FF1_LN_G, FF1_LN_B, FF1_B2,
 ATTN_LN_G, ATTN_LN_B, BQ, BK, BV, BO,
 CONV_LN_G, CONV_LN_B, PW1_BA, PW1_BG, DW_B, PW2_B,
 FF2_LN_G, FF2_LN_B, FF2_B2,
 FIN_LN_G, FIN_LN_B) = range(20)
NUM_VEC_D = 20


# ---------------- shared math --------------------------------------------------------------

def _layer_norm(x, g, b):
    mu = jnp.mean(x, axis=-1, keepdims=True)
    var = jnp.mean((x - mu) ** 2, axis=-1, keepdims=True)
    return (x - mu) * jax.lax.rsqrt(var + EPS_LN) * g + b


# ---------------- kernel-side modules (bf16 MXU matmuls, f32 accumulation) ------------------

def _feed_forward(x, ln_g, ln_b, w1, b1, w2, b2):
    h = _layer_norm(x, ln_g, ln_b)
    h = jnp.dot(h.astype(jnp.bfloat16), w1, preferred_element_type=jnp.float32) + b1
    h = jnp.maximum(h, 0.0)                                   # ReLU (dropout = identity)
    return jnp.dot(h.astype(jnp.bfloat16), w2, preferred_element_type=jnp.float32) + b2


def _split_heads(t, num_heads, hd):
    # (T, D) -> (H, T, hd): lane slice once per head, stacked on the leading axis.
    # (Free when hd % 128 == 0; masked extract otherwise -- see TODO at top.)
    return jnp.concatenate(
        [t[None, :, h * hd:(h + 1) * hd] for h in range(num_heads)], axis=0)


def _mha(x, qkv_w, bq, bk, bv, wo, bo, num_heads, kv_chunk):
    # 1/sqrt(hd) is already folded into the Q columns of qkv_w and into bq.
    T, D = x.shape
    hd = D // num_heads

    xb = x.astype(jnp.bfloat16)
    qkv = jnp.dot(xb, qkv_w, preferred_element_type=jnp.float32)      # (T, 3D) f32
    q = qkv[:, 0 * D:1 * D] + bq
    k = qkv[:, 1 * D:2 * D] + bk
    v = qkv[:, 2 * D:3 * D] + bv

    qh = _split_heads(q, num_heads, hd).astype(jnp.bfloat16)          # (H, T, hd)
    kh = _split_heads(k, num_heads, hd).astype(jnp.bfloat16)
    vh = _split_heads(v, num_heads, hd).astype(jnp.bfloat16)

    # KV-chunked online softmax: live scores bounded to (H, T, kv_chunk) f32.
    n_chunks = max(T // kv_chunk, 1)
    m_i = jnp.full((num_heads, T, 1), -1e30, dtype=jnp.float32)
    l_i = jnp.zeros((num_heads, T, 1), dtype=jnp.float32)
    acc = jnp.zeros((num_heads, T, hd), dtype=jnp.float32)
    for c in range(n_chunks):
        kc = kh[:, c * kv_chunk:(c + 1) * kv_chunk, :]
        vc = vh[:, c * kv_chunk:(c + 1) * kv_chunk, :]
        s = jnp.einsum("hqd,hkd->hqk", qh, kc,
                       preferred_element_type=jnp.float32)            # (H, T, Tc) f32
        m_new = jnp.maximum(m_i, jnp.max(s, axis=-1, keepdims=True))
        alpha = jnp.exp(m_i - m_new)
        p = jnp.exp(s - m_new)
        l_i = alpha * l_i + jnp.sum(p, axis=-1, keepdims=True)
        acc = alpha * acc + jnp.einsum("hqk,hkd->hqd", p.astype(jnp.bfloat16), vc,
                                       preferred_element_type=jnp.float32)
        m_i = m_new

    o = acc * pl.reciprocal(l_i, approx=True)                         # (H, T, hd) f32
    o_cat = jnp.concatenate([o[h] for h in range(num_heads)], axis=-1)  # (T, D)
    return jnp.dot(o_cat.astype(jnp.bfloat16), wo,
                   preferred_element_type=jnp.float32) + bo


def _conv_module(x, pw1_w, pw1_ba, pw1_bg, dw_ref, dw_b, pw2_w, pw2_b,
                 pad_ref, kernel_size):
    # x: (T, D).  BatchNorm is already folded into dw_ref / dw_b on the host.
    T, D = x.shape
    xb = x.astype(jnp.bfloat16)
    h2 = jnp.dot(xb, pw1_w, preferred_element_type=jnp.float32)       # (T, 2D) one matmul
    a = h2[:, :D] + pw1_ba
    g = h2[:, D:] + pw1_bg
    h = a * (0.5 * jnp.tanh(0.5 * g) + 0.5)                           # GLU; single EUP op

    pad = (kernel_size - 1) // 2
    lo = ((pad + 7) // 8) * 8 if pad > 0 else 0                       # sublane-aligned halo
    # Zero ONLY the halo rows (scratch is persistent -> must be re-zeroed every step);
    # the centre slab is fully overwritten below with a sublane-aligned store.
    if pad > 0:
        pad_ref[0:lo, :] = jnp.zeros((lo, D), jnp.float32)
        pad_ref[lo + T:lo + T + pad, :] = jnp.zeros((pad, D), jnp.float32)
    pad_ref[lo:lo + T, :] = h

    start = lo - pad
    acc = jnp.broadcast_to(dw_b, (T, D))                              # BN-folded bias
    for k in range(kernel_size):                                      # 31 taps from scratch
        acc = acc + pad_ref[start + k:start + k + T, :] * dw_ref[k:k + 1, :]
    acc = jnp.maximum(acc, 0.0)                                       # BN folded -> just ReLU

    return jnp.dot(acc.astype(jnp.bfloat16), pw2_w,
                   preferred_element_type=jnp.float32) + pw2_b


# ---------------- Pallas kernel -------------------------------------------------------------

def conformer_kernel(x_ref, vd_ref, vh_ref, qkv_w_ref, dd_w_ref, pw1_w_ref,
                     ffin_ref, ffout_ref, dw_ref, o_ref, pad_ref,
                     *, num_heads, kernel_size, kv_chunk):
    x = x_ref[0]                                     # (T, D) float32 for this batch element

    def vd(i):                                       # packed (1, D) vector params
        return vd_ref[i:i + 1, :]

    def vh(i):                                       # packed (1, 4D) vector params
        return vh_ref[i:i + 1, :]

    # --- FF1 (half-step residual) ---
    x = x + 0.5 * _feed_forward(x, vd(FF1_LN_G), vd(FF1_LN_B),
                                ffin_ref[0], vh(0), ffout_ref[0], vd(FF1_B2))

    # --- MHSA ---
    h = _layer_norm(x, vd(ATTN_LN_G), vd(ATTN_LN_B))
    x = x + _mha(h, qkv_w_ref[...], vd(BQ), vd(BK), vd(BV),
                 dd_w_ref[0], vd(BO), num_heads, kv_chunk)

    # --- Convolution module ---
    h = _layer_norm(x, vd(CONV_LN_G), vd(CONV_LN_B))
    x = x + _conv_module(h, pw1_w_ref[...], vd(PW1_BA), vd(PW1_BG),
                         dw_ref, vd(DW_B), dd_w_ref[1], vd(PW2_B),
                         pad_ref, kernel_size)

    # --- FF2 (half-step residual) ---
    x = x + 0.5 * _feed_forward(x, vd(FF2_LN_G), vd(FF2_LN_B),
                                ffin_ref[1], vh(1), ffout_ref[1], vd(FF2_B2))

    o_ref[0] = _layer_norm(x, vd(FIN_LN_G), vd(FIN_LN_B)).astype(o_ref.dtype)


# ---------------- host-side parameter packing ------------------------------------------------

def _prepare_params(p, num_heads):
    D = p["wq"].shape[0]
    hd = D // num_heads
    inv_scale = 1.0 / math.sqrt(hd)

    # Fold inference BatchNorm into the depthwise conv.
    bn_s = p["bn_g"] * jax.lax.rsqrt(p["bn_v"] + EPS_BN)                       # (1, D)
    dw_w = (p["dw_w"] * bn_s).astype(jnp.float32)                               # (K, D)
    dw_b = (p["dw_b"] * bn_s + p["bn_b"] - p["bn_m"] * bn_s).astype(jnp.float32)

    rows = [None] * NUM_VEC_D
    rows[FF1_LN_G], rows[FF1_LN_B], rows[FF1_B2] = p["ff1_ln_g"], p["ff1_ln_b"], p["ff1_b2"]
    rows[ATTN_LN_G], rows[ATTN_LN_B] = p["attn_ln_g"], p["attn_ln_b"]
    rows[BQ] = p["bq"] * inv_scale                        # attention scale folded into Q
    rows[BK], rows[BV], rows[BO] = p["bk"], p["bv"], p["bo"]
    rows[CONV_LN_G], rows[CONV_LN_B] = p["conv_ln_g"], p["conv_ln_b"]
    rows[PW1_BA], rows[PW1_BG] = p["pw1_b"][:, :D], p["pw1_b"][:, D:]
    rows[DW_B], rows[PW2_B] = dw_b, p["pw2_b"]
    rows[FF2_LN_G], rows[FF2_LN_B], rows[FF2_B2] = p["ff2_ln_g"], p["ff2_ln_b"], p["ff2_b2"]
    rows[FIN_LN_G], rows[FIN_LN_B] = p["fin_ln_g"], p["fin_ln_b"]

    vecs_d = jnp.concatenate(rows, axis=0).astype(jnp.float32)                  # (20, D)
    vecs_h = jnp.concatenate([p["ff1_b1"], p["ff2_b1"]], axis=0).astype(jnp.float32)  # (2, 4D)

    # Fused QKV projection (scale folded into the Q columns).
    qkv_w = jnp.concatenate([p["wq"] * inv_scale, p["wk"], p["wv"]],
                            axis=1).astype(jnp.bfloat16)                        # (D, 3D)
    dd_w = jnp.stack([p["wo"], p["pw2_w"]]).astype(jnp.bfloat16)                # (2, D, D)
    pw1_w = p["pw1_w"].astype(jnp.bfloat16)                                     # (D, 2D)
    ff_in_w = jnp.stack([p["ff1_w1"], p["ff2_w1"]]).astype(jnp.bfloat16)        # (2, D, 4D)
    ff_out_w = jnp.stack([p["ff1_w2"], p["ff2_w2"]]).astype(jnp.bfloat16)       # (2, 4D, D)

    return vecs_d, vecs_h, qkv_w, dd_w, pw1_w, ff_in_w, ff_out_w, dw_w


def _pick_kv_chunk(T):
    for c in (256, 128):
        if T > c and T % c == 0:
            return c
    return T


def conformer_block_pallas(x, params, num_heads):
    B, T, D = x.shape
    K = params["dw_w"].shape[0]
    H4 = params["ff1_w1"].shape[1]
    pad = (K - 1) // 2
    lo = ((pad + 7) // 8) * 8 if pad > 0 else 0
    kv_chunk = _pick_kv_chunk(T)

    param_list = list(_prepare_params(params, num_heads))

    # Generation-aware VMEM limit: ~75% of per-core capacity, capped at 100 MiB.
    # (v7x: 64 MiB physical -> ~48 MiB; v6e/v5e: 128 MiB -> ~96/100 MiB.)
    try:
        vmem_cap = int(pltpu.get_tpu_info().vmem_capacity_bytes)
        vmem_limit = min((3 * vmem_cap) // 4, 100 * 1024 * 1024)
    except Exception:
        vmem_limit = 64 * 1024 * 1024

    kern = functools.partial(conformer_kernel, num_heads=num_heads,
                             kernel_size=K, kv_chunk=kv_chunk)

    # Advisory cost estimate for the XLA scheduler.
    flops = B * (2 * T * D * 3 * D + 4 * T * D * D + 4 * T * T * D
                 + 2 * T * D * 2 * D + 2 * T * D * K + 8 * T * D * H4)
    transcendentals = B * (num_heads * T * T + T * D)
    bytes_accessed = 2 * x.size * x.dtype.itemsize + sum(
        int(a.size) * a.dtype.itemsize for a in param_list)
    cost = pl.CostEstimate(flops=int(flops), transcendentals=int(transcendentals),
                           bytes_accessed=int(bytes_accessed))

    def _build_and_run(single_buffer_consts):
        def const_spec(a):
            nd = a.ndim
            kw = {}
            if single_buffer_consts:
                # Parameters are never re-fetched across grid steps -> no double-buffer.
                kw["pipeline_mode"] = pl.Buffered(1)
            return pl.BlockSpec(a.shape, lambda b, _nd=nd: (0,) * _nd, **kw)

        in_specs = [pl.BlockSpec((1, T, D), lambda b: (b, 0, 0))] + \
                   [const_spec(a) for a in param_list]
        out_spec = pl.BlockSpec((1, T, D), lambda b: (b, 0, 0))

        fn = pl.pallas_call(
            kern,
            out_shape=jax.ShapeDtypeStruct((B, T, D), x.dtype),
            grid_spec=pltpu.PrefetchScalarGridSpec(
                num_scalar_prefetch=0,
                grid=(B,),
                in_specs=in_specs,
                out_specs=out_spec,
                scratch_shapes=[pltpu.VMEM((lo + T + pad, D), jnp.float32)],
            ),
            compiler_params=pltpu.CompilerParams(
                dimension_semantics=("parallel",),
                vmem_limit_bytes=int(vmem_limit),
            ),
            cost_estimate=cost,
        )
        return fn(x, *param_list)

    try:
        return _build_and_run(True)
    except Exception:
        # Fallback for environments where single-buffered BlockSpecs are unsupported.
        return _build_and_run(False)


# ---------------- pure-JAX f32 reference (original PyTorch eval semantics) -------------------

def _ref_feed_forward(x, ln_g, ln_b, w1, b1, w2, b2):
    h = _layer_norm(x, ln_g, ln_b)
    h = jnp.maximum(jnp.dot(h, w1) + b1, 0.0)
    return jnp.dot(h, w2) + b2


def _ref_mha(x, wq, bq, wk, bk, wv, bv, wo, bo, num_heads):
    T, D = x.shape
    hd = D // num_heads
    scale = 1.0 / math.sqrt(hd)
    q = jnp.dot(x, wq) + bq
    k = jnp.dot(x, wk) + bk
    v = jnp.dot(x, wv) + bv
    outs = []
    for h in range(num_heads):
        sl = slice(h * hd, (h + 1) * hd)
        s = jnp.dot(q[:, sl], k[:, sl].T) * scale
        s = s - jnp.max(s, axis=-1, keepdims=True)
        p = jnp.exp(s)
        p = p / jnp.sum(p, axis=-1, keepdims=True)
        outs.append(jnp.dot(p, v[:, sl]))
    return jnp.dot(jnp.concatenate(outs, axis=-1), wo) + bo


def _ref_conv_module(x, p):
    T, D = x.shape
    h = jnp.dot(x, p["pw1_w"]) + p["pw1_b"]
    a, gate = h[:, :D], h[:, D:]
    h = a * jax.nn.sigmoid(gate)                                       # GLU along channels
    K = p["dw_w"].shape[0]
    pad = (K - 1) // 2
    z = jnp.zeros((pad, D), h.dtype)
    hp = jnp.concatenate([z, h, z], axis=0)
    acc = jnp.broadcast_to(p["dw_b"], (T, D))
    for k in range(K):                                                 # depthwise conv
        acc = acc + hp[k:k + T, :] * p["dw_w"][k:k + 1, :]
    acc = (acc - p["bn_m"]) * jax.lax.rsqrt(p["bn_v"] + EPS_BN) * p["bn_g"] + p["bn_b"]
    acc = jnp.maximum(acc, 0.0)
    return jnp.dot(acc, p["pw2_w"]) + p["pw2_b"]


def _ref_conformer_block(x, p, num_heads):
    x = x + 0.5 * _ref_feed_forward(x, p["ff1_ln_g"], p["ff1_ln_b"],
                                    p["ff1_w1"], p["ff1_b1"], p["ff1_w2"], p["ff1_b2"])
    residual = x
    h = _layer_norm(x, p["attn_ln_g"], p["attn_ln_b"])
    x = residual + _ref_mha(h, p["wq"], p["bq"], p["wk"], p["bk"], p["wv"], p["bv"],
                            p["wo"], p["bo"], num_heads)
    h = _layer_norm(x, p["conv_ln_g"], p["conv_ln_b"])
    x = x + _ref_conv_module(h, p)
    x = x + 0.5 * _ref_feed_forward(x, p["ff2_ln_g"], p["ff2_ln_b"],
                                    p["ff2_w1"], p["ff2_b1"], p["ff2_w2"], p["ff2_b2"])
    return _layer_norm(x, p["fin_ln_g"], p["fin_ln_b"])


# ---------------- deterministic parameter init -----------------------------------------------

def init_params(key, dim, expansion=4, kernel_size=31):
    keys = jax.random.split(key, len(PARAM_NAMES))
    kd = dict(zip(PARAM_NAMES, keys))

    def w(name, shape, scale=0.05):
        return (scale * jax.random.normal(kd[name], shape)).astype(jnp.float32)

    D, H = dim, dim * expansion
    p = {}
    for n in ["ff1_ln", "attn_ln", "conv_ln", "ff2_ln", "fin_ln"]:
        p[n + "_g"] = (1.0 + 0.1 * jax.random.normal(kd[n + "_g"], (1, D))).astype(jnp.float32)
        p[n + "_b"] = w(n + "_b", (1, D))
    p["ff1_w1"] = w("ff1_w1", (D, H)); p["ff1_b1"] = w("ff1_b1", (1, H))
    p["ff1_w2"] = w("ff1_w2", (H, D)); p["ff1_b2"] = w("ff1_b2", (1, D))
    p["ff2_w1"] = w("ff2_w1", (D, H)); p["ff2_b1"] = w("ff2_b1", (1, H))
    p["ff2_w2"] = w("ff2_w2", (H, D)); p["ff2_b2"] = w("ff2_b2", (1, D))
    for n in ["wq", "wk", "wv", "wo"]:
        p[n] = w(n, (D, D))
    for n in ["bq", "bk", "bv", "bo"]:
        p[n] = w(n, (1, D))
    p["pw1_w"] = w("pw1_w", (D, 2 * D)); p["pw1_b"] = w("pw1_b", (1, 2 * D))
    p["dw_w"] = w("dw_w", (kernel_size, D)); p["dw_b"] = w("dw_b", (1, D))
    p["bn_g"] = (1.0 + 0.1 * jax.random.normal(kd["bn_g"], (1, D))).astype(jnp.float32)
    p["bn_b"] = w("bn_b", (1, D))
    p["bn_m"] = w("bn_m", (1, D))
    p["bn_v"] = (1.0 + 0.1 * jnp.abs(jax.random.normal(kd["bn_v"], (1, D)))).astype(jnp.float32)
    p["pw2_w"] = w("pw2_w", (D, D)); p["pw2_b"] = w("pw2_b", (1, D))
    return p


if __name__ == "__main__":
    B, T, D, heads = 2, 8, 32, 4
    key = jax.random.PRNGKey(0)
    kx, kp = jax.random.split(key)
    x = jax.random.normal(kx, (B, T, D), dtype=jnp.float32)
    params = init_params(kp, D)

    out = conformer_block_pallas(x, params, heads)
    out = jax.block_until_ready(out)
    assert out.shape == (B, T, D)

    # Plain-JAX f32 reference with the original (unfolded) PyTorch eval semantics.
    # Note: the kernel uses bf16 weights + one approx reciprocal (softmax denom), so
    # agreement is to ~1e-2, not bit-exact.
    ref = jax.vmap(lambda xb: _ref_conformer_block(xb, params, heads))(x)
    err = float(jnp.max(jnp.abs(out - ref)))
    assert err < 3e-2, f"max abs err {err}"
    print("KERNEL_OK")
</pallas_src>

<mosaic_0001>
module attributes {stable_mosaic.version = 11 : i64} {
  func.func @conformer_kernel(%arg0: i32, %arg1: memref<1x8x32xf32, #tpu.memory_space<vmem>>, %arg2: memref<20x32xf32, #tpu.memory_space<vmem>>, %arg3: memref<2x128xf32, #tpu.memory_space<vmem>>, %arg4: memref<32x96xbf16, #tpu.memory_space<vmem>>, %arg5: memref<2x32x32xbf16, #tpu.memory_space<vmem>>, %arg6: memref<32x64xbf16, #tpu.memory_space<vmem>>, %arg7: memref<2x32x128xbf16, #tpu.memory_space<vmem>>, %arg8: memref<2x128x32xbf16, #tpu.memory_space<vmem>>, %arg9: memref<31x32xf32, #tpu.memory_space<vmem>>, %arg10: memref<1x8x32xf32, #tpu.memory_space<vmem>>, %arg11: memref<39x32xf32, #tpu.memory_space<vmem>>) attributes {dimension_semantics = [#tpu.dimension_semantics<parallel>], iteration_bounds = array<i64: 2>, scalar_prefetch = 0 : i64, scratch_operands = 1 : i64, tpu.core_type = #tpu.core_type<tc>, window_params = [{transform_indices = @transform_0, window_bounds = array<i64: 1, 8, 32>}, {pipeline_mode = #tpu.pipeline_mode<synchronous>, transform_indices = @transform_1, window_bounds = array<i64: 20, 32>}, {pipeline_mode = #tpu.pipeline_mode<synchronous>, transform_indices = @transform_2, window_bounds = array<i64: 2, 128>}, {pipeline_mode = #tpu.pipeline_mode<synchronous>, transform_indices = @transform_3, window_bounds = array<i64: 32, 96>}, {pipeline_mode = #tpu.pipeline_mode<synchronous>, transform_indices = @transform_4, window_bounds = array<i64: 2, 32, 32>}, {pipeline_mode = #tpu.pipeline_mode<synchronous>, transform_indices = @transform_5, window_bounds = array<i64: 32, 64>}, {pipeline_mode = #tpu.pipeline_mode<synchronous>, transform_indices = @transform_6, window_bounds = array<i64: 2, 32, 128>}, {pipeline_mode = #tpu.pipeline_mode<synchronous>, transform_indices = @transform_7, window_bounds = array<i64: 2, 128, 32>}, {pipeline_mode = #tpu.pipeline_mode<synchronous>, transform_indices = @transform_8, window_bounds = array<i64: 31, 32>}, {transform_indices = @transform_9, window_bounds = array<i64: 1, 8, 32>}]} {
    %c0 = arith.constant 0 : index
    %c0_0 = arith.constant 0 : index
    %c0_1 = arith.constant 0 : index
    %0 = vector.load %arg1[%c0, %c0_0, %c0_1] : memref<1x8x32xf32, #tpu.memory_space<vmem>>, vector<1x8x32xf32>
    %1 = vector.shape_cast %0 : vector<1x8x32xf32> to vector<8x32xf32>
    %c0_2 = arith.constant 0 : index
    %c0_3 = arith.constant 0 : index
    %2 = vector.load %arg2[%c0_2, %c0_3] : memref<20x32xf32, #tpu.memory_space<vmem>>, vector<1x32xf32>
    %c1 = arith.constant 1 : index
    %c0_4 = arith.constant 0 : index
    %3 = vector.load %arg2[%c1, %c0_4] : memref<20x32xf32, #tpu.memory_space<vmem>>, vector<1x32xf32>
    %c0_5 = arith.constant 0 : index
    %c0_6 = arith.constant 0 : index
    %c0_7 = arith.constant 0 : index
    %4 = vector.load %arg7[%c0_5, %c0_6, %c0_7] : memref<2x32x128xbf16, #tpu.memory_space<vmem>>, vector<1x32x128xbf16>
    %5 = vector.shape_cast %4 : vector<1x32x128xbf16> to vector<32x128xbf16>
    %c0_8 = arith.constant 0 : index
    %c0_9 = arith.constant 0 : index
    %6 = vector.load %arg3[%c0_8, %c0_9] : memref<2x128xf32, #tpu.memory_space<vmem>>, vector<1x128xf32>
    %c0_10 = arith.constant 0 : index
    %c0_11 = arith.constant 0 : index
    %c0_12 = arith.constant 0 : index
    %7 = vector.load %arg8[%c0_10, %c0_11, %c0_12] : memref<2x128x32xbf16, #tpu.memory_space<vmem>>, vector<1x128x32xbf16>
    %8 = vector.shape_cast %7 : vector<1x128x32xbf16> to vector<128x32xbf16>
    %c2 = arith.constant 2 : index
    %c0_13 = arith.constant 0 : index
    %9 = vector.load %arg2[%c2, %c0_13] : memref<20x32xf32, #tpu.memory_space<vmem>>, vector<1x32xf32>
    %cst = arith.constant dense<0.000000e+00> : vector<8xf32>
    %10 = vector.multi_reduction <add>, %1, %cst [1] : vector<8x32xf32> to vector<8xf32>
    %11 = vector.shape_cast %10 : vector<8xf32> to vector<8x1xf32>
    %cst_14 = arith.constant 3.200000e+01 : f32
    %12 = vector.broadcast %cst_14 : f32 to vector<8x1xf32>
    %13 = arith.divf %11, %12 : vector<8x1xf32>
    %14 = vector.broadcast %13 : vector<8x1xf32> to vector<8x32xf32>
    %15 = arith.subf %1, %14 : vector<8x32xf32>
    %16 = arith.mulf %15, %15 : vector<8x32xf32>
    %cst_15 = arith.constant dense<0.000000e+00> : vector<8xf32>
    %17 = vector.multi_reduction <add>, %16, %cst_15 [1] : vector<8x32xf32> to vector<8xf32>
    %18 = vector.shape_cast %17 : vector<8xf32> to vector<8x1xf32>
    %cst_16 = arith.constant 3.200000e+01 : f32
    %19 = vector.broadcast %cst_16 : f32 to vector<8x1xf32>
    %20 = arith.divf %18, %19 : vector<8x1xf32>
    %21 = vector.broadcast %13 : vector<8x1xf32> to vector<8x32xf32>
    %22 = arith.subf %1, %21 : vector<8x32xf32>
    %cst_17 = arith.constant 9.99999974E-6 : f32
    %23 = vector.broadcast %cst_17 : f32 to vector<8x1xf32>
    %24 = arith.addf %20, %23 : vector<8x1xf32>
    %25 = math.rsqrt %24 : vector<8x1xf32>
    %26 = vector.broadcast %25 : vector<8x1xf32> to vector<8x32xf32>
    %27 = arith.mulf %22, %26 : vector<8x32xf32>
    %28 = vector.broadcast %2 : vector<1x32xf32> to vector<8x32xf32>
    %29 = arith.mulf %27, %28 : vector<8x32xf32>
    %30 = vector.broadcast %3 : vector<1x32xf32> to vector<8x32xf32>
    %31 = arith.addf %29, %30 : vector<8x32xf32>
    %32 = arith.truncf %31 : vector<8x32xf32> to vector<8x32xbf16>
    %cst_18 = arith.constant dense<0.000000e+00> : vector<8x128xf32>
    %33 = tpu.matmul %32, %5, %cst_18 {dimension_numbers = #tpu.dot_dimension_numbers<[1], [0], [0], [1], [0, 0, 1, 1], [], []>} : vector<8x32xbf16>, vector<32x128xbf16>, vector<8x128xf32> -> vector<8x128xf32>
    %34 = vector.broadcast %6 : vector<1x128xf32> to vector<8x128xf32>
    %35 = arith.addf %33, %34 : vector<8x128xf32>
    %cst_19 = arith.constant 0.000000e+00 : f32
    %36 = vector.broadcast %cst_19 : f32 to vector<8x128xf32>
    %37 = arith.maximumf %35, %36 : vector<8x128xf32>
    %38 = arith.truncf %37 : vector<8x128xf32> to vector<8x128xbf16>
    %cst_20 = arith.constant dense<0.000000e+00> : vector<8x32xf32>
    %39 = tpu.matmul %38, %8, %cst_20 {dimension_numbers = #tpu.dot_dimension_numbers<[1], [0], [0], [1], [0, 0, 1, 1], [], []>} : vector<8x128xbf16>, vector<128x32xbf16>, vector<8x32xf32> -> vector<8x32xf32>
    %40 = vector.broadcast %9 : vector<1x32xf32> to vector<8x32xf32>
    %41 = arith.addf %39, %40 : vector<8x32xf32>
    %cst_21 = arith.constant 5.000000e-01 : f32
    %42 = vector.broadcast %cst_21 : f32 to vector<8x32xf32>
    %43 = arith.mulf %42, %41 : vector<8x32xf32>
    %44 = arith.addf %1, %43 : vector<8x32xf32>
    %c3 = arith.constant 3 : index
    %c0_22 = arith.constant 0 : index
    %45 = vector.load %arg2[%c3, %c0_22] : memref<20x32xf32, #tpu.memory_space<vmem>>, vector<1x32xf32>
    %c4 = arith.constant 4 : index
    %c0_23 = arith.constant 0 : index
    %46 = vector.load %arg2[%c4, %c0_23] : memref<20x32xf32, #tpu.memory_space<vmem>>, vector<1x32xf32>
    %cst_24 = arith.constant dense<0.000000e+00> : vector<8xf32>
    %47 = vector.multi_reduction <add>, %44, %cst_24 [1] : vector<8x32xf32> to vector<8xf32>
    %48 = vector.shape_cast %47 : vector<8xf32> to vector<8x1xf32>
    %cst_25 = arith.constant 3.200000e+01 : f32
    %49 = vector.broadcast %cst_25 : f32 to vector<8x1xf32>
    %50 = arith.divf %48, %49 : vector<8x1xf32>
    %51 = vector.broadcast %50 : vector<8x1xf32> to vector<8x32xf32>
    %52 = arith.subf %44, %51 : vector<8x32xf32>
    %53 = arith.mulf %52, %52 : vector<8x32xf32>
    %cst_26 = arith.constant dense<0.000000e+00> : vector<8xf32>
    %54 = vector.multi_reduction <add>, %53, %cst_26 [1] : vector<8x32xf32> to vector<8xf32>
    %55 = vector.shape_cast %54 : vector<8xf32> to vector<8x1xf32>
    %cst_27 = arith.constant 3.200000e+01 : f32
    %56 = vector.broadcast %cst_27 : f32 to vector<8x1xf32>
    %57 = arith.divf %55, %56 : vector<8x1xf32>
    %58 = vector.broadcast %50 : vector<8x1xf32> to vector<8x32xf32>
    %59 = arith.subf %44, %58 : vector<8x32xf32>
    %cst_28 = arith.constant 9.99999974E-6 : f32
    %60 = vector.broadcast %cst_28 : f32 to vector<8x1xf32>
    %61 = arith.addf %57, %60 : vector<8x1xf32>
    %62 = math.rsqrt %61 : vector<8x1xf32>
    %63 = vector.broadcast %62 : vector<8x1xf32> to vector<8x32xf32>
    %64 = arith.mulf %59, %63 : vector<8x32xf32>
    %65 = vector.broadcast %45 : vector<1x32xf32> to vector<8x32xf32>
    %66 = arith.mulf %64, %65 : vector<8x32xf32>
    %67 = vector.broadcast %46 : vector<1x32xf32> to vector<8x32xf32>
    %68 = arith.addf %66, %67 : vector<8x32xf32>
    %c0_29 = arith.constant 0 : index
    %c0_30 = arith.constant 0 : index
    %69 = vector.load %arg4[%c0_29, %c0_30] : memref<32x96xbf16, #tpu.memory_space<vmem>>, vector<32x96xbf16>
    %c5 = arith.constant 5 : index
    %c0_31 = arith.constant 0 : index
    %70 = vector.load %arg2[%c5, %c0_31] : memref<20x32xf32, #tpu.memory_space<vmem>>, vector<1x32xf32>
    %c6 = arith.constant 6 : index
    %c0_32 = arith.constant 0 : index
    %71 = vector.load %arg2[%c6, %c0_32] : memref<20x32xf32, #tpu.memory_space<vmem>>, vector<1x32xf32>
    %c7 = arith.constant 7 : index
    %c0_33 = arith.constant 0 : index
    %72 = vector.load %arg2[%c7, %c0_33] : memref<20x32xf32, #tpu.memory_space<vmem>>, vector<1x32xf32>
    %c0_34 = arith.constant 0 : index
    %c0_35 = arith.constant 0 : index
    %c0_36 = arith.constant 0 : index
    %73 = vector.load %arg5[%c0_34, %c0_35, %c0_36] : memref<2x32x32xbf16, #tpu.memory_space<vmem>>, vector<1x32x32xbf16>
    %74 = vector.shape_cast %73 : vector<1x32x32xbf16> to vector<32x32xbf16>
    %c8 = arith.constant 8 : index
    %c0_37 = arith.constant 0 : index
    %75 = vector.load %arg2[%c8, %c0_37] : memref<20x32xf32, #tpu.memory_space<vmem>>, vector<1x32xf32>
    %76 = arith.truncf %68 : vector<8x32xf32> to vector<8x32xbf16>
    %cst_38 = arith.constant dense<0.000000e+00> : vector<8x96xf32>
    %77 = tpu.matmul %76, %69, %cst_38 {dimension_numbers = #tpu.dot_dimension_numbers<[1], [0], [0], [1], [0, 0, 1, 1], [], []>} : vector<8x32xbf16>, vector<32x96xbf16>, vector<8x96xf32> -> vector<8x96xf32>
    %78 = vector.extract_strided_slice %77 {offsets = [0, 0], sizes = [8, 32], strides = [1, 1]} : vector<8x96xf32> to vector<8x32xf32>
    %79 = vector.broadcast %70 : vector<1x32xf32> to vector<8x32xf32>
    %80 = arith.addf %78, %79 : vector<8x32xf32>
    %81 = vector.extract_strided_slice %77 {offsets = [0, 32], sizes = [8, 32], strides = [1, 1]} : vector<8x96xf32> to vector<8x32xf32>
    %82 = vector.broadcast %71 : vector<1x32xf32> to vector<8x32xf32>
    %83 = arith.addf %81, %82 : vector<8x32xf32>
    %84 = vector.extract_strided_slice %77 {offsets = [0, 64], sizes = [8, 32], strides = [1, 1]} : vector<8x96xf32> to vector<8x32xf32>
    %85 = vector.broadcast %72 : vector<1x32xf32> to vector<8x32xf32>
    %86 = arith.addf %84, %85 : vector<8x32xf32>
    %87 = vector.extract_strided_slice %80 {offsets = [0, 0], sizes = [8, 8], strides = [1, 1]} : vector<8x32xf32> to vector<8x8xf32>
    %88 = vector.shape_cast %87 : vector<8x8xf32> to vector<1x8x8xf32>
    %89 = vector.extract_strided_slice %80 {offsets = [0, 8], sizes = [8, 8], strides = [1, 1]} : vector<8x32xf32> to vector<8x8xf32>
    %90 = vector.shape_cast %89 : vector<8x8xf32> to vector<1x8x8xf32>
    %91 = vector.extract_strided_slice %80 {offsets = [0, 16], sizes = [8, 8], strides = [1, 1]} : vector<8x32xf32> to vector<8x8xf32>
    %92 = vector.shape_cast %91 : vector<8x8xf32> to vector<1x8x8xf32>
    %93 = vector.extract_strided_slice %80 {offsets = [0, 24], sizes = [8, 8], strides = [1, 1]} : vector<8x32xf32> to vector<8x8xf32>
    %94 = vector.shape_cast %93 : vector<8x8xf32> to vector<1x8x8xf32>
    %95 = tpu.concatenate %88, %90, %92, %94 in 0 : vector<1x8x8xf32>, vector<1x8x8xf32>, vector<1x8x8xf32>, vector<1x8x8xf32> -> vector<4x8x8xf32>
    %96 = arith.truncf %95 : vector<4x8x8xf32> to vector<4x8x8xbf16>
    %97 = vector.extract_strided_slice %83 {offsets = [0, 0], sizes = [8, 8], strides = [1, 1]} : vector<8x32xf32> to vector<8x8xf32>
    %98 = vector.shape_cast %97 : vector<8x8xf32> to vector<1x8x8xf32>
    %99 = vector.extract_strided_slice %83 {offsets = [0, 8], sizes = [8, 8], strides = [1, 1]} : vector<8x32xf32> to vector<8x8xf32>
    %100 = vector.shape_cast %99 : vector<8x8xf32> to vector<1x8x8xf32>
    %101 = vector.extract_strided_slice %83 {offsets = [0, 16], sizes = [8, 8], strides = [1, 1]} : vector<8x32xf32> to vector<8x8xf32>
    %102 = vector.shape_cast %101 : vector<8x8xf32> to vector<1x8x8xf32>
    %103 = vector.extract_strided_slice %83 {offsets = [0, 24], sizes = [8, 8], strides = [1, 1]} : vector<8x32xf32> to vector<8x8xf32>
    %104 = vector.shape_cast %103 : vector<8x8xf32> to vector<1x8x8xf32>
    %105 = tpu.concatenate %98, %100, %102, %104 in 0 : vector<1x8x8xf32>, vector<1x8x8xf32>, vector<1x8x8xf32>, vector<1x8x8xf32> -> vector<4x8x8xf32>
    %106 = arith.truncf %105 : vector<4x8x8xf32> to vector<4x8x8xbf16>
    %107 = vector.extract_strided_slice %86 {offsets = [0, 0], sizes = [8, 8], strides = [1, 1]} : vector<8x32xf32> to vector<8x8xf32>
    %108 = vector.shape_cast %107 : vector<8x8xf32> to vector<1x8x8xf32>
    %109 = vector.extract_strided_slice %86 {offsets = [0, 8], sizes = [8, 8], strides = [1, 1]} : vector<8x32xf32> to vector<8x8xf32>
    %110 = vector.shape_cast %109 : vector<8x8xf32> to vector<1x8x8xf32>
    %111 = vector.extract_strided_slice %86 {offsets = [0, 16], sizes = [8, 8], strides = [1, 1]} : vector<8x32xf32> to vector<8x8xf32>
    %112 = vector.shape_cast %111 : vector<8x8xf32> to vector<1x8x8xf32>
    %113 = vector.extract_strided_slice %86 {offsets = [0, 24], sizes = [8, 8], strides = [1, 1]} : vector<8x32xf32> to vector<8x8xf32>
    %114 = vector.shape_cast %113 : vector<8x8xf32> to vector<1x8x8xf32>
    %115 = tpu.concatenate %108, %110, %112, %114 in 0 : vector<1x8x8xf32>, vector<1x8x8xf32>, vector<1x8x8xf32>, vector<1x8x8xf32> -> vector<4x8x8xf32>
    %116 = arith.truncf %115 : vector<4x8x8xf32> to vector<4x8x8xbf16>
    %cst_39 = arith.constant -1.000000e+30 : f32
    %117 = vector.broadcast %cst_39 : f32 to vector<4x8x1xf32>
    %cst_40 = arith.constant 0.000000e+00 : f32
    %118 = vector.broadcast %cst_40 : f32 to vector<4x8x1xf32>
    %cst_41 = arith.constant 0.000000e+00 : f32
    %119 = vector.broadcast %cst_41 : f32 to vector<4x8x8xf32>
    "tpu.trace_start"() <{level = 10 : i32, message = "hqd,hkd->hqk"}> : () -> ()
    %cst_42 = arith.constant dense<0.000000e+00> : vector<4x8x8xf32>
    %120 = tpu.matmul %96, %106, %cst_42 {dimension_numbers = #tpu.dot_dimension_numbers<[2], [2], [1], [1], [0, 0, 0, 1, 1, 1], [0], [0]>} : vector<4x8x8xbf16>, vector<4x8x8xbf16>, vector<4x8x8xf32> -> vector<4x8x8xf32>
    "tpu.trace_stop"() : () -> ()
    %cst_43 = arith.constant dense<0xFF800000> : vector<4x8xf32>
    %121 = vector.multi_reduction <maximumf>, %120, %cst_43 [2] : vector<4x8x8xf32> to vector<4x8xf32>
    %122 = vector.shape_cast %121 : vector<4x8xf32> to vector<4x8x1xf32>
    %123 = arith.maximumf %117, %122 : vector<4x8x1xf32>
    %124 = arith.subf %117, %123 : vector<4x8x1xf32>
    %125 = math.exp %124 : vector<4x8x1xf32>
    %126 = vector.broadcast %123 : vector<4x8x1xf32> to vector<4x8x8xf32>
    %127 = arith.subf %120, %126 : vector<4x8x8xf32>
    %128 = math.exp %127 : vector<4x8x8xf32>
    %129 = arith.mulf %125, %118 : vector<4x8x1xf32>
    %cst_44 = arith.constant dense<0.000000e+00> : vector<4x8xf32>
    %130 = vector.multi_reduction <add>, %128, %cst_44 [2] : vector<4x8x8xf32> to vector<4x8xf32>
    %131 = vector.shape_cast %130 : vector<4x8xf32> to vector<4x8x1xf32>
    %132 = arith.addf %129, %131 : vector<4x8x1xf32>
    %133 = vector.broadcast %125 : vector<4x8x1xf32> to vector<4x8x8xf32>
    %134 = arith.mulf %133, %119 : vector<4x8x8xf32>
    %135 = arith.truncf %128 : vector<4x8x8xf32> to vector<4x8x8xbf16>
    "tpu.trace_start"() <{level = 10 : i32, message = "hqk,hkd->hqd"}> : () -> ()
    %cst_45 = arith.constant dense<0.000000e+00> : vector<4x8x8xf32>
    %136 = tpu.matmul %135, %116, %cst_45 {dimension_numbers = #tpu.dot_dimension_numbers<[2], [1], [1], [2], [0, 0, 0, 1, 1, 2], [0], [0]>} : vector<4x8x8xbf16>, vector<4x8x8xbf16>, vector<4x8x8xf32> -> vector<4x8x8xf32>
    "tpu.trace_stop"() : () -> ()
    %137 = arith.addf %134, %136 : vector<4x8x8xf32>
    %138 = tpu.reciprocal %132 {approx = true} : vector<4x8x1xf32> -> vector<4x8x1xf32>
    %139 = vector.broadcast %138 : vector<4x8x1xf32> to vector<4x8x8xf32>
    %140 = arith.mulf %137, %139 : vector<4x8x8xf32>
    %141 = vector.extract_strided_slice %140 {offsets = [0, 0, 0], sizes = [1, 8, 8], strides = [1, 1, 1]} : vector<4x8x8xf32> to vector<1x8x8xf32>
    %142 = vector.shape_cast %141 : vector<1x8x8xf32> to vector<8x8xf32>
    %143 = vector.extract_strided_slice %140 {offsets = [1, 0, 0], sizes = [1, 8, 8], strides = [1, 1, 1]} : vector<4x8x8xf32> to vector<1x8x8xf32>
    %144 = vector.shape_cast %143 : vector<1x8x8xf32> to vector<8x8xf32>
    %145 = vector.extract_strided_slice %140 {offsets = [2, 0, 0], sizes = [1, 8, 8], strides = [1, 1, 1]} : vector<4x8x8xf32> to vector<1x8x8xf32>
    %146 = vector.shape_cast %145 : vector<1x8x8xf32> to vector<8x8xf32>
    %147 = vector.extract_strided_slice %140 {offsets = [3, 0, 0], sizes = [1, 8, 8], strides = [1, 1, 1]} : vector<4x8x8xf32> to vector<1x8x8xf32>
    %148 = vector.shape_cast %147 : vector<1x8x8xf32> to vector<8x8xf32>
    %149 = tpu.concatenate %142, %144, %146, %148 in 1 : vector<8x8xf32>, vector<8x8xf32>, vector<8x8xf32>, vector<8x8xf32> -> vector<8x32xf32>
    %150 = arith.truncf %149 : vector<8x32xf32> to vector<8x32xbf16>
    %cst_46 = arith.constant dense<0.000000e+00> : vector<8x32xf32>
    %151 = tpu.matmul %150, %74, %cst_46 {dimension_numbers = #tpu.dot_dimension_numbers<[1], [0], [0], [1], [0, 0, 1, 1], [], []>} : vector<8x32xbf16>, vector<32x32xbf16>, vector<8x32xf32> -> vector<8x32xf32>
    %152 = vector.broadcast %75 : vector<1x32xf32> to vector<8x32xf32>
    %153 = arith.addf %151, %152 : vector<8x32xf32>
    %154 = arith.addf %44, %153 : vector<8x32xf32>
    %c9 = arith.constant 9 : index
    %c0_47 = arith.constant 0 : index
    %155 = vector.load %arg2[%c9, %c0_47] : memref<20x32xf32, #tpu.memory_space<vmem>>, vector<1x32xf32>
    %c10 = arith.constant 10 : index
    %c0_48 = arith.constant 0 : index
    %156 = vector.load %arg2[%c10, %c0_48] : memref<20x32xf32, #tpu.memory_space<vmem>>, vector<1x32xf32>
    %cst_49 = arith.constant dense<0.000000e+00> : vector<8xf32>
    %157 = vector.multi_reduction <add>, %154, %cst_49 [1] : vector<8x32xf32> to vector<8xf32>
    %158 = vector.shape_cast %157 : vector<8xf32> to vector<8x1xf32>
    %cst_50 = arith.constant 3.200000e+01 : f32
    %159 = vector.broadcast %cst_50 : f32 to vector<8x1xf32>
    %160 = arith.divf %158, %159 : vector<8x1xf32>
    %161 = vector.broadcast %160 : vector<8x1xf32> to vector<8x32xf32>
    %162 = arith.subf %154, %161 : vector<8x32xf32>
    %163 = arith.mulf %162, %162 : vector<8x32xf32>
    %cst_51 = arith.constant dense<0.000000e+00> : vector<8xf32>
    %164 = vector.multi_reduction <add>, %163, %cst_51 [1] : vector<8x32xf32> to vector<8xf32>
    %165 = vector.shape_cast %164 : vector<8xf32> to vector<8x1xf32>
    %cst_52 = arith.constant 3.200000e+01 : f32
    %166 = vector.broadcast %cst_52 : f32 to vector<8x1xf32>
    %167 = arith.divf %165, %166 : vector<8x1xf32>
    %168 = vector.broadcast %160 : vector<8x1xf32> to vector<8x32xf32>
    %169 = arith.subf %154, %168 : vector<8x32xf32>
    %cst_53 = arith.constant 9.99999974E-6 : f32
    %170 = vector.broadcast %cst_53 : f32 to vector<8x1xf32>
    %171 = arith.addf %167, %170 : vector<8x1xf32>
    %172 = math.rsqrt %171 : vector<8x1xf32>
    %173 = vector.broadcast %172 : vector<8x1xf32> to vector<8x32xf32>
    %174 = arith.mulf %169, %173 : vector<8x32xf32>
    %175 = vector.broadcast %155 : vector<1x32xf32> to vector<8x32xf32>
    %176 = arith.mulf %174, %175 : vector<8x32xf32>
    %177 = vector.broadcast %156 : vector<1x32xf32> to vector<8x32xf32>
    %178 = arith.addf %176, %177 : vector<8x32xf32>
    %c0_54 = arith.constant 0 : index
    %c0_55 = arith.constant 0 : index
    %179 = vector.load %arg6[%c0_54, %c0_55] : memref<32x64xbf16, #tpu.memory_space<vmem>>, vector<32x64xbf16>
    %c11 = arith.constant 11 : index
    %c0_56 = arith.constant 0 : index
    %180 = vector.load %arg2[%c11, %c0_56] : memref<20x32xf32, #tpu.memory_space<vmem>>, vector<1x32xf32>
    %c12 = arith.constant 12 : index
    %c0_57 = arith.constant 0 : index
    %181 = vector.load %arg2[%c12, %c0_57] : memref<20x32xf32, #tpu.memory_space<vmem>>, vector<1x32xf32>
    %c13 = arith.constant 13 : index
    %c0_58 = arith.constant 0 : index
    %182 = vector.load %arg2[%c13, %c0_58] : memref<20x32xf32, #tpu.memory_space<vmem>>, vector<1x32xf32>
    %c1_59 = arith.constant 1 : index
    %c0_60 = arith.constant 0 : index
    %c0_61 = arith.constant 0 : index
    %183 = vector.load %arg5[%c1_59, %c0_60, %c0_61] : memref<2x32x32xbf16, #tpu.memory_space<vmem>>, vector<1x32x32xbf16>
    %184 = vector.shape_cast %183 : vector<1x32x32xbf16> to vector<32x32xbf16>
    %c14 = arith.constant 14 : index
    %c0_62 = arith.constant 0 : index
    %185 = vector.load %arg2[%c14, %c0_62] : memref<20x32xf32, #tpu.memory_space<vmem>>, vector<1x32xf32>
    %186 = arith.truncf %178 : vector<8x32xf32> to vector<8x32xbf16>
    %cst_63 = arith.constant dense<0.000000e+00> : vector<8x64xf32>
    %187 = tpu.matmul %186, %179, %cst_63 {dimension_numbers = #tpu.dot_dimension_numbers<[1], [0], [0], [1], [0, 0, 1, 1], [], []>} : vector<8x32xbf16>, vector<32x64xbf16>, vector<8x64xf32> -> vector<8x64xf32>
    %188 = vector.extract_strided_slice %187 {offsets = [0, 0], sizes = [8, 32], strides = [1, 1]} : vector<8x64xf32> to vector<8x32xf32>
    %189 = vector.broadcast %180 : vector<1x32xf32> to vector<8x32xf32>
    %190 = arith.addf %188, %189 : vector<8x32xf32>
    %191 = vector.extract_strided_slice %187 {offsets = [0, 32], sizes = [8, 32], strides = [1, 1]} : vector<8x64xf32> to vector<8x32xf32>
    %192 = vector.broadcast %181 : vector<1x32xf32> to vector<8x32xf32>
    %193 = arith.addf %191, %192 : vector<8x32xf32>
    %cst_64 = arith.constant 5.000000e-01 : f32
    %194 = vector.broadcast %cst_64 : f32 to vector<8x32xf32>
    %195 = arith.mulf %194, %193 : vector<8x32xf32>
    %196 = math.tanh %195 : vector<8x32xf32>
    %cst_65 = arith.constant 5.000000e-01 : f32
    %197 = vector.broadcast %cst_65 : f32 to vector<8x32xf32>
    %198 = arith.mulf %197, %196 : vector<8x32xf32>
    %cst_66 = arith.constant 5.000000e-01 : f32
    %199 = vector.broadcast %cst_66 : f32 to vector<8x32xf32>
    %200 = arith.addf %198, %199 : vector<8x32xf32>
    %201 = arith.mulf %190, %200 : vector<8x32xf32>
    %cst_67 = arith.constant 0.000000e+00 : f32
    %202 = vector.broadcast %cst_67 : f32 to vector<16x32xf32>
    %c0_68 = arith.constant 0 : index
    %c0_69 = arith.constant 0 : index
    %203 = vector.load %arg11[%c0_68, %c0_69] : memref<39x32xf32, #tpu.memory_space<vmem>>, vector<16x32xf32>
    tpu.vector_store %arg11[%c0_68, %c0_69], %202 {strides = array<i32>} : memref<39x32xf32, #tpu.memory_space<vmem>>, vector<16x32xf32>,
    %cst_70 = arith.constant 0.000000e+00 : f32
    %204 = vector.broadcast %cst_70 : f32 to vector<15x32xf32>
    %c24 = arith.constant 24 : index
    %c0_71 = arith.constant 0 : index
    %205 = vector.load %arg11[%c24, %c0_71] : memref<39x32xf32, #tpu.memory_space<vmem>>, vector<15x32xf32>
    tpu.vector_store %arg11[%c24, %c0_71], %204 {strides = array<i32>} : memref<39x32xf32, #tpu.memory_space<vmem>>, vector<15x32xf32>,
    %c16 = arith.constant 16 : index
    %c0_72 = arith.constant 0 : index
    %206 = vector.load %arg11[%c16, %c0_72] : memref<39x32xf32, #tpu.memory_space<vmem>>, vector<8x32xf32>
    tpu.vector_store %arg11[%c16, %c0_72], %201 {strides = array<i32>} : memref<39x32xf32, #tpu.memory_space<vmem>>, vector<8x32xf32>,
    %207 = vector.shape_cast %182 : vector<1x32xf32> to vector<1x32xf32>
    %208 = vector.broadcast %207 : vector<1x32xf32> to vector<8x32xf32>
    %c1_73 = arith.constant 1 : index
    %c0_74 = arith.constant 0 : index
    %209 = vector.load %arg11[%c1_73, %c0_74] : memref<39x32xf32, #tpu.memory_space<vmem>>, vector<8x32xf32>
    %c0_75 = arith.constant 0 : index
    %c0_76 = arith.constant 0 : index
    %210 = vector.load %arg9[%c0_75, %c0_76] : memref<31x32xf32, #tpu.memory_space<vmem>>, vector<1x32xf32>
    %211 = vector.broadcast %210 : vector<1x32xf32> to vector<8x32xf32>
    %212 = arith.mulf %209, %211 : vector<8x32xf32>
    %213 = arith.addf %208, %212 : vector<8x32xf32>
    %c2_77 = arith.constant 2 : index
    %c0_78 = arith.constant 0 : index
    %214 = vector.load %arg11[%c2_77, %c0_78] : memref<39x32xf32, #tpu.memory_space<vmem>>, vector<8x32xf32>
    %c1_79 = arith.constant 1 : index
    %c0_80 = arith.constant 0 : index
    %215 = vector.load %arg9[%c1_79, %c0_80] : memref<31x32xf32, #tpu.memory_space<vmem>>, vector<1x32xf32>
    %216 = vector.broadcast %215 : vector<1x32xf32> to vector<8x32xf32>
    %217 = arith.mulf %214, %216 : vector<8x32xf32>
    %218 = arith.addf %213, %217 : vector<8x32xf32>
    %c3_81 = arith.constant 3 : index
    %c0_82 = arith.constant 0 : index
    %219 = vector.load %arg11[%c3_81, %c0_82] : memref<39x32xf32, #tpu.memory_space<vmem>>, vector<8x32xf32>
    %c2_83 = arith.constant 2 : index
    %c0_84 = arith.constant 0 : index
    %220 = vector.load %arg9[%c2_83, %c0_84] : memref<31x32xf32, #tpu.memory_space<vmem>>, vector<1x32xf32>
    %221 = vector.broadcast %220 : vector<1x32xf32> to vector<8x32xf32>
    %222 = arith.mulf %219, %221 : vector<8x32xf32>
    %223 = arith.addf %218, %222 : vector<8x32xf32>
    %c4_85 = arith.constant 4 : index
    %c0_86 = arith.constant 0 : index
    %224 = vector.load %arg11[%c4_85, %c0_86] : memref<39x32xf32, #tpu.memory_space<vmem>>, vector<8x32xf32>
    %c3_87 = arith.constant 3 : index
    %c0_88 = arith.constant 0 : index
    %225 = vector.load %arg9[%c3_87, %c0_88] : memref<31x32xf32, #tpu.memory_space<vmem>>, vector<1x32xf32>
    %226 = vector.broadcast %225 : vector<1x32xf32> to vector<8x32xf32>
    %227 = arith.mulf %224, %226 : vector<8x32xf32>
    %228 = arith.addf %223, %227 : vector<8x32xf32>
    %c5_89 = arith.constant 5 : index
    %c0_90 = arith.constant 0 : index
    %229 = vector.load %arg11[%c5_89, %c0_90] : memref<39x32xf32, #tpu.memory_space<vmem>>, vector<8x32xf32>
    %c4_91 = arith.constant 4 : index
    %c0_92 = arith.constant 0 : index
    %230 = vector.load %arg9[%c4_91, %c0_92] : memref<31x32xf32, #tpu.memory_space<vmem>>, vector<1x32xf32>
    %231 = vector.broadcast %230 : vector<1x32xf32> to vector<8x32xf32>
    %232 = arith.mulf %229, %231 : vector<8x32xf32>
    %233 = arith.addf %228, %232 : vector<8x32xf32>
    %c6_93 = arith.constant 6 : index
    %c0_94 = arith.constant 0 : index
    %234 = vector.load %arg11[%c6_93, %c0_94] : memref<39x32xf32, #tpu.memory_space<vmem>>, vector<8x32xf32>
    %c5_95 = arith.constant 5 : index
    %c0_96 = arith.constant 0 : index
    %235 = vector.load %arg9[%c5_95, %c0_96] : memref<31x32xf32, #tpu.memory_space<vmem>>, vector<1x32xf32>
    %236 = vector.broadcast %235 : vector<1x32xf32> to vector<8x32xf32>
    %237 = arith.mulf %234, %236 : vector<8x32xf32>
    %238 = arith.addf %233, %237 : vector<8x32xf32>
    %c7_97 = arith.constant 7 : index
    %c0_98 = arith.constant 0 : index
    %239 = vector.load %arg11[%c7_97, %c0_98] : memref<39x32xf32, #tpu.memory_space<vmem>>, vector<8x32xf32>
    %c6_99 = arith.constant 6 : index
    %c0_100 = arith.constant 0 : index
    %240 = vector.load %arg9[%c6_99, %c0_100] : memref<31x32xf32, #tpu.memory_space<vmem>>, vector<1x32xf32>
    %241 = vector.broadcast %240 : vector<1x32xf32> to vector<8x32xf32>
    %242 = arith.mulf %239, %241 : vector<8x32xf32>
    %243 = arith.addf %238, %242 : vector<8x32xf32>
    %c8_101 = arith.constant 8 : index
    %c0_102 = arith.constant 0 : index
    %244 = vector.load %arg11[%c8_101, %c0_102] : memref<39x32xf32, #tpu.memory_space<vmem>>, vector<8x32xf32>
    %c7_103 = arith.constant 7 : index
    %c0_104 = arith.constant 0 : index
    %245 = vector.load %arg9[%c7_103, %c0_104] : memref<31x32xf32, #tpu.memory_space<vmem>>, vector<1x32xf32>
    %246 = vector.broadcast %245 : vector<1x32xf32> to vector<8x32xf32>
    %247 = arith.mulf %244, %246 : vector<8x32xf32>
    %248 = arith.addf %243, %247 : vector<8x32xf32>
    %c9_105 = arith.constant 9 : index
    %c0_106 = arith.constant 0 : index
    %249 = vector.load %arg11[%c9_105, %c0_106] : memref<39x32xf32, #tpu.memory_space<vmem>>, vector<8x32xf32>
    %c8_107 = arith.constant 8 : index
    %c0_108 = arith.constant 0 : index
    %250 = vector.load %arg9[%c8_107, %c0_108] : memref<31x32xf32, #tpu.memory_space<vmem>>, vector<1x32xf32>
    %251 = vector.broadcast %250 : vector<1x32xf32> to vector<8x32xf32>
    %252 = arith.mulf %249, %251 : vector<8x32xf32>
    %253 = arith.addf %248, %252 : vector<8x32xf32>
    %c10_109 = arith.constant 10 : index
    %c0_110 = arith.constant 0 : index
    %254 = vector.load %arg11[%c10_109, %c0_110] : memref<39x32xf32, #tpu.memory_space<vmem>>, vector<8x32xf32>
    %c9_111 = arith.constant 9 : index
    %c0_112 = arith.constant 0 : index
    %255 = vector.load %arg9[%c9_111, %c0_112] : memref<31x32xf32, #tpu.memory_space<vmem>>, vector<1x32xf32>
    %256 = vector.broadcast %255 : vector<1x32xf32> to vector<8x32xf32>
    %257 = arith.mulf %254, %256 : vector<8x32xf32>
    %258 = arith.addf %253, %257 : vector<8x32xf32>
    %c11_113 = arith.constant 11 : index
    %c0_114 = arith.constant 0 : index
    %259 = vector.load %arg11[%c11_113, %c0_114] : memref<39x32xf32, #tpu.memory_space<vmem>>, vector<8x32xf32>
    %c10_115 = arith.constant 10 : index
    %c0_116 = arith.constant 0 : index
    %260 = vector.load %arg9[%c10_115, %c0_116] : memref<31x32xf32, #tpu.memory_space<vmem>>, vector<1x32xf32>
    %261 = vector.broadcast %260 : vector<1x32xf32> to vector<8x32xf32>
    %262 = arith.mulf %259, %261 : vector<8x32xf32>
    %263 = arith.addf %258, %262 : vector<8x32xf32>
    %c12_117 = arith.constant 12 : index
    %c0_118 = arith.constant 0 : index
    %264 = vector.load %arg11[%c12_117, %c0_118] : memref<39x32xf32, #tpu.memory_space<vmem>>, vector<8x32xf32>
    %c11_119 = arith.constant 11 : index
    %c0_120 = arith.constant 0 : index
    %265 = vector.load %arg9[%c11_119, %c0_120] : memref<31x32xf32, #tpu.memory_space<vmem>>, vector<1x32xf32>
    %266 = vector.broadcast %265 : vector<1x32xf32> to vector<8x32xf32>
    %267 = arith.mulf %264, %266 : vector<8x32xf32>
    %268 = arith.addf %263, %267 : vector<8x32xf32>
    %c13_121 = arith.constant 13 : index
    %c0_122 = arith.constant 0 : index
    %269 = vector.load %arg11[%c13_121, %c0_122] : memref<39x32xf32, #tpu.memory_space<vmem>>, vector<8x32xf32>
    %c12_123 = arith.constant 12 : index
    %c0_124 = arith.constant 0 : index
    %270 = vector.load %arg9[%c12_123, %c0_124] : memref<31x32xf32, #tpu.memory_space<vmem>>, vector<1x32xf32>
    %271 = vector.broadcast %270 : vector<1x32xf32> to vector<8x32xf32>
    %272 = arith.mulf %269, %271 : vector<8x32xf32>
    %273 = arith.addf %268, %272 : vector<8x32xf32>
    %c14_125 = arith.constant 14 : index
    %c0_126 = arith.constant 0 : index
    %274 = vector.load %arg11[%c14_125, %c0_126] : memref<39x32xf32, #tpu.memory_space<vmem>>, vector<8x32xf32>
    %c13_127 = arith.constant 13 : index
    %c0_128 = arith.constant 0 : index
    %275 = vector.load %arg9[%c13_127, %c0_128] : memref<31x32xf32, #tpu.memory_space<vmem>>, vector<1x32xf32>
    %276 = vector.broadcast %275 : vector<1x32xf32> to vector<8x32xf32>
    %277 = arith.mulf %274, %276 : vector<8x32xf32>
    %278 = arith.addf %273, %277 : vector<8x32xf32>
    %c15 = arith.constant 15 : index
    %c0_129 = arith.constant 0 : index
    %279 = vector.load %arg11[%c15, %c0_129] : memref<39x32xf32, #tpu.memory_space<vmem>>, vector<8x32xf32>
    %c14_130 = arith.constant 14 : index
    %c0_131 = arith.constant 0 : index
    %280 = vector.load %arg9[%c14_130, %c0_131] : memref<31x32xf32, #tpu.memory_space<vmem>>, vector<1x32xf32>
    %281 = vector.broadcast %280 : vector<1x32xf32> to vector<8x32xf32>
    %282 = arith.mulf %279, %281 : vector<8x32xf32>
    %283 = arith.addf %278, %282 : vector<8x32xf32>
    %c16_132 = arith.constant 16 : index
    %c0_133 = arith.constant 0 : index
    %284 = vector.load %arg11[%c16_132, %c0_133] : memref<39x32xf32, #tpu.memory_space<vmem>>, vector<8x32xf32>
    %c15_134 = arith.constant 15 : index
    %c0_135 = arith.constant 0 : index
    %285 = vector.load %arg9[%c15_134, %c0_135] : memref<31x32xf32, #tpu.memory_space<vmem>>, vector<1x32xf32>
    %286 = vector.broadcast %285 : vector<1x32xf32> to vector<8x32xf32>
    %287 = arith.mulf %284, %286 : vector<8x32xf32>
    %288 = arith.addf %283, %287 : vector<8x32xf32>
    %c17 = arith.constant 17 : index
    %c0_136 = arith.constant 0 : index
    %289 = vector.load %arg11[%c17, %c0_136] : memref<39x32xf32, #tpu.memory_space<vmem>>, vector<8x32xf32>
    %c16_137 = arith.constant 16 : index
    %c0_138 = arith.constant 0 : index
    %290 = vector.load %arg9[%c16_137, %c0_138] : memref<31x32xf32, #tpu.memory_space<vmem>>, vector<1x32xf32>
    %291 = vector.broadcast %290 : vector<1x32xf32> to vector<8x32xf32>
    %292 = arith.mulf %289, %291 : vector<8x32xf32>
    %293 = arith.addf %288, %292 : vector<8x32xf32>
    %c18 = arith.constant 18 : index
    %c0_139 = arith.constant 0 : index
    %294 = vector.load %arg11[%c18, %c0_139] : memref<39x32xf32, #tpu.memory_space<vmem>>, vector<8x32xf32>
    %c17_140 = arith.constant 17 : index
    %c0_141 = arith.constant 0 : index
    %295 = vector.load %arg9[%c17_140, %c0_141] : memref<31x32xf32, #tpu.memory_space<vmem>>, vector<1x32xf32>
    %296 = vector.broadcast %295 : vector<1x32xf32> to vector<8x32xf32>
    %297 = arith.mulf %294, %296 : vector<8x32xf32>
    %298 = arith.addf %293, %297 : vector<8x32xf32>
    %c19 = arith.constant 19 : index
    %c0_142 = arith.constant 0 : index
    %299 = vector.load %arg11[%c19, %c0_142] : memref<39x32xf32, #tpu.memory_space<vmem>>, vector<8x32xf32>
    %c18_143 = arith.constant 18 : index
    %c0_144 = arith.constant 0 : index
    %300 = vector.load %arg9[%c18_143, %c0_144] : memref<31x32xf32, #tpu.memory_space<vmem>>, vector<1x32xf32>
    %301 = vector.broadcast %300 : vector<1x32xf32> to vector<8x32xf32>
    %302 = arith.mulf %299, %301 : vector<8x32xf32>
    %303 = arith.addf %298, %302 : vector<8x32xf32>
    %c20 = arith.constant 20 : index
    %c0_145 = arith.constant 0 : index
    %304 = vector.load %arg11[%c20, %c0_145] : memref<39x32xf32, #tpu.memory_space<vmem>>, vector<8x32xf32>
    %c19_146 = arith.constant 19 : index
    %c0_147 = arith.constant 0 : index
    %305 = vector.load %arg9[%c19_146, %c0_147] : memref<31x32xf32, #tpu.memory_space<vmem>>, vector<1x32xf32>
    %306 = vector.broadcast %305 : vector<1x32xf32> to vector<8x32xf32>
    %307 = arith.mulf %304, %306 : vector<8x32xf32>
    %308 = arith.addf %303, %307 : vector<8x32xf32>
    %c21 = arith.constant 21 : index
    %c0_148 = arith.constant 0 : index
    %309 = vector.load %arg11[%c21, %c0_148] : memref<39x32xf32, #tpu.memory_space<vmem>>, vector<8x32xf32>
    %c20_149 = arith.constant 20 : index
    %c0_150 = arith.constant 0 : index
    %310 = vector.load %arg9[%c20_149, %c0_150] : memref<31x32xf32, #tpu.memory_space<vmem>>, vector<1x32xf32>
    %311 = vector.broadcast %310 : vector<1x32xf32> to vector<8x32xf32>
    %312 = arith.mulf %309, %311 : vector<8x32xf32>
    %313 = arith.addf %308, %312 : vector<8x32xf32>
    %c22 = arith.constant 22 : index
    %c0_151 = arith.constant 0 : index
    %314 = vector.load %arg11[%c22, %c0_151] : memref<39x32xf32, #tpu.memory_space<vmem>>, vector<8x32xf32>
    %c21_152 = arith.constant 21 : index
    %c0_153 = arith.constant 0 : index
    %315 = vector.load %arg9[%c21_152, %c0_153] : memref<31x32xf32, #tpu.memory_space<vmem>>, vector<1x32xf32>
    %316 = vector.broadcast %315 : vector<1x32xf32> to vector<8x32xf32>
    %317 = arith.mulf %314, %316 : vector<8x32xf32>
    %318 = arith.addf %313, %317 : vector<8x32xf32>
    %c23 = arith.constant 23 : index
    %c0_154 = arith.constant 0 : index
    %319 = vector.load %arg11[%c23, %c0_154] : memref<39x32xf32, #tpu.memory_space<vmem>>, vector<8x32xf32>
    %c22_155 = arith.constant 22 : index
    %c0_156 = arith.constant 0 : index
    %320 = vector.load %arg9[%c22_155, %c0_156] : memref<31x32xf32, #tpu.memory_space<vmem>>, vector<1x32xf32>
    %321 = vector.broadcast %320 : vector<1x32xf32> to vector<8x32xf32>
    %322 = arith.mulf %319, %321 : vector<8x32xf32>
    %323 = arith.addf %318, %322 : vector<8x32xf32>
    %c24_157 = arith.constant 24 : index
    %c0_158 = arith.constant 0 : index
    %324 = vector.load %arg11[%c24_157, %c0_158] : memref<39x32xf32, #tpu.memory_space<vmem>>, vector<8x32xf32>
    %c23_159 = arith.constant 23 : index
    %c0_160 = arith.constant 0 : index
    %325 = vector.load %arg9[%c23_159, %c0_160] : memref<31x32xf32, #tpu.memory_space<vmem>>, vector<1x32xf32>
    %326 = vector.broadcast %325 : vector<1x32xf32> to vector<8x32xf32>
    %327 = arith.mulf %324, %326 : vector<8x32xf32>
    %328 = arith.addf %323, %327 : vector<8x32xf32>
    %c25 = arith.constant 25 : index
    %c0_161 = arith.constant 0 : index
    %329 = vector.load %arg11[%c25, %c0_161] : memref<39x32xf32, #tpu.memory_space<vmem>>, vector<8x32xf32>
    %c24_162 = arith.constant 24 : index
    %c0_163 = arith.constant 0 : index
    %330 = vector.load %arg9[%c24_162, %c0_163] : memref<31x32xf32, #tpu.memory_space<vmem>>, vector<1x32xf32>
    %331 = vector.broadcast %330 : vector<1x32xf32> to vector<8x32xf32>
    %332 = arith.mulf %329, %331 : vector<8x32xf32>
    %333 = arith.addf %328, %332 : vector<8x32xf32>
    %c26 = arith.constant 26 : index
    %c0_164 = arith.constant 0 : index
    %334 = vector.load %arg11[%c26, %c0_164] : memref<39x32xf32, #tpu.memory_space<vmem>>, vector<8x32xf32>
    %c25_165 = arith.constant 25 : index
    %c0_166 = arith.constant 0 : index
    %335 = vector.load %arg9[%c25_165, %c0_166] : memref<31x32xf32, #tpu.memory_space<vmem>>, vector<1x32xf32>
    %336 = vector.broadcast %335 : vector<1x32xf32> to vector<8x32xf32>
    %337 = arith.mulf %334, %336 : vector<8x32xf32>
    %338 = arith.addf %333, %337 : vector<8x32xf32>
    %c27 = arith.constant 27 : index
    %c0_167 = arith.constant 0 : index
    %339 = vector.load %arg11[%c27, %c0_167] : memref<39x32xf32, #tpu.memory_space<vmem>>, vector<8x32xf32>
    %c26_168 = arith.constant 26 : index
    %c0_169 = arith.constant 0 : index
    %340 = vector.load %arg9[%c26_168, %c0_169] : memref<31x32xf32, #tpu.memory_space<vmem>>, vector<1x32xf32>
    %341 = vector.broadcast %340 : vector<1x32xf32> to vector<8x32xf32>
    %342 = arith.mulf %339, %341 : vector<8x32xf32>
    %343 = arith.addf %338, %342 : vector<8x32xf32>
    %c28 = arith.constant 28 : index
    %c0_170 = arith.constant 0 : index
    %344 = vector.load %arg11[%c28, %c0_170] : memref<39x32xf32, #tpu.memory_space<vmem>>, vector<8x32xf32>
    %c27_171 = arith.constant 27 : index
    %c0_172 = arith.constant 0 : index
    %345 = vector.load %arg9[%c27_171, %c0_172] : memref<31x32xf32, #tpu.memory_space<vmem>>, vector<1x32xf32>
    %346 = vector.broadcast %345 : vector<1x32xf32> to vector<8x32xf32>
    %347 = arith.mulf %344, %346 : vector<8x32xf32>
    %348 = arith.addf %343, %347 : vector<8x32xf32>
    %c29 = arith.constant 29 : index
    %c0_173 = arith.constant 0 : index
    %349 = vector.load %arg11[%c29, %c0_173] : memref<39x32xf32, #tpu.memory_space<vmem>>, vector<8x32xf32>
    %c28_174 = arith.constant 28 : index
    %c0_175 = arith.constant 0 : index
    %350 = vector.load %arg9[%c28_174, %c0_175] : memref<31x32xf32, #tpu.memory_space<vmem>>, vector<1x32xf32>
    %351 = vector.broadcast %350 : vector<1x32xf32> to vector<8x32xf32>
    %352 = arith.mulf %349, %351 : vector<8x32xf32>
    %353 = arith.addf %348, %352 : vector<8x32xf32>
    %c30 = arith.constant 30 : index
    %c0_176 = arith.constant 0 : index
    %354 = vector.load %arg11[%c30, %c0_176] : memref<39x32xf32, #tpu.memory_space<vmem>>, vector<8x32xf32>
    %c29_177 = arith.constant 29 : index
    %c0_178 = arith.constant 0 : index
    %355 = vector.load %arg9[%c29_177, %c0_178] : memref<31x32xf32, #tpu.memory_space<vmem>>, vector<1x32xf32>
    %356 = vector.broadcast %355 : vector<1x32xf32> to vector<8x32xf32>
    %357 = arith.mulf %354, %356 : vector<8x32xf32>
    %358 = arith.addf %353, %357 : vector<8x32xf32>
    %c31 = arith.constant 31 : index
    %c0_179 = arith.constant 0 : index
    %359 = vector.load %arg11[%c31, %c0_179] : memref<39x32xf32, #tpu.memory_space<vmem>>, vector<8x32xf32>
    %c30_180 = arith.constant 30 : index
    %c0_181 = arith.constant 0 : index
    %360 = vector.load %arg9[%c30_180, %c0_181] : memref<31x32xf32, #tpu.memory_space<vmem>>, vector<1x32xf32>
    %361 = vector.broadcast %360 : vector<1x32xf32> to vector<8x32xf32>
    %362 = arith.mulf %359, %361 : vector<8x32xf32>
    %363 = arith.addf %358, %362 : vector<8x32xf32>
    %cst_182 = arith.constant 0.000000e+00 : f32
    %364 = vector.broadcast %cst_182 : f32 to vector<8x32xf32>
    %365 = arith.maximumf %363, %364 : vector<8x32xf32>
    %366 = arith.truncf %365 : vector<8x32xf32> to vector<8x32xbf16>
    %cst_183 = arith.constant dense<0.000000e+00> : vector<8x32xf32>
    %367 = tpu.matmul %366, %184, %cst_183 {dimension_numbers = #tpu.dot_dimension_numbers<[1], [0], [0], [1], [0, 0, 1, 1], [], []>} : vector<8x32xbf16>, vector<32x32xbf16>, vector<8x32xf32> -> vector<8x32xf32>
    %368 = vector.broadcast %185 : vector<1x32xf32> to vector<8x32xf32>
    %369 = arith.addf %367, %368 : vector<8x32xf32>
    %370 = arith.addf %154, %369 : vector<8x32xf32>
    %c15_184 = arith.constant 15 : index
    %c0_185 = arith.constant 0 : index
    %371 = vector.load %arg2[%c15_184, %c0_185] : memref<20x32xf32, #tpu.memory_space<vmem>>, vector<1x32xf32>
    %c16_186 = arith.constant 16 : index
    %c0_187 = arith.constant 0 : index
    %372 = vector.load %arg2[%c16_186, %c0_187] : memref<20x32xf32, #tpu.memory_space<vmem>>, vector<1x32xf32>
    %c1_188 = arith.constant 1 : index
    %c0_189 = arith.constant 0 : index
    %c0_190 = arith.constant 0 : index
    %373 = vector.load %arg7[%c1_188, %c0_189, %c0_190] : memref<2x32x128xbf16, #tpu.memory_space<vmem>>, vector<1x32x128xbf16>
    %374 = vector.shape_cast %373 : vector<1x32x128xbf16> to vector<32x128xbf16>
    %c1_191 = arith.constant 1 : index
    %c0_192 = arith.constant 0 : index
    %375 = vector.load %arg3[%c1_191, %c0_192] : memref<2x128xf32, #tpu.memory_space<vmem>>, vector<1x128xf32>
    %c1_193 = arith.constant 1 : index
    %c0_194 = arith.constant 0 : index
    %c0_195 = arith.constant 0 : index
    %376 = vector.load %arg8[%c1_193, %c0_194, %c0_195] : memref<2x128x32xbf16, #tpu.memory_space<vmem>>, vector<1x128x32xbf16>
    %377 = vector.shape_cast %376 : vector<1x128x32xbf16> to vector<128x32xbf16>
    %c17_196 = arith.constant 17 : index
    %c0_197 = arith.constant 0 : index
    %378 = vector.load %arg2[%c17_196, %c0_197] : memref<20x32xf32, #tpu.memory_space<vmem>>, vector<1x32xf32>
    %cst_198 = arith.constant dense<0.000000e+00> : vector<8xf32>
    %379 = vector.multi_reduction <add>, %370, %cst_198 [1] : vector<8x32xf32> to vector<8xf32>
    %380 = vector.shape_cast %379 : vector<8xf32> to vector<8x1xf32>
    %cst_199 = arith.constant 3.200000e+01 : f32
    %381 = vector.broadcast %cst_199 : f32 to vector<8x1xf32>
    %382 = arith.divf %380, %381 : vector<8x1xf32>
    %383 = vector.broadcast %382 : vector<8x1xf32> to vector<8x32xf32>
    %384 = arith.subf %370, %383 : vector<8x32xf32>
    %385 = arith.mulf %384, %384 : vector<8x32xf32>
    %cst_200 = arith.constant dense<0.000000e+00> : vector<8xf32>
    %386 = vector.multi_reduction <add>, %385, %cst_200 [1] : vector<8x32xf32> to vector<8xf32>
    %387 = vector.shape_cast %386 : vector<8xf32> to vector<8x1xf32>
    %cst_201 = arith.constant 3.200000e+01 : f32
    %388 = vector.broadcast %cst_201 : f32 to vector<8x1xf32>
    %389 = arith.divf %387, %388 : vector<8x1xf32>
    %390 = vector.broadcast %382 : vector<8x1xf32> to vector<8x32xf32>
    %391 = arith.subf %370, %390 : vector<8x32xf32>
    %cst_202 = arith.constant 9.99999974E-6 : f32
    %392 = vector.broadcast %cst_202 : f32 to vector<8x1xf32>
    %393 = arith.addf %389, %392 : vector<8x1xf32>
    %394 = math.rsqrt %393 : vector<8x1xf32>
    %395 = vector.broadcast %394 : vector<8x1xf32> to vector<8x32xf32>
    %396 = arith.mulf %391, %395 : vector<8x32xf32>
    %397 = vector.broadcast %371 : vector<1x32xf32> to vector<8x32xf32>
    %398 = arith.mulf %396, %397 : vector<8x32xf32>
    %399 = vector.broadcast %372 : vector<1x32xf32> to vector<8x32xf32>
    %400 = arith.addf %398, %399 : vector<8x32xf32>
    %401 = arith.truncf %400 : vector<8x32xf32> to vector<8x32xbf16>
    %cst_203 = arith.constant dense<0.000000e+00> : vector<8x128xf32>
    %402 = tpu.matmul %401, %374, %cst_203 {dimension_numbers = #tpu.dot_dimension_numbers<[1], [0], [0], [1], [0, 0, 1, 1], [], []>} : vector<8x32xbf16>, vector<32x128xbf16>, vector<8x128xf32> -> vector<8x128xf32>
    %403 = vector.broadcast %375 : vector<1x128xf32> to vector<8x128xf32>
    %404 = arith.addf %402, %403 : vector<8x128xf32>
    %cst_204 = arith.constant 0.000000e+00 : f32
    %405 = vector.broadcast %cst_204 : f32 to vector<8x128xf32>
    %406 = arith.maximumf %404, %405 : vector<8x128xf32>
    %407 = arith.truncf %406 : vector<8x128xf32> to vector<8x128xbf16>
    %cst_205 = arith.constant dense<0.000000e+00> : vector<8x32xf32>
    %408 = tpu.matmul %407, %377, %cst_205 {dimension_numbers = #tpu.dot_dimension_numbers<[1], [0], [0], [1], [0, 0, 1, 1], [], []>} : vector<8x128xbf16>, vector<128x32xbf16>, vector<8x32xf32> -> vector<8x32xf32>
    %409 = vector.broadcast %378 : vector<1x32xf32> to vector<8x32xf32>
    %410 = arith.addf %408, %409 : vector<8x32xf32>
    %cst_206 = arith.constant 5.000000e-01 : f32
    %411 = vector.broadcast %cst_206 : f32 to vector<8x32xf32>
    %412 = arith.mulf %411, %410 : vector<8x32xf32>
    %413 = arith.addf %370, %412 : vector<8x32xf32>
    %c18_207 = arith.constant 18 : index
    %c0_208 = arith.constant 0 : index
    %414 = vector.load %arg2[%c18_207, %c0_208] : memref<20x32xf32, #tpu.memory_space<vmem>>, vector<1x32xf32>
    %c19_209 = arith.constant 19 : index
    %c0_210 = arith.constant 0 : index
    %415 = vector.load %arg2[%c19_209, %c0_210] : memref<20x32xf32, #tpu.memory_space<vmem>>, vector<1x32xf32>
    %cst_211 = arith.constant dense<0.000000e+00> : vector<8xf32>
    %416 = vector.multi_reduction <add>, %413, %cst_211 [1] : vector<8x32xf32> to vector<8xf32>
    %417 = vector.shape_cast %416 : vector<8xf32> to vector<8x1xf32>
    %cst_212 = arith.constant 3.200000e+01 : f32
    %418 = vector.broadcast %cst_212 : f32 to vector<8x1xf32>
    %419 = arith.divf %417, %418 : vector<8x1xf32>
    %420 = vector.broadcast %419 : vector<8x1xf32> to vector<8x32xf32>
    %421 = arith.subf %413, %420 : vector<8x32xf32>
    %422 = arith.mulf %421, %421 : vector<8x32xf32>
    %cst_213 = arith.constant dense<0.000000e+00> : vector<8xf32>
    %423 = vector.multi_reduction <add>, %422, %cst_213 [1] : vector<8x32xf32> to vector<8xf32>
    %424 = vector.shape_cast %423 : vector<8xf32> to vector<8x1xf32>
    %cst_214 = arith.constant 3.200000e+01 : f32
    %425 = vector.broadcast %cst_214 : f32 to vector<8x1xf32>
    %426 = arith.divf %424, %425 : vector<8x1xf32>
    %427 = vector.broadcast %419 : vector<8x1xf32> to vector<8x32xf32>
    %428 = arith.subf %413, %427 : vector<8x32xf32>
    %cst_215 = arith.constant 9.99999974E-6 : f32
    %429 = vector.broadcast %cst_215 : f32 to vector<8x1xf32>
    %430 = arith.addf %426, %429 : vector<8x1xf32>
    %431 = math.rsqrt %430 : vector<8x1xf32>
    %432 = vector.broadcast %431 : vector<8x1xf32> to vector<8x32xf32>
    %433 = arith.mulf %428, %432 : vector<8x32xf32>
    %434 = vector.broadcast %414 : vector<1x32xf32> to vector<8x32xf32>
    %435 = arith.mulf %433, %434 : vector<8x32xf32>
    %436 = vector.broadcast %415 : vector<1x32xf32> to vector<8x32xf32>
    %437 = arith.addf %435, %436 : vector<8x32xf32>
    %c0_216 = arith.constant 0 : index
    %c0_217 = arith.constant 0 : index
    %c0_218 = arith.constant 0 : index
    %438 = vector.load %arg10[%c0_216, %c0_217, %c0_218] : memref<1x8x32xf32, #tpu.memory_space<vmem>>, vector<1x8x32xf32>
    %439 = vector.shape_cast %438 : vector<1x8x32xf32> to vector<8x32xf32>
    %440 = vector.shape_cast %437 : vector<8x32xf32> to vector<1x8x32xf32>
    tpu.vector_store %arg10[%c0_216, %c0_217, %c0_218], %440 {strides = array<i32>} : memref<1x8x32xf32, #tpu.memory_space<vmem>>, vector<1x8x32xf32>,
    return
  }
  func.func @transform_0(%arg0: i32) -> (i32, i32, i32) {
    %c0_i32 = arith.constant 0 : i32
    %c0_i32_0 = arith.constant 0 : i32
    %c0_i32_1 = arith.constant 0 : i32
    return %arg0, %c0_i32, %c0_i32_0 : i32, i32, i32
  }
  func.func @transform_1(%arg0: i32) -> (i32, i32) {
    %c0_i32 = arith.constant 0 : i32
    %c0_i32_0 = arith.constant 0 : i32
    %c0_i32_1 = arith.constant 0 : i32
    return %c0_i32, %c0_i32_0 : i32, i32
  }
  func.func @transform_2(%arg0: i32) -> (i32, i32) {
    %c0_i32 = arith.constant 0 : i32
    %c0_i32_0 = arith.constant 0 : i32
    %c0_i32_1 = arith.constant 0 : i32
    return %c0_i32, %c0_i32_0 : i32, i32
  }
  func.func @transform_3(%arg0: i32) -> (i32, i32) {
    %c0_i32 = arith.constant 0 : i32
    %c0_i32_0 = arith.constant 0 : i32
    %c0_i32_1 = arith.constant 0 : i32
    return %c0_i32, %c0_i32_0 : i32, i32
  }
  func.func @transform_4(%arg0: i32) -> (i32, i32, i32) {
    %c0_i32 = arith.constant 0 : i32
    %c0_i32_0 = arith.constant 0 : i32
    %c0_i32_1 = arith.constant 0 : i32
    %c0_i32_2 = arith.constant 0 : i32
    return %c0_i32, %c0_i32_0, %c0_i32_1 : i32, i32, i32
  }
  func.func @transform_5(%arg0: i32) -> (i32, i32) {
    %c0_i32 = arith.constant 0 : i32
    %c0_i32_0 = arith.constant 0 : i32
    %c0_i32_1 = arith.constant 0 : i32
    return %c0_i32, %c0_i32_0 : i32, i32
  }
  func.func @transform_6(%arg0: i32) -> (i32, i32, i32) {
    %c0_i32 = arith.constant 0 : i32
    %c0_i32_0 = arith.constant 0 : i32
    %c0_i32_1 = arith.constant 0 : i32
    %c0_i32_2 = arith.constant 0 : i32
    return %c0_i32, %c0_i32_0, %c0_i32_1 : i32, i32, i32
  }
  func.func @transform_7(%arg0: i32) -> (i32, i32, i32) {
    %c0_i32 = arith.constant 0 : i32
    %c0_i32_0 = arith.constant 0 : i32
    %c0_i32_1 = arith.constant 0 : i32
    %c0_i32_2 = arith.constant 0 : i32
    return %c0_i32, %c0_i32_0, %c0_i32_1 : i32, i32, i32
  }
  func.func @transform_8(%arg0: i32) -> (i32, i32) {
    %c0_i32 = arith.constant 0 : i32
    %c0_i32_0 = arith.constant 0 : i32
    %c0_i32_1 = arith.constant 0 : i32
    return %c0_i32, %c0_i32_0 : i32, i32
  }
  func.func @transform_9(%arg0: i32) -> (i32, i32, i32) {
    %c0_i32 = arith.constant 0 : i32
    %c0_i32_0 = arith.constant 0 : i32
    %c0_i32_1 = arith.constant 0 : i32
    return %arg0, %c0_i32, %c0_i32_0 : i32, i32, i32
  }
}

module attributes {stable_mosaic.version = 11 : i64} {
  func.func @conformer_kernel(%arg0: i32, %arg1: memref<1x8x32xf32, #tpu.memory_space<vmem>>, %arg2: memref<20x32xf32, #tpu.memory_space<vmem>>, %arg3: memref<2x128xf32, #tpu.memory_space<vmem>>, %arg4: memref<32x96xbf16, #tpu.memory_space<vmem>>, %arg5: memref<2x32x32xbf16, #tpu.memory_space<vmem>>, %arg6: memref<32x64xbf16, #tpu.memory_space<vmem>>, %arg7: memref<2x32x128xbf16, #tpu.memory_space<vmem>>, %arg8: memref<2x128x32xbf16, #tpu.memory_space<vmem>>, %arg9: memref<31x32xf32, #tpu.memory_space<vmem>>, %arg10: memref<1x8x32xf32, #tpu.memory_space<vmem>>, %arg11: memref<39x32xf32, #tpu.memory_space<vmem>>) attributes {dimension_semantics = [#tpu.dimension_semantics<parallel>], iteration_bounds = array<i64: 2>, scalar_prefetch = 0 : i64, scratch_operands = 1 : i64, tpu.core_type = #tpu.core_type<tc>, window_params = [{transform_indices = @transform_0, window_bounds = array<i64: 1, 8, 32>}, {pipeline_mode = #tpu.pipeline_mode<synchronous>, transform_indices = @transform_1, window_bounds = array<i64: 20, 32>}, {pipeline_mode = #tpu.pipeline_mode<synchronous>, transform_indices = @transform_2, window_bounds = array<i64: 2, 128>}, {pipeline_mode = #tpu.pipeline_mode<synchronous>, transform_indices = @transform_3, window_bounds = array<i64: 32, 96>}, {pipeline_mode = #tpu.pipeline_mode<synchronous>, transform_indices = @transform_4, window_bounds = array<i64: 2, 32, 32>}, {pipeline_mode = #tpu.pipeline_mode<synchronous>, transform_indices = @transform_5, window_bounds = array<i64: 32, 64>}, {pipeline_mode = #tpu.pipeline_mode<synchronous>, transform_indices = @transform_6, window_bounds = array<i64: 2, 32, 128>}, {pipeline_mode = #tpu.pipeline_mode<synchronous>, transform_indices = @transform_7, window_bounds = array<i64: 2, 128, 32>}, {pipeline_mode = #tpu.pipeline_mode<synchronous>, transform_indices = @transform_8, window_bounds = array<i64: 31, 32>}, {transform_indices = @transform_9, window_bounds = array<i64: 1, 8, 32>}]} {
    %c0 = arith.constant 0 : index
    %c0_0 = arith.constant 0 : index
    %c0_1 = arith.constant 0 : index
    %0 = vector.load %arg1[%c0, %c0_0, %c0_1] : memref<1x8x32xf32, #tpu.memory_space<vmem>>, vector<1x8x32xf32>
    %1 = vector.shape_cast %0 : vector<1x8x32xf32> to vector<8x32xf32>
    %c0_2 = arith.constant 0 : index
    %c0_3 = arith.constant 0 : index
    %2 = vector.load %arg2[%c0_2, %c0_3] : memref<20x32xf32, #tpu.memory_space<vmem>>, vector<1x32xf32>
    %c1 = arith.constant 1 : index
    %c0_4 = arith.constant 0 : index
    %3 = vector.load %arg2[%c1, %c0_4] : memref<20x32xf32, #tpu.memory_space<vmem>>, vector<1x32xf32>
    %c0_5 = arith.constant 0 : index
    %c0_6 = arith.constant 0 : index
    %c0_7 = arith.constant 0 : index
    %4 = vector.load %arg7[%c0_5, %c0_6, %c0_7] : memref<2x32x128xbf16, #tpu.memory_space<vmem>>, vector<1x32x128xbf16>
    %5 = vector.shape_cast %4 : vector<1x32x128xbf16> to vector<32x128xbf16>
    %c0_8 = arith.constant 0 : index
    %c0_9 = arith.constant 0 : index
    %6 = vector.load %arg3[%c0_8, %c0_9] : memref<2x128xf32, #tpu.memory_space<vmem>>, vector<1x128xf32>
    %c0_10 = arith.constant 0 : index
    %c0_11 = arith.constant 0 : index
    %c0_12 = arith.constant 0 : index
    %7 = vector.load %arg8[%c0_10, %c0_11, %c0_12] : memref<2x128x32xbf16, #tpu.memory_space<vmem>>, vector<1x128x32xbf16>
    %8 = vector.shape_cast %7 : vector<1x128x32xbf16> to vector<128x32xbf16>
    %c2 = arith.constant 2 : index
    %c0_13 = arith.constant 0 : index
    %9 = vector.load %arg2[%c2, %c0_13] : memref<20x32xf32, #tpu.memory_space<vmem>>, vector<1x32xf32>
    %cst = arith.constant dense<0.000000e+00> : vector<8xf32>
    %10 = vector.multi_reduction <add>, %1, %cst [1] : vector<8x32xf32> to vector<8xf32>
    %11 = vector.shape_cast %10 : vector<8xf32> to vector<8x1xf32>
    %cst_14 = arith.constant 3.200000e+01 : f32
    %12 = vector.broadcast %cst_14 : f32 to vector<8x1xf32>
    %13 = arith.divf %11, %12 : vector<8x1xf32>
    %14 = vector.broadcast %13 : vector<8x1xf32> to vector<8x32xf32>
    %15 = arith.subf %1, %14 : vector<8x32xf32>
    %16 = arith.mulf %15, %15 : vector<8x32xf32>
    %cst_15 = arith.constant dense<0.000000e+00> : vector<8xf32>
    %17 = vector.multi_reduction <add>, %16, %cst_15 [1] : vector<8x32xf32> to vector<8xf32>
    %18 = vector.shape_cast %17 : vector<8xf32> to vector<8x1xf32>
    %cst_16 = arith.constant 3.200000e+01 : f32
    %19 = vector.broadcast %cst_16 : f32 to vector<8x1xf32>
    %20 = arith.divf %18, %19 : vector<8x1xf32>
    %21 = vector.broadcast %13 : vector<8x1xf32> to vector<8x32xf32>
    %22 = arith.subf %1, %21 : vector<8x32xf32>
    %cst_17 = arith.constant 9.99999974E-6 : f32
    %23 = vector.broadcast %cst_17 : f32 to vector<8x1xf32>
    %24 = arith.addf %20, %23 : vector<8x1xf32>
    %25 = math.rsqrt %24 : vector<8x1xf32>
    %26 = vector.broadcast %25 : vector<8x1xf32> to vector<8x32xf32>
    %27 = arith.mulf %22, %26 : vector<8x32xf32>
    %28 = vector.broadcast %2 : vector<1x32xf32> to vector<8x32xf32>
    %29 = arith.mulf %27, %28 : vector<8x32xf32>
    %30 = vector.broadcast %3 : vector<1x32xf32> to vector<8x32xf32>
    %31 = arith.addf %29, %30 : vector<8x32xf32>
    %32 = arith.truncf %31 : vector<8x32xf32> to vector<8x32xbf16>
    %cst_18 = arith.constant dense<0.000000e+00> : vector<8x128xf32>
    %33 = tpu.matmul %32, %5, %cst_18 {dimension_numbers = #tpu.dot_dimension_numbers<[1], [0], [0], [1], [0, 0, 1, 1], [], []>} : vector<8x32xbf16>, vector<32x128xbf16>, vector<8x128xf32> -> vector<8x128xf32>
    %34 = vector.broadcast %6 : vector<1x128xf32> to vector<8x128xf32>
    %35 = arith.addf %33, %34 : vector<8x128xf32>
    %cst_19 = arith.constant 0.000000e+00 : f32
    %36 = vector.broadcast %cst_19 : f32 to vector<8x128xf32>
    %37 = arith.maximumf %35, %36 : vector<8x128xf32>
    %38 = arith.truncf %37 : vector<8x128xf32> to vector<8x128xbf16>
    %cst_20 = arith.constant dense<0.000000e+00> : vector<8x32xf32>
    %39 = tpu.matmul %38, %8, %cst_20 {dimension_numbers = #tpu.dot_dimension_numbers<[1], [0], [0], [1], [0, 0, 1, 1], [], []>} : vector<8x128xbf16>, vector<128x32xbf16>, vector<8x32xf32> -> vector<8x32xf32>
    %40 = vector.broadcast %9 : vector<1x32xf32> to vector<8x32xf32>
    %41 = arith.addf %39, %40 : vector<8x32xf32>
    %cst_21 = arith.constant 5.000000e-01 : f32
    %42 = vector.broadcast %cst_21 : f32 to vector<8x32xf32>
    %43 = arith.mulf %42, %41 : vector<8x32xf32>
    %44 = arith.addf %1, %43 : vector<8x32xf32>
    %c3 = arith.constant 3 : index
    %c0_22 = arith.constant 0 : index
    %45 = vector.load %arg2[%c3, %c0_22] : memref<20x32xf32, #tpu.memory_space<vmem>>, vector<1x32xf32>
    %c4 = arith.constant 4 : index
    %c0_23 = arith.constant 0 : index
    %46 = vector.load %arg2[%c4, %c0_23] : memref<20x32xf32, #tpu.memory_space<vmem>>, vector<1x32xf32>
    %cst_24 = arith.constant dense<0.000000e+00> : vector<8xf32>
    %47 = vector.multi_reduction <add>, %44, %cst_24 [1] : vector<8x32xf32> to vector<8xf32>
    %48 = vector.shape_cast %47 : vector<8xf32> to vector<8x1xf32>
    %cst_25 = arith.constant 3.200000e+01 : f32
    %49 = vector.broadcast %cst_25 : f32 to vector<8x1xf32>
    %50 = arith.divf %48, %49 : vector<8x1xf32>
    %51 = vector.broadcast %50 : vector<8x1xf32> to vector<8x32xf32>
    %52 = arith.subf %44, %51 : vector<8x32xf32>
    %53 = arith.mulf %52, %52 : vector<8x32xf32>
    %cst_26 = arith.constant dense<0.000000e+00> : vector<8xf32>
    %54 = vector.multi_reduction <add>, %53, %cst_26 [1] : vector<8x32xf32> to vector<8xf32>
    %55 = vector.shape_cast %54 : vector<8xf32> to vector<8x1xf32>
    %cst_27 = arith.constant 3.200000e+01 : f32
    %56 = vector.broadcast %cst_27 : f32 to vector<8x1xf32>
    %57 = arith.divf %55, %56 : vector<8x1xf32>
    %58 = vector.broadcast %50 : vector<8x1xf32> to vector<8x32xf32>
    %59 = arith.subf %44, %58 : vector<8x32xf32>
    %cst_28 = arith.constant 9.99999974E-6 : f32
    %60 = vector.broadcast %cst_28 : f32 to vector<8x1xf32>
    %61 = arith.addf %57, %60 : vector<8x1xf32>
    %62 = math.rsqrt %61 : vector<8x1xf32>
    %63 = vector.broadcast %62 : vector<8x1xf32> to vector<8x32xf32>
    %64 = arith.mulf %59, %63 : vector<8x32xf32>
    %65 = vector.broadcast %45 : vector<1x32xf32> to vector<8x32xf32>
    %66 = arith.mulf %64, %65 : vector<8x32xf32>
    %67 = vector.broadcast %46 : vector<1x32xf32> to vector<8x32xf32>
    %68 = arith.addf %66, %67 : vector<8x32xf32>
    %c0_29 = arith.constant 0 : index
    %c0_30 = arith.constant 0 : index
    %69 = vector.load %arg4[%c0_29, %c0_30] : memref<32x96xbf16, #tpu.memory_space<vmem>>, vector<32x96xbf16>
    %c5 = arith.constant 5 : index
    %c0_31 = arith.constant 0 : index
    %70 = vector.load %arg2[%c5, %c0_31] : memref<20x32xf32, #tpu.memory_space<vmem>>, vector<1x32xf32>
    %c6 = arith.constant 6 : index
    %c0_32 = arith.constant 0 : index
    %71 = vector.load %arg2[%c6, %c0_32] : memref<20x32xf32, #tpu.memory_space<vmem>>, vector<1x32xf32>
    %c7 = arith.constant 7 : index
    %c0_33 = arith.constant 0 : index
    %72 = vector.load %arg2[%c7, %c0_33] : memref<20x32xf32, #tpu.memory_space<vmem>>, vector<1x32xf32>
    %c0_34 = arith.constant 0 : index
    %c0_35 = arith.constant 0 : index
    %c0_36 = arith.constant 0 : index
    %73 = vector.load %arg5[%c0_34, %c0_35, %c0_36] : memref<2x32x32xbf16, #tpu.memory_space<vmem>>, vector<1x32x32xbf16>
    %74 = vector.shape_cast %73 : vector<1x32x32xbf16> to vector<32x32xbf16>
    %c8 = arith.constant 8 : index
    %c0_37 = arith.constant 0 : index
    %75 = vector.load %arg2[%c8, %c0_37] : memref<20x32xf32, #tpu.memory_space<vmem>>, vector<1x32xf32>
    %76 = arith.truncf %68 : vector<8x32xf32> to vector<8x32xbf16>
    %cst_38 = arith.constant dense<0.000000e+00> : vector<8x96xf32>
    %77 = tpu.matmul %76, %69, %cst_38 {dimension_numbers = #tpu.dot_dimension_numbers<[1], [0], [0], [1], [0, 0, 1, 1], [], []>} : vector<8x32xbf16>, vector<32x96xbf16>, vector<8x96xf32> -> vector<8x96xf32>
    %78 = vector.extract_strided_slice %77 {offsets = [0, 0], sizes = [8, 32], strides = [1, 1]} : vector<8x96xf32> to vector<8x32xf32>
    %79 = vector.broadcast %70 : vector<1x32xf32> to vector<8x32xf32>
    %80 = arith.addf %78, %79 : vector<8x32xf32>
    %81 = vector.extract_strided_slice %77 {offsets = [0, 32], sizes = [8, 32], strides = [1, 1]} : vector<8x96xf32> to vector<8x32xf32>
    %82 = vector.broadcast %71 : vector<1x32xf32> to vector<8x32xf32>
    %83 = arith.addf %81, %82 : vector<8x32xf32>
    %84 = vector.extract_strided_slice %77 {offsets = [0, 64], sizes = [8, 32], strides = [1, 1]} : vector<8x96xf32> to vector<8x32xf32>
    %85 = vector.broadcast %72 : vector<1x32xf32> to vector<8x32xf32>
    %86 = arith.addf %84, %85 : vector<8x32xf32>
    %87 = vector.extract_strided_slice %80 {offsets = [0, 0], sizes = [8, 8], strides = [1, 1]} : vector<8x32xf32> to vector<8x8xf32>
    %88 = vector.shape_cast %87 : vector<8x8xf32> to vector<1x8x8xf32>
    %89 = vector.extract_strided_slice %80 {offsets = [0, 8], sizes = [8, 8], strides = [1, 1]} : vector<8x32xf32> to vector<8x8xf32>
    %90 = vector.shape_cast %89 : vector<8x8xf32> to vector<1x8x8xf32>
    %91 = vector.extract_strided_slice %80 {offsets = [0, 16], sizes = [8, 8], strides = [1, 1]} : vector<8x32xf32> to vector<8x8xf32>
    %92 = vector.shape_cast %91 : vector<8x8xf32> to vector<1x8x8xf32>
    %93 = vector.extract_strided_slice %80 {offsets = [0, 24], sizes = [8, 8], strides = [1, 1]} : vector<8x32xf32> to vector<8x8xf32>
    %94 = vector.shape_cast %93 : vector<8x8xf32> to vector<1x8x8xf32>
    %95 = tpu.concatenate %88, %90, %92, %94 in 0 : vector<1x8x8xf32>, vector<1x8x8xf32>, vector<1x8x8xf32>, vector<1x8x8xf32> -> vector<4x8x8xf32>
    %96 = arith.truncf %95 : vector<4x8x8xf32> to vector<4x8x8xbf16>
    %97 = vector.extract_strided_slice %83 {offsets = [0, 0], sizes = [8, 8], strides = [1, 1]} : vector<8x32xf32> to vector<8x8xf32>
    %98 = vector.shape_cast %97 : vector<8x8xf32> to vector<1x8x8xf32>
    %99 = vector.extract_strided_slice %83 {offsets = [0, 8], sizes = [8, 8], strides = [1, 1]} : vector<8x32xf32> to vector<8x8xf32>
    %100 = vector.shape_cast %99 : vector<8x8xf32> to vector<1x8x8xf32>
    %101 = vector.extract_strided_slice %83 {offsets = [0, 16], sizes = [8, 8], strides = [1, 1]} : vector<8x32xf32> to vector<8x8xf32>
    %102 = vector.shape_cast %101 : vector<8x8xf32> to vector<1x8x8xf32>
    %103 = vector.extract_strided_slice %83 {offsets = [0, 24], sizes = [8, 8], strides = [1, 1]} : vector<8x32xf32> to vector<8x8xf32>
    %104 = vector.shape_cast %103 : vector<8x8xf32> to vector<1x8x8xf32>
    %105 = tpu.concatenate %98, %100, %102, %104 in 0 : vector<1x8x8xf32>, vector<1x8x8xf32>, vector<1x8x8xf32>, vector<1x8x8xf32> -> vector<4x8x8xf32>
    %106 = arith.truncf %105 : vector<4x8x8xf32> to vector<4x8x8xbf16>
    %107 = vector.extract_strided_slice %86 {offsets = [0, 0], sizes = [8, 8], strides = [1, 1]} : vector<8x32xf32> to vector<8x8xf32>
    %108 = vector.shape_cast %107 : vector<8x8xf32> to vector<1x8x8xf32>
    %109 = vector.extract_strided_slice %86 {offsets = [0, 8], sizes = [8, 8], strides = [1, 1]} : vector<8x32xf32> to vector<8x8xf32>
    %110 = vector.shape_cast %109 : vector<8x8xf32> to vector<1x8x8xf32>
    %111 = vector.extract_strided_slice %86 {offsets = [0, 16], sizes = [8, 8], strides = [1, 1]} : vector<8x32xf32> to vector<8x8xf32>
    %112 = vector.shape_cast %111 : vector<8x8xf32> to vector<1x8x8xf32>
    %113 = vector.extract_strided_slice %86 {offsets = [0, 24], sizes = [8, 8], strides = [1, 1]} : vector<8x32xf32> to vector<8x8xf32>
    %114 = vector.shape_cast %113 : vector<8x8xf32> to vector<1x8x8xf32>
    %115 = tpu.concatenate %108, %110, %112, %114 in 0 : vector<1x8x8xf32>, vector<1x8x8xf32>, vector<1x8x8xf32>, vector<1x8x8xf32> -> vector<4x8x8xf32>
    %116 = arith.truncf %115 : vector<4x8x8xf32> to vector<4x8x8xbf16>
    %cst_39 = arith.constant -1.000000e+30 : f32
    %117 = vector.broadcast %cst_39 : f32 to vector<4x8x1xf32>
    %cst_40 = arith.constant 0.000000e+00 : f32
    %118 = vector.broadcast %cst_40 : f32 to vector<4x8x1xf32>
    %cst_41 = arith.constant 0.000000e+00 : f32
    %119 = vector.broadcast %cst_41 : f32 to vector<4x8x8xf32>
    "tpu.trace_start"() <{level = 10 : i32, message = "hqd,hkd->hqk"}> : () -> ()
    %cst_42 = arith.constant dense<0.000000e+00> : vector<4x8x8xf32>
    %120 = tpu.matmul %96, %106, %cst_42 {dimension_numbers = #tpu.dot_dimension_numbers<[2], [2], [1], [1], [0, 0, 0, 1, 1, 1], [0], [0]>} : vector<4x8x8xbf16>, vector<4x8x8xbf16>, vector<4x8x8xf32> -> vector<4x8x8xf32>
    "tpu.trace_stop"() : () -> ()
    %cst_43 = arith.constant dense<0xFF800000> : vector<4x8xf32>
    %121 = vector.multi_reduction <maximumf>, %120, %cst_43 [2] : vector<4x8x8xf32> to vector<4x8xf32>
    %122 = vector.shape_cast %121 : vector<4x8xf32> to vector<4x8x1xf32>
    %123 = arith.maximumf %117, %122 : vector<4x8x1xf32>
    %124 = arith.subf %117, %123 : vector<4x8x1xf32>
    %125 = math.exp %124 : vector<4x8x1xf32>
    %126 = vector.broadcast %123 : vector<4x8x1xf32> to vector<4x8x8xf32>
    %127 = arith.subf %120, %126 : vector<4x8x8xf32>
    %128 = math.exp %127 : vector<4x8x8xf32>
    %129 = arith.mulf %125, %118 : vector<4x8x1xf32>
    %cst_44 = arith.constant dense<0.000000e+00> : vector<4x8xf32>
    %130 = vector.multi_reduction <add>, %128, %cst_44 [2] : vector<4x8x8xf32> to vector<4x8xf32>
    %131 = vector.shape_cast %130 : vector<4x8xf32> to vector<4x8x1xf32>
    %132 = arith.addf %129, %131 : vector<4x8x1xf32>
    %133 = vector.broadcast %125 : vector<4x8x1xf32> to vector<4x8x8xf32>
    %134 = arith.mulf %133, %119 : vector<4x8x8xf32>
    %135 = arith.truncf %128 : vector<4x8x8xf32> to vector<4x8x8xbf16>
    "tpu.trace_start"() <{level = 10 : i32, message = "hqk,hkd->hqd"}> : () -> ()
    %cst_45 = arith.constant dense<0.000000e+00> : vector<4x8x8xf32>
    %136 = tpu.matmul %135, %116, %cst_45 {dimension_numbers = #tpu.dot_dimension_numbers<[2], [1], [1], [2], [0, 0, 0, 1, 1, 2], [0], [0]>} : vector<4x8x8xbf16>, vector<4x8x8xbf16>, vector<4x8x8xf32> -> vector<4x8x8xf32>
    "tpu.trace_stop"() : () -> ()
    %137 = arith.addf %134, %136 : vector<4x8x8xf32>
    %138 = tpu.reciprocal %132 {approx = true} : vector<4x8x1xf32> -> vector<4x8x1xf32>
    %139 = vector.broadcast %138 : vector<4x8x1xf32> to vector<4x8x8xf32>
    %140 = arith.mulf %137, %139 : vector<4x8x8xf32>
    %141 = vector.extract_strided_slice %140 {offsets = [0, 0, 0], sizes = [1, 8, 8], strides = [1, 1, 1]} : vector<4x8x8xf32> to vector<1x8x8xf32>
    %142 = vector.shape_cast %141 : vector<1x8x8xf32> to vector<8x8xf32>
    %143 = vector.extract_strided_slice %140 {offsets = [1, 0, 0], sizes = [1, 8, 8], strides = [1, 1, 1]} : vector<4x8x8xf32> to vector<1x8x8xf32>
    %144 = vector.shape_cast %143 : vector<1x8x8xf32> to vector<8x8xf32>
    %145 = vector.extract_strided_slice %140 {offsets = [2, 0, 0], sizes = [1, 8, 8], strides = [1, 1, 1]} : vector<4x8x8xf32> to vector<1x8x8xf32>
    %146 = vector.shape_cast %145 : vector<1x8x8xf32> to vector<8x8xf32>
    %147 = vector.extract_strided_slice %140 {offsets = [3, 0, 0], sizes = [1, 8, 8], strides = [1, 1, 1]} : vector<4x8x8xf32> to vector<1x8x8xf32>
    %148 = vector.shape_cast %147 : vector<1x8x8xf32> to vector<8x8xf32>
    %149 = tpu.concatenate %142, %144, %146, %148 in 1 : vector<8x8xf32>, vector<8x8xf32>, vector<8x8xf32>, vector<8x8xf32> -> vector<8x32xf32>
    %150 = arith.truncf %149 : vector<8x32xf32> to vector<8x32xbf16>
    %cst_46 = arith.constant dense<0.000000e+00> : vector<8x32xf32>
    %151 = tpu.matmul %150, %74, %cst_46 {dimension_numbers = #tpu.dot_dimension_numbers<[1], [0], [0], [1], [0, 0, 1, 1], [], []>} : vector<8x32xbf16>, vector<32x32xbf16>, vector<8x32xf32> -> vector<8x32xf32>
    %152 = vector.broadcast %75 : vector<1x32xf32> to vector<8x32xf32>
    %153 = arith.addf %151, %152 : vector<8x32xf32>
    %154 = arith.addf %44, %153 : vector<8x32xf32>
    %c9 = arith.constant 9 : index
    %c0_47 = arith.constant 0 : index
    %155 = vector.load %arg2[%c9, %c0_47] : memref<20x32xf32, #tpu.memory_space<vmem>>, vector<1x32xf32>
    %c10 = arith.constant 10 : index
    %c0_48 = arith.constant 0 : index
    %156 = vector.load %arg2[%c10, %c0_48] : memref<20x32xf32, #tpu.memory_space<vmem>>, vector<1x32xf32>
    %cst_49 = arith.constant dense<0.000000e+00> : vector<8xf32>
    %157 = vector.multi_reduction <add>, %154, %cst_49 [1] : vector<8x32xf32> to vector<8xf32>
    %158 = vector.shape_cast %157 : vector<8xf32> to vector<8x1xf32>
    %cst_50 = arith.constant 3.200000e+01 : f32
    %159 = vector.broadcast %cst_50 : f32 to vector<8x1xf32>
    %160 = arith.divf %158, %159 : vector<8x1xf32>
    %161 = vector.broadcast %160 : vector<8x1xf32> to vector<8x32xf32>
    %162 = arith.subf %154, %161 : vector<8x32xf32>
    %163 = arith.mulf %162, %162 : vector<8x32xf32>
    %cst_51 = arith.constant dense<0.000000e+00> : vector<8xf32>
    %164 = vector.multi_reduction <add>, %163, %cst_51 [1] : vector<8x32xf32> to vector<8xf32>
    %165 = vector.shape_cast %164 : vector<8xf32> to vector<8x1xf32>
    %cst_52 = arith.constant 3.200000e+01 : f32
    %166 = vector.broadcast %cst_52 : f32 to vector<8x1xf32>
    %167 = arith.divf %165, %166 : vector<8x1xf32>
    %168 = vector.broadcast %160 : vector<8x1xf32> to vector<8x32xf32>
    %169 = arith.subf %154, %168 : vector<8x32xf32>
    %cst_53 = arith.constant 9.99999974E-6 : f32
    %170 = vector.broadcast %cst_53 : f32 to vector<8x1xf32>
    %171 = arith.addf %167, %170 : vector<8x1xf32>
    %172 = math.rsqrt %171 : vector<8x1xf32>
    %173 = vector.broadcast %172 : vector<8x1xf32> to vector<8x32xf32>
    %174 = arith.mulf %169, %173 : vector<8x32xf32>
    %175 = vector.broadcast %155 : vector<1x32xf32> to vector<8x32xf32>
    %176 = arith.mulf %174, %175 : vector<8x32xf32>
    %177 = vector.broadcast %156 : vector<1x32xf32> to vector<8x32xf32>
    %178 = arith.addf %176, %177 : vector<8x32xf32>
    %c0_54 = arith.constant 0 : index
    %c0_55 = arith.constant 0 : index
    %179 = vector.load %arg6[%c0_54, %c0_55] : memref<32x64xbf16, #tpu.memory_space<vmem>>, vector<32x64xbf16>
    %c11 = arith.constant 11 : index
    %c0_56 = arith.constant 0 : index
    %180 = vector.load %arg2[%c11, %c0_56] : memref<20x32xf32, #tpu.memory_space<vmem>>, vector<1x32xf32>
    %c12 = arith.constant 12 : index
    %c0_57 = arith.constant 0 : index
    %181 = vector.load %arg2[%c12, %c0_57] : memref<20x32xf32, #tpu.memory_space<vmem>>, vector<1x32xf32>
    %c13 = arith.constant 13 : index
    %c0_58 = arith.constant 0 : index
    %182 = vector.load %arg2[%c13, %c0_58] : memref<20x32xf32, #tpu.memory_space<vmem>>, vector<1x32xf32>
    %c1_59 = arith.constant 1 : index
    %c0_60 = arith.constant 0 : index
    %c0_61 = arith.constant 0 : index
    %183 = vector.load %arg5[%c1_59, %c0_60, %c0_61] : memref<2x32x32xbf16, #tpu.memory_space<vmem>>, vector<1x32x32xbf16>
    %184 = vector.shape_cast %183 : vector<1x32x32xbf16> to vector<32x32xbf16>
    %c14 = arith.constant 14 : index
    %c0_62 = arith.constant 0 : index
    %185 = vector.load %arg2[%c14, %c0_62] : memref<20x32xf32, #tpu.memory_space<vmem>>, vector<1x32xf32>
    %186 = arith.truncf %178 : vector<8x32xf32> to vector<8x32xbf16>
    %cst_63 = arith.constant dense<0.000000e+00> : vector<8x64xf32>
    %187 = tpu.matmul %186, %179, %cst_63 {dimension_numbers = #tpu.dot_dimension_numbers<[1], [0], [0], [1], [0, 0, 1, 1], [], []>} : vector<8x32xbf16>, vector<32x64xbf16>, vector<8x64xf32> -> vector<8x64xf32>
    %188 = vector.extract_strided_slice %187 {offsets = [0, 0], sizes = [8, 32], strides = [1, 1]} : vector<8x64xf32> to vector<8x32xf32>
    %189 = vector.broadcast %180 : vector<1x32xf32> to vector<8x32xf32>
    %190 = arith.addf %188, %189 : vector<8x32xf32>
    %191 = vector.extract_strided_slice %187 {offsets = [0, 32], sizes = [8, 32], strides = [1, 1]} : vector<8x64xf32> to vector<8x32xf32>
    %192 = vector.broadcast %181 : vector<1x32xf32> to vector<8x32xf32>
    %193 = arith.addf %191, %192 : vector<8x32xf32>
    %cst_64 = arith.constant 5.000000e-01 : f32
    %194 = vector.broadcast %cst_64 : f32 to vector<8x32xf32>
    %195 = arith.mulf %194, %193 : vector<8x32xf32>
    %196 = math.tanh %195 : vector<8x32xf32>
    %cst_65 = arith.constant 5.000000e-01 : f32
    %197 = vector.broadcast %cst_65 : f32 to vector<8x32xf32>
    %198 = arith.mulf %197, %196 : vector<8x32xf32>
    %cst_66 = arith.constant 5.000000e-01 : f32
    %199 = vector.broadcast %cst_66 : f32 to vector<8x32xf32>
    %200 = arith.addf %198, %199 : vector<8x32xf32>
    %201 = arith.mulf %190, %200 : vector<8x32xf32>
    %cst_67 = arith.constant 0.000000e+00 : f32
    %202 = vector.broadcast %cst_67 : f32 to vector<16x32xf32>
    %c0_68 = arith.constant 0 : index
    %c0_69 = arith.constant 0 : index
    %203 = vector.load %arg11[%c0_68, %c0_69] : memref<39x32xf32, #tpu.memory_space<vmem>>, vector<16x32xf32>
    tpu.vector_store %arg11[%c0_68, %c0_69], %202 {strides = array<i32>} : memref<39x32xf32, #tpu.memory_space<vmem>>, vector<16x32xf32>,
    %cst_70 = arith.constant 0.000000e+00 : f32
    %204 = vector.broadcast %cst_70 : f32 to vector<15x32xf32>
    %c24 = arith.constant 24 : index
    %c0_71 = arith.constant 0 : index
    %205 = vector.load %arg11[%c24, %c0_71] : memref<39x32xf32, #tpu.memory_space<vmem>>, vector<15x32xf32>
    tpu.vector_store %arg11[%c24, %c0_71], %204 {strides = array<i32>} : memref<39x32xf32, #tpu.memory_space<vmem>>, vector<15x32xf32>,
    %c16 = arith.constant 16 : index
    %c0_72 = arith.constant 0 : index
    %206 = vector.load %arg11[%c16, %c0_72] : memref<39x32xf32, #tpu.memory_space<vmem>>, vector<8x32xf32>
    tpu.vector_store %arg11[%c16, %c0_72], %201 {strides = array<i32>} : memref<39x32xf32, #tpu.memory_space<vmem>>, vector<8x32xf32>,
    %207 = vector.shape_cast %182 : vector<1x32xf32> to vector<1x32xf32>
    %208 = vector.broadcast %207 : vector<1x32xf32> to vector<8x32xf32>
    %c1_73 = arith.constant 1 : index
    %c0_74 = arith.constant 0 : index
    %209 = vector.load %arg11[%c1_73, %c0_74] : memref<39x32xf32, #tpu.memory_space<vmem>>, vector<8x32xf32>
    %c0_75 = arith.constant 0 : index
    %c0_76 = arith.constant 0 : index
    %210 = vector.load %arg9[%c0_75, %c0_76] : memref<31x32xf32, #tpu.memory_space<vmem>>, vector<1x32xf32>
    %211 = vector.broadcast %210 : vector<1x32xf32> to vector<8x32xf32>
    %212 = arith.mulf %209, %211 : vector<8x32xf32>
    %213 = arith.addf %208, %212 : vector<8x32xf32>
    %c2_77 = arith.constant 2 : index
    %c0_78 = arith.constant 0 : index
    %214 = vector.load %arg11[%c2_77, %c0_78] : memref<39x32xf32, #tpu.memory_space<vmem>>, vector<8x32xf32>
    %c1_79 = arith.constant 1 : index
    %c0_80 = arith.constant 0 : index
    %215 = vector.load %arg9[%c1_79, %c0_80] : memref<31x32xf32, #tpu.memory_space<vmem>>, vector<1x32xf32>
    %216 = vector.broadcast %215 : vector<1x32xf32> to vector<8x32xf32>
    %217 = arith.mulf %214, %216 : vector<8x32xf32>
    %218 = arith.addf %213, %217 : vector<8x32xf32>
    %c3_81 = arith.constant 3 : index
    %c0_82 = arith.constant 0 : index
    %219 = vector.load %arg11[%c3_81, %c0_82] : memref<39x32xf32, #tpu.memory_space<vmem>>, vector<8x32xf32>
    %c2_83 = arith.constant 2 : index
    %c0_84 = arith.constant 0 : index
    %220 = vector.load %arg9[%c2_83, %c0_84] : memref<31x32xf32, #tpu.memory_space<vmem>>, vector<1x32xf32>
    %221 = vector.broadcast %220 : vector<1x32xf32> to vector<8x32xf32>
    %222 = arith.mulf %219, %221 : vector<8x32xf32>
    %223 = arith.addf %218, %222 : vector<8x32xf32>
    %c4_85 = arith.constant 4 : index
    %c0_86 = arith.constant 0 : index
    %224 = vector.load %arg11[%c4_85, %c0_86] : memref<39x32xf32, #tpu.memory_space<vmem>>, vector<8x32xf32>
    %c3_87 = arith.constant 3 : index
    %c0_88 = arith.constant 0 : index
    %225 = vector.load %arg9[%c3_87, %c0_88] : memref<31x32xf32, #tpu.memory_space<vmem>>, vector<1x32xf32>
    %226 = vector.broadcast %225 : vector<1x32xf32> to vector<8x32xf32>
    %227 = arith.mulf %224, %226 : vector<8x32xf32>
    %228 = arith.addf %223, %227 : vector<8x32xf32>
    %c5_89 = arith.constant 5 : index
    %c0_90 = arith.constant 0 : index
    %229 = vector.load %arg11[%c5_89, %c0_90] : memref<39x32xf32, #tpu.memory_space<vmem>>, vector<8x32xf32>
    %c4_91 = arith.constant 4 : index
    %c0_92 = arith.constant 0 : index
    %230 = vector.load %arg9[%c4_91, %c0_92] : memref<31x32xf32, #tpu.memory_space<vmem>>, vector<1x32xf32>
    %231 = vector.broadcast %230 : vector<1x32xf32> to vector<8x32xf32>
    %232 = arith.mulf %229, %231 : vector<8x32xf32>
    %233 = arith.addf %228, %232 : vector<8x32xf32>
    %c6_93 = arith.constant 6 : index
    %c0_94 = arith.constant 0 : index
    %234 = vector.load %arg11[%c6_93, %c0_94] : memref<39x32xf32, #tpu.memory_space<vmem>>, vector<8x32xf32>
    %c5_95 = arith.constant 5 : index
    %c0_96 = arith.constant 0 : index
    %235 = vector.load %arg9[%c5_95, %c0_96] : memref<31x32xf32, #tpu.memory_space<vmem>>, vector<1x32xf32>
    %236 = vector.broadcast %235 : vector<1x32xf32> to vector<8x32xf32>
    %237 = arith.mulf %234, %236 : vector<8x32xf32>
    %238 = arith.addf %233, %237 : vector<8x32xf32>
    %c7_97 = arith.constant 7 : index
    %c0_98 = arith.constant 0 : index
    %239 = vector.load %arg11[%c7_97, %c0_98] : memref<39x32xf32, #tpu.memory_space<vmem>>, vector<8x32xf32>
    %c6_99 = arith.constant 6 : index
    %c0_100 = arith.constant 0 : index
    %240 = vector.load %arg9[%c6_99, %c0_100] : memref<31x32xf32, #tpu.memory_space<vmem>>, vector<1x32xf32>
    %241 = vector.broadcast %240 : vector<1x32xf32> to vector<8x32xf32>
    %242 = arith.mulf %239, %241 : vector<8x32xf32>
    %243 = arith.addf %238, %242 : vector<8x32xf32>
    %c8_101 = arith.constant 8 : index
    %c0_102 = arith.constant 0 : index
    %244 = vector.load %arg11[%c8_101, %c0_102] : memref<39x32xf32, #tpu.memory_space<vmem>>, vector<8x32xf32>
    %c7_103 = arith.constant 7 : index
    %c0_104 = arith.constant 0 : index
    %245 = vector.load %arg9[%c7_103, %c0_104] : memref<31x32xf32, #tpu.memory_space<vmem>>, vector<1x32xf32>
    %246 = vector.broadcast %245 : vector<1x32xf32> to vector<8x32xf32>
    %247 = arith.mulf %244, %246 : vector<8x32xf32>
    %248 = arith.addf %243, %247 : vector<8x32xf32>
    %c9_105 = arith.constant 9 : index
    %c0_106 = arith.constant 0 : index
    %249 = vector.load %arg11[%c9_105, %c0_106] : memref<39x32xf32, #tpu.memory_space<vmem>>, vector<8x32xf32>
    %c8_107 = arith.constant 8 : index
    %c0_108 = arith.constant 0 : index
    %250 = vector.load %arg9[%c8_107, %c0_108] : memref<31x32xf32, #tpu.memory_space<vmem>>, vector<1x32xf32>
    %251 = vector.broadcast %250 : vector<1x32xf32> to vector<8x32xf32>
    %252 = arith.mulf %249, %251 : vector<8x32xf32>
    %253 = arith.addf %248, %252 : vector<8x32xf32>
    %c10_109 = arith.constant 10 : index
    %c0_110 = arith.constant 0 : index
    %254 = vector.load %arg11[%c10_109, %c0_110] : memref<39x32xf32, #tpu.memory_space<vmem>>, vector<8x32xf32>
    %c9_111 = arith.constant 9 : index
    %c0_112 = arith.constant 0 : index
    %255 = vector.load %arg9[%c9_111, %c0_112] : memref<31x32xf32, #tpu.memory_space<vmem>>, vector<1x32xf32>
    %256 = vector.broadcast %255 : vector<1x32xf32> to vector<8x32xf32>
    %257 = arith.mulf %254, %256 : vector<8x32xf32>
    %258 = arith.addf %253, %257 : vector<8x32xf32>
    %c11_113 = arith.constant 11 : index
    %c0_114 = arith.constant 0 : index
    %259 = vector.load %arg11[%c11_113, %c0_114] : memref<39x32xf32, #tpu.memory_space<vmem>>, vector<8x32xf32>
    %c10_115 = arith.constant 10 : index
    %c0_116 = arith.constant 0 : index
    %260 = vector.load %arg9[%c10_115, %c0_116] : memref<31x32xf32, #tpu.memory_space<vmem>>, vector<1x32xf32>
    %261 = vector.broadcast %260 : vector<1x32xf32> to vector<8x32xf32>
    %262 = arith.mulf %259, %261 : vector<8x32xf32>
    %263 = arith.addf %258, %262 : vector<8x32xf32>
    %c12_117 = arith.constant 12 : index
    %c0_118 = arith.constant 0 : index
    %264 = vector.load %arg11[%c12_117, %c0_118] : memref<39x32xf32, #tpu.memory_space<vmem>>, vector<8x32xf32>
    %c11_119 = arith.constant 11 : index
    %c0_120 = arith.constant 0 : index
    %265 = vector.load %arg9[%c11_119, %c0_120] : memref<31x32xf32, #tpu.memory_space<vmem>>, vector<1x32xf32>
    %266 = vector.broadcast %265 : vector<1x32xf32> to vector<8x32xf32>
    %267 = arith.mulf %264, %266 : vector<8x32xf32>
    %268 = arith.addf %263, %267 : vector<8x32xf32>
    %c13_121 = arith.constant 13 : index
    %c0_122 = arith.constant 0 : index
    %269 = vector.load %arg11[%c13_121, %c0_122] : memref<39x32xf32, #tpu.memory_space<vmem>>, vector<8x32xf32>
    %c12_123 = arith.constant 12 : index
    %c0_124 = arith.constant 0 : index
    %270 = vector.load %arg9[%c12_123, %c0_124] : memref<31x32xf32, #tpu.memory_space<vmem>>, vector<1x32xf32>
    %271 = vector.broadcast %270 : vector<1x32xf32> to vector<8x32xf32>
    %272 = arith.mulf %269, %271 : vector<8x32xf32>
    %273 = arith.addf %268, %272 : vector<8x32xf32>
    %c14_125 = arith.constant 14 : index
    %c0_126 = arith.constant 0 : index
    %274 = vector.load %arg11[%c14_125, %c0_126] : memref<39x32xf32, #tpu.memory_space<vmem>>, vector<8x32xf32>
    %c13_127 = arith.constant 13 : index
    %c0_128 = arith.constant 0 : index
    %275 = vector.load %arg9[%c13_127, %c0_128] : memref<31x32xf32, #tpu.memory_space<vmem>>, vector<1x32xf32>
    %276 = vector.broadcast %275 : vector<1x32xf32> to vector<8x32xf32>
    %277 = arith.mulf %274, %276 : vector<8x32xf32>
    %278 = arith.addf %273, %277 : vector<8x32xf32>
    %c15 = arith.constant 15 : index
    %c0_129 = arith.constant 0 : index
    %279 = vector.load %arg11[%c15, %c0_129] : memref<39x32xf32, #tpu.memory_space<vmem>>, vector<8x32xf32>
    %c14_130 = arith.constant 14 : index
    %c0_131 = arith.constant 0 : index
    %280 = vector.load %arg9[%c14_130, %c0_131] : memref<31x32xf32, #tpu.memory_space<vmem>>, vector<1x32xf32>
    %281 = vector.broadcast %280 : vector<1x32xf32> to vector<8x32xf32>
    %282 = arith.mulf %279, %281 : vector<8x32xf32>
    %283 = arith.addf %278, %282 : vector<8x32xf32>
    %c16_132 = arith.constant 16 : index
    %c0_133 = arith.constant 0 : index
    %284 = vector.load %arg11[%c16_132, %c0_133] : memref<39x32xf32, #tpu.memory_space<vmem>>, vector<8x32xf32>
    %c15_134 = arith.constant 15 : index
    %c0_135 = arith.constant 0 : index
    %285 = vector.load %arg9[%c15_134, %c0_135] : memref<31x32xf32, #tpu.memory_space<vmem>>, vector<1x32xf32>
    %286 = vector.broadcast %285 : vector<1x32xf32> to vector<8x32xf32>
    %287 = arith.mulf %284, %286 : vector<8x32xf32>
    %288 = arith.addf %283, %287 : vector<8x32xf32>
    %c17 = arith.constant 17 : index
    %c0_136 = arith.constant 0 : index
    %289 = vector.load %arg11[%c17, %c0_136] : memref<39x32xf32, #tpu.memory_space<vmem>>, vector<8x32xf32>
    %c16_137 = arith.constant 16 : index
    %c0_138 = arith.constant 0 : index
    %290 = vector.load %arg9[%c16_137, %c0_138] : memref<31x32xf32, #tpu.memory_space<vmem>>, vector<1x32xf32>
    %291 = vector.broadcast %290 : vector<1x32xf32> to vector<8x32xf32>
    %292 = arith.mulf %289, %291 : vector<8x32xf32>
    %293 = arith.addf %288, %292 : vector<8x32xf32>
    %c18 = arith.constant 18 : index
    %c0_139 = arith.constant 0 : index
    %294 = vector.load %arg11[%c18, %c0_139] : memref<39x32xf32, #tpu.memory_space<vmem>>, vector<8x32xf32>
    %c17_140 = arith.constant 17 : index
    %c0_141 = arith.constant 0 : index
    %295 = vector.load %arg9[%c17_140, %c0_141] : memref<31x32xf32, #tpu.memory_space<vmem>>, vector<1x32xf32>
    %296 = vector.broadcast %295 : vector<1x32xf32> to vector<8x32xf32>
    %297 = arith.mulf %294, %296 : vector<8x32xf32>
    %298 = arith.addf %293, %297 : vector<8x32xf32>
    %c19 = arith.constant 19 : index
    %c0_142 = arith.constant 0 : index
    %299 = vector.load %arg11[%c19, %c0_142] : memref<39x32xf32, #tpu.memory_space<vmem>>, vector<8x32xf32>
    %c18_143 = arith.constant 18 : index
    %c0_144 = arith.constant 0 : index
    %300 = vector.load %arg9[%c18_143, %c0_144] : memref<31x32xf32, #tpu.memory_space<vmem>>, vector<1x32xf32>
    %301 = vector.broadcast %300 : vector<1x32xf32> to vector<8x32xf32>
    %302 = arith.mulf %299, %301 : vector<8x32xf32>
    %303 = arith.addf %298, %302 : vector<8x32xf32>
    %c20 = arith.constant 20 : index
    %c0_145 = arith.constant 0 : index
    %304 = vector.load %arg11[%c20, %c0_145] : memref<39x32xf32, #tpu.memory_space<vmem>>, vector<8x32xf32>
    %c19_146 = arith.constant 19 : index
    %c0_147 = arith.constant 0 : index
    %305 = vector.load %arg9[%c19_146, %c0_147] : memref<31x32xf32, #tpu.memory_space<vmem>>, vector<1x32xf32>
    %306 = vector.broadcast %305 : vector<1x32xf32> to vector<8x32xf32>
    %307 = arith.mulf %304, %306 : vector<8x32xf32>
    %308 = arith.addf %303, %307 : vector<8x32xf32>
    %c21 = arith.constant 21 : index
    %c0_148 = arith.constant 0 : index
    %309 = vector.load %arg11[%c21, %c0_148] : memref<39x32xf32, #tpu.memory_space<vmem>>, vector<8x32xf32>
    %c20_149 = arith.constant 20 : index
    %c0_150 = arith.constant 0 : index
    %310 = vector.load %arg9[%c20_149, %c0_150] : memref<31x32xf32, #tpu.memory_space<vmem>>, vector<1x32xf32>
    %311 = vector.broadcast %310 : vector<1x32xf32> to vector<8x32xf32>
    %312 = arith.mulf %309, %311 : vector<8x32xf32>
    %313 = arith.addf %308, %312 : vector<8x32xf32>
    %c22 = arith.constant 22 : index
    %c0_151 = arith.constant 0 : index
    %314 = vector.load %arg11[%c22, %c0_151] : memref<39x32xf32, #tpu.memory_space<vmem>>, vector<8x32xf32>
    %c21_152 = arith.constant 21 : index
    %c0_153 = arith.constant 0 : index
    %315 = vector.load %arg9[%c21_152, %c0_153] : memref<31x32xf32, #tpu.memory_space<vmem>>, vector<1x32xf32>
    %316 = vector.broadcast %315 : vector<1x32xf32> to vector<8x32xf32>
    %317 = arith.mulf %314, %316 : vector<8x32xf32>
    %318 = arith.addf %313, %317 : vector<8x32xf32>
    %c23 = arith.constant 23 : index
    %c0_154 = arith.constant 0 : index
    %319 = vector.load %arg11[%c23, %c0_154] : memref<39x32xf32, #tpu.memory_space<vmem>>, vector<8x32xf32>
    %c22_155 = arith.constant 22 : index
    %c0_156 = arith.constant 0 : index
    %320 = vector.load %arg9[%c22_155, %c0_156] : memref<31x32xf32, #tpu.memory_space<vmem>>, vector<1x32xf32>
    %321 = vector.broadcast %320 : vector<1x32xf32> to vector<8x32xf32>
    %322 = arith.mulf %319, %321 : vector<8x32xf32>
    %323 = arith.addf %318, %322 : vector<8x32xf32>
    %c24_157 = arith.constant 24 : index
    %c0_158 = arith.constant 0 : index
    %324 = vector.load %arg11[%c24_157, %c0_158] : memref<39x32xf32, #tpu.memory_space<vmem>>, vector<8x32xf32>
    %c23_159 = arith.constant 23 : index
    %c0_160 = arith.constant 0 : index
    %325 = vector.load %arg9[%c23_159, %c0_160] : memref<31x32xf32, #tpu.memory_space<vmem>>, vector<1x32xf32>
    %326 = vector.broadcast %325 : vector<1x32xf32> to vector<8x32xf32>
    %327 = arith.mulf %324, %326 : vector<8x32xf32>
    %328 = arith.addf %323, %327 : vector<8x32xf32>
    %c25 = arith.constant 25 : index
    %c0_161 = arith.constant 0 : index
    %329 = vector.load %arg11[%c25, %c0_161] : memref<39x32xf32, #tpu.memory_space<vmem>>, vector<8x32xf32>
    %c24_162 = arith.constant 24 : index
    %c0_163 = arith.constant 0 : index
    %330 = vector.load %arg9[%c24_162, %c0_163] : memref<31x32xf32, #tpu.memory_space<vmem>>, vector<1x32xf32>
    %331 = vector.broadcast %330 : vector<1x32xf32> to vector<8x32xf32>
    %332 = arith.mulf %329, %331 : vector<8x32xf32>
    %333 = arith.addf %328, %332 : vector<8x32xf32>
    %c26 = arith.constant 26 : index
    %c0_164 = arith.constant 0 : index
    %334 = vector.load %arg11[%c26, %c0_164] : memref<39x32xf32, #tpu.memory_space<vmem>>, vector<8x32xf32>
    %c25_165 = arith.constant 25 : index
    %c0_166 = arith.constant 0 : index
    %335 = vector.load %arg9[%c25_165, %c0_166] : memref<31x32xf32, #tpu.memory_space<vmem>>, vector<1x32xf32>
    %336 = vector.broadcast %335 : vector<1x32xf32> to vector<8x32xf32>
    %337 = arith.mulf %334, %336 : vector<8x32xf32>
    %338 = arith.addf %333, %337 : vector<8x32xf32>
    %c27 = arith.constant 27 : index
    %c0_167 = arith.constant 0 : index
    %339 = vector.load %arg11[%c27, %c0_167] : memref<39x32xf32, #tpu.memory_space<vmem>>, vector<8x32xf32>
    %c26_168 = arith.constant 26 : index
    %c0_169 = arith.constant 0 : index
    %340 = vector.load %arg9[%c26_168, %c0_169] : memref<31x32xf32, #tpu.memory_space<vmem>>, vector<1x32xf32>
    %341 = vector.broadcast %340 : vector<1x32xf32> to vector<8x32xf32>
    %342 = arith.mulf %339, %341 : vector<8x32xf32>
    %343 = arith.addf %338, %342 : vector<8x32xf32>
    %c28 = arith.constant 28 : index
    %c0_170 = arith.constant 0 : index
    %344 = vector.load %arg11[%c28, %c0_170] : memref<39x32xf32, #tpu.memory_space<vmem>>, vector<8x32xf32>
    %c27_171 = arith.constant 27 : index
    %c0_172 = arith.constant 0 : index
    %345 = vector.load %arg9[%c27_171, %c0_172] : memref<31x32xf32, #tpu.memory_space<vmem>>, vector<1x32xf32>
    %346 = vector.broadcast %345 : vector<1x32xf32> to vector<8x32xf32>
    %347 = arith.mulf %344, %346 : vector<8x32xf32>
    %348 = arith.addf %343, %347 : vector<8x32xf32>
    %c29 = arith.constant 29 : index
    %c0_173 = arith.constant 0 : index
    %349 = vector.load %arg11[%c29, %c0_173] : memref<39x32xf32, #tpu.memory_space<vmem>>, vector<8x32xf32>
    %c28_174 = arith.constant 28 : index
    %c0_175 = arith.constant 0 : index
    %350 = vector.load %arg9[%c28_174, %c0_175] : memref<31x32xf32, #tpu.memory_space<vmem>>, vector<1x32xf32>
    %351 = vector.broadcast %350 : vector<1x32xf32> to vector<8x32xf32>
    %352 = arith.mulf %349, %351 : vector<8x32xf32>
    %353 = arith.addf %348, %352 : vector<8x32xf32>
    %c30 = arith.constant 30 : index
    %c0_176 = arith.constant 0 : index
    %354 = vector.load %arg11[%c30, %c0_176] : memref<39x32xf32, #tpu.memory_space<vmem>>, vector<8x32xf32>
    %c29_177 = arith.constant 29 : index
    %c0_178 = arith.constant 0 : index
    %355 = vector.load %arg9[%c29_177, %c0_178] : memref<31x32xf32, #tpu.memory_space<vmem>>, vector<1x32xf32>
    %356 = vector.broadcast %355 : vector<1x32xf32> to vector<8x32xf32>
    %357 = arith.mulf %354, %356 : vector<8x32xf32>
    %358 = arith.addf %353, %357 : vector<8x32xf32>
    %c31 = arith.constant 31 : index
    %c0_179 = arith.constant 0 : index
    %359 = vector.load %arg11[%c31, %c0_179] : memref<39x32xf32, #tpu.memory_space<vmem>>, vector<8x32xf32>
    %c30_180 = arith.constant 30 : index
    %c0_181 = arith.constant 0 : index
    %360 = vector.load %arg9[%c30_180, %c0_181] : memref<31x32xf32, #tpu.memory_space<vmem>>, vector<1x32xf32>
    %361 = vector.broadcast %360 : vector<1x32xf32> to vector<8x32xf32>
    %362 = arith.mulf %359, %361 : vector<8x32xf32>
    %363 = arith.addf %358, %362 : vector<8x32xf32>
    %cst_182 = arith.constant 0.000000e+00 : f32
    %364 = vector.broadcast %cst_182 : f32 to vector<8x32xf32>
    %365 = arith.maximumf %363, %364 : vector<8x32xf32>
    %366 = arith.truncf %365 : vector<8x32xf32> to vector<8x32xbf16>
    %cst_183 = arith.constant dense<0.000000e+00> : vector<8x32xf32>
    %367 = tpu.matmul %366, %184, %cst_183 {dimension_numbers = #tpu.dot_dimension_numbers<[1], [0], [0], [1], [0, 0, 1, 1], [], []>} : vector<8x32xbf16>, vector<32x32xbf16>, vector<8x32xf32> -> vector<8x32xf32>
    %368 = vector.broadcast %185 : vector<1x32xf32> to vector<8x32xf32>
    %369 = arith.addf %367, %368 : vector<8x32xf32>
    %370 = arith.addf %154, %369 : vector<8x32xf32>
    %c15_184 = arith.constant 15 : index
    %c0_185 = arith.constant 0 : index
    %371 = vector.load %arg2[%c15_184, %c0_185] : memref<20x32xf32, #tpu.memory_space<vmem>>, vector<1x32xf32>
    %c16_186 = arith.constant 16 : index
    %c0_187 = arith.constant 0 : index
    %372 = vector.load %arg2[%c16_186, %c0_187] : memref<20x32xf32, #tpu.memory_space<vmem>>, vector<1x32xf32>
    %c1_188 = arith.constant 1 : index
    %c0_189 = arith.constant 0 : index
    %c0_190 = arith.constant 0 : index
    %373 = vector.load %arg7[%c1_188, %c0_189, %c0_190] : memref<2x32x128xbf16, #tpu.memory_space<vmem>>, vector<1x32x128xbf16>
    %374 = vector.shape_cast %373 : vector<1x32x128xbf16> to vector<32x128xbf16>
    %c1_191 = arith.constant 1 : index
    %c0_192 = arith.constant 0 : index
    %375 = vector.load %arg3[%c1_191, %c0_192] : memref<2x128xf32, #tpu.memory_space<vmem>>, vector<1x128xf32>
    %c1_193 = arith.constant 1 : index
    %c0_194 = arith.constant 0 : index
    %c0_195 = arith.constant 0 : index
    %376 = vector.load %arg8[%c1_193, %c0_194, %c0_195] : memref<2x128x32xbf16, #tpu.memory_space<vmem>>, vector<1x128x32xbf16>
    %377 = vector.shape_cast %376 : vector<1x128x32xbf16> to vector<128x32xbf16>
    %c17_196 = arith.constant 17 : index
    %c0_197 = arith.constant 0 : index
    %378 = vector.load %arg2[%c17_196, %c0_197] : memref<20x32xf32, #tpu.memory_space<vmem>>, vector<1x32xf32>
    %cst_198 = arith.constant dense<0.000000e+00> : vector<8xf32>
    %379 = vector.multi_reduction <add>, %370, %cst_198 [1] : vector<8x32xf32> to vector<8xf32>
    %380 = vector.shape_cast %379 : vector<8xf32> to vector<8x1xf32>
    %cst_199 = arith.constant 3.200000e+01 : f32
    %381 = vector.broadcast %cst_199 : f32 to vector<8x1xf32>
    %382 = arith.divf %380, %381 : vector<8x1xf32>
    %383 = vector.broadcast %382 : vector<8x1xf32> to vector<8x32xf32>
    %384 = arith.subf %370, %383 : vector<8x32xf32>
    %385 = arith.mulf %384, %384 : vector<8x32xf32>
    %cst_200 = arith.constant dense<0.000000e+00> : vector<8xf32>
    %386 = vector.multi_reduction <add>, %385, %cst_200 [1] : vector<8x32xf32> to vector<8xf32>
    %387 = vector.shape_cast %386 : vector<8xf32> to vector<8x1xf32>
    %cst_201 = arith.constant 3.200000e+01 : f32
    %388 = vector.broadcast %cst_201 : f32 to vector<8x1xf32>
    %389 = arith.divf %387, %388 : vector<8x1xf32>
    %390 = vector.broadcast %382 : vector<8x1xf32> to vector<8x32xf32>
    %391 = arith.subf %370, %390 : vector<8x32xf32>
    %cst_202 = arith.constant 9.99999974E-6 : f32
    %392 = vector.broadcast %cst_202 : f32 to vector<8x1xf32>
    %393 = arith.addf %389, %392 : vector<8x1xf32>
    %394 = math.rsqrt %393 : vector<8x1xf32>
    %395 = vector.broadcast %394 : vector<8x1xf32> to vector<8x32xf32>
    %396 = arith.mulf %391, %395 : vector<8x32xf32>
    %397 = vector.broadcast %371 : vector<1x32xf32> to vector<8x32xf32>
    %398 = arith.mulf %396, %397 : vector<8x32xf32>
    %399 = vector.broadcast %372 : vector<1x32xf32> to vector<8x32xf32>
    %400 = arith.addf %398, %399 : vector<8x32xf32>
    %401 = arith.truncf %400 : vector<8x32xf32> to vector<8x32xbf16>
    %cst_203 = arith.constant dense<0.000000e+00> : vector<8x128xf32>
    %402 = tpu.matmul %401, %374, %cst_203 {dimension_numbers = #tpu.dot_dimension_numbers<[1], [0], [0], [1], [0, 0, 1, 1], [], []>} : vector<8x32xbf16>, vector<32x128xbf16>, vector<8x128xf32> -> vector<8x128xf32>
    %403 = vector.broadcast %375 : vector<1x128xf32> to vector<8x128xf32>
    %404 = arith.addf %402, %403 : vector<8x128xf32>
    %cst_204 = arith.constant 0.000000e+00 : f32
    %405 = vector.broadcast %cst_204 : f32 to vector<8x128xf32>
    %406 = arith.maximumf %404, %405 : vector<8x128xf32>
    %407 = arith.truncf %406 : vector<8x128xf32> to vector<8x128xbf16>
    %cst_205 = arith.constant dense<0.000000e+00> : vector<8x32xf32>
    %408 = tpu.matmul %407, %377, %cst_205 {dimension_numbers = #tpu.dot_dimension_numbers<[1], [0], [0], [1], [0, 0, 1, 1], [], []>} : vector<8x128xbf16>, vector<128x32xbf16>, vector<8x32xf32> -> vector<8x32xf32>
    %409 = vector.broadcast %378 : vector<1x32xf32> to vector<8x32xf32>
    %410 = arith.addf %408, %409 : vector<8x32xf32>
    %cst_206 = arith.constant 5.000000e-01 : f32
    %411 = vector.broadcast %cst_206 : f32 to vector<8x32xf32>
    %412 = arith.mulf %411, %410 : vector<8x32xf32>
    %413 = arith.addf %370, %412 : vector<8x32xf32>
    %c18_207 = arith.constant 18 : index
    %c0_208 = arith.constant 0 : index
    %414 = vector.load %arg2[%c18_207, %c0_208] : memref<20x32xf32, #tpu.memory_space<vmem>>, vector<1x32xf32>
    %c19_209 = arith.constant 19 : index
    %c0_210 = arith.constant 0 : index
    %415 = vector.load %arg2[%c19_209, %c0_210] : memref<20x32xf32, #tpu.memory_space<vmem>>, vector<1x32xf32>
    %cst_211 = arith.constant dense<0.000000e+00> : vector<8xf32>
    %416 = vector.multi_reduction <add>, %413, %cst_211 [1] : vector<8x32xf32> to vector<8xf32>
    %417 = vector.shape_cast %416 : vector<8xf32> to vector<8x1xf32>
    %cst_212 = arith.constant 3.200000e+01 : f32
    %418 = vector.broadcast %cst_212 : f32 to vector<8x1xf32>
    %419 = arith.divf %417, %418 : vector<8x1xf32>
    %420 = vector.broadcast %419 : vector<8x1xf32> to vector<8x32xf32>
    %421 = arith.subf %413, %420 : vector<8x32xf32>
    %422 = arith.mulf %421, %421 : vector<8x32xf32>
    %cst_213 = arith.constant dense<0.000000e+00> : vector<8xf32>
    %423 = vector.multi_reduction <add>, %422, %cst_213 [1] : vector<8x32xf32> to vector<8xf32>
    %424 = vector.shape_cast %423 : vector<8xf32> to vector<8x1xf32>
    %cst_214 = arith.constant 3.200000e+01 : f32
    %425 = vector.broadcast %cst_214 : f32 to vector<8x1xf32>
    %426 = arith.divf %424, %425 : vector<8x1xf32>
    %427 = vector.broadcast %419 : vector<8x1xf32> to vector<8x32xf32>
    %428 = arith.subf %413, %427 : vector<8x32xf32>
    %cst_215 = arith.constant 9.99999974E-6 : f32
    %429 = vector.broadcast %cst_215 : f32 to vector<8x1xf32>
    %430 = arith.addf %426, %429 : vector<8x1xf32>
    %431 = math.rsqrt %430 : vector<8x1xf32>
    %432 = vector.broadcast %431 : vector<8x1xf32> to vector<8x32xf32>
    %433 = arith.mulf %428, %432 : vector<8x32xf32>
    %434 = vector.broadcast %414 : vector<1x32xf32> to vector<8x32xf32>
    %435 = arith.mulf %433, %434 : vector<8x32xf32>
    %436 = vector.broadcast %415 : vector<1x32xf32> to vector<8x32xf32>
    %437 = arith.addf %435, %436 : vector<8x32xf32>
    %c0_216 = arith.constant 0 : index
    %c0_217 = arith.constant 0 : index
    %c0_218 = arith.constant 0 : index
    %438 = vector.load %arg10[%c0_216, %c0_217, %c0_218] : memref<1x8x32xf32, #tpu.memory_space<vmem>>, vector<1x8x32xf32>
    %439 = vector.shape_cast %438 : vector<1x8x32xf32> to vector<8x32xf32>
    %440 = vector.shape_cast %437 : vector<8x32xf32> to vector<1x8x32xf32>
    tpu.vector_store %arg10[%c0_216, %c0_217, %c0_218], %440 {strides = array<i32>} : memref<1x8x32xf32, #tpu.memory_space<vmem>>, vector<1x8x32xf32>,
    return
  }
  func.func @transform_0(%arg0: i32) -> (i32, i32, i32) {
    %c0_i32 = arith.constant 0 : i32
    %c0_i32_0 = arith.constant 0 : i32
    %c0_i32_1 = arith.constant 0 : i32
    return %arg0, %c0_i32, %c0_i32_0 : i32, i32, i32
  }
  func.func @transform_1(%arg0: i32) -> (i32, i32) {
    %c0_i32 = arith.constant 0 : i32
    %c0_i32_0 = arith.constant 0 : i32
    %c0_i32_1 = arith.constant 0 : i32
    return %c0_i32, %c0_i32_0 : i32, i32
  }
  func.func @transform_2(%arg0: i32) -> (i32, i32) {
    %c0_i32 = arith.constant 0 : i32
    %c0_i32_0 = arith.constant 0 : i32
    %c0_i32_1 = arith.constant 0 : i32
    return %c0_i32, %c0_i32_0 : i32, i32
  }
  func.func @transform_3(%arg0: i32) -> (i32, i32) {
    %c0_i32 = arith.constant 0 : i32
    %c0_i32_0 = arith.constant 0 : i32
    %c0_i32_1 = arith.constant 0 : i32
    return %c0_i32, %c0_i32_0 : i32, i32
  }
  func.func @transform_4(%arg0: i32) -> (i32, i32, i32) {
    %c0_i32 = arith.constant 0 : i32
    %c0_i32_0 = arith.constant 0 : i32
    %c0_i32_1 = arith.constant 0 : i32
    %c0_i32_2 = arith.constant 0 : i32
    return %c0_i32, %c0_i32_0, %c0_i32_1 : i32, i32, i32
  }
  func.func @transform_5(%arg0: i32) -> (i32, i32) {
    %c0_i32 = arith.constant 0 : i32
    %c0_i32_0 = arith.constant 0 : i32
    %c0_i32_1 = arith.constant 0 : i32
    return %c0_i32, %c0_i32_0 : i32, i32
  }
  func.func @transform_6(%arg0: i32) -> (i32, i32, i32) {
    %c0_i32 = arith.constant 0 : i32
    %c0_i32_0 = arith.constant 0 : i32
    %c0_i32_1 = arith.constant 0 : i32
    %c0_i32_2 = arith.constant 0 : i32
    return %c0_i32, %c0_i32_0, %c0_i32_1 : i32, i32, i32
  }
  func.func @transform_7(%arg0: i32) -> (i32, i32, i32) {
    %c0_i32 = arith.constant 0 : i32
    %c0_i32_0 = arith.constant 0 : i32
    %c0_i32_1 = arith.constant 0 : i32
    %c0_i32_2 = arith.constant 0 : i32
    return %c0_i32, %c0_i32_0, %c0_i32_1 : i32, i32, i32
  }
  func.func @transform_8(%arg0: i32) -> (i32, i32) {
    %c0_i32 = arith.constant 0 : i32
    %c0_i32_0 = arith.constant 0 : i32
    %c0_i32_1 = arith.constant 0 : i32
    return %c0_i32, %c0_i32_0 : i32, i32
  }
  func.func @transform_9(%arg0: i32) -> (i32, i32, i32) {
    %c0_i32 = arith.constant 0 : i32
    %c0_i32_0 = arith.constant 0 : i32
    %c0_i32_1 = arith.constant 0 : i32
    return %arg0, %c0_i32, %c0_i32_0 : i32, i32, i32
  }
}

</mosaic_0001>

<bundles_post_ra>
// kernel: tpu_custom_call.1
= control target key start
LH: loop header
LB: loop body
LE: loop exit
PB: predicated region body
PF: predicated region fallthrough
CT: control target
= control target key end

     0   :  { %s3107_s0 = inlined_call_operand.vmem [shape: f32[2,8,32], index: 0, kind: input, shape index: {}]   ;;  %s3108_s1 = inlined_call_operand.vmem [shape: f32[20,32], index: 1, kind: input, shape index: {}]   ;;  %s3109_s2 = inlined_call_operand.hbm [shape: f32[2,128], index: 2, kind: input, shape index: {}]   ;;  %s3110_s3 = inlined_call_operand.vmem [shape: bf16[32,96], index: 3, kind: input, shape index: {}]   ;;  %s3111_s4 = inlined_call_operand.vmem [shape: bf16[2,32,32], index: 4, kind: input, shape index: {}]   ;;  %s3112_s5 = inlined_call_operand.vmem [shape: bf16[32,64], index: 5, kind: input, shape index: {}]   ;;  %s3113_s6 = inlined_call_operand.vmem [shape: bf16[2,32,128], index: 6, kind: input, shape index: {}]   ;;  %s3114_s7 = inlined_call_operand.vmem [shape: bf16[2,128,32], index: 7, kind: input, shape index: {}]   ;;  %s3115_s8 = inlined_call_operand.vmem [shape: f32[31,32], index: 8, kind: input, shape index: {}]   ;;  %s3116_s9 = inlined_call_operand.hbm [shape: f32[2,8,32], index: 9, kind: output, shape index: {}]  }
   0x1   :  { %3117 = sst [smem:[#allocation9_spill]] %s3107_s0 }
   0x2   :  { %14 = vsyncpa [#allocation4], 0 }
   0x3   :  { %15 = vsyncpa [#allocation5], 0 }
   0x4   :  { %17 = vsyncpa [#allocation5 + $0x1], 0  ;;  %s2606_s30 = smov 0   ;;  %s2608_s10 = smov 0  }
   0x5   :  { %s2610_s11 = smov 0   ;;  %s2612_s12 = smov 0  }
   0x6 LB: > { %s2627_s13 = sadd.s32 4294967295, %s2541_s12   ;;  %s2007_s14 = sadd.s32 4294967294, %s2541_s12   ;;  %s2541_s12 = sphi %s2612_s12, %s3126_s12   ;;  %s2537_s11 = sphi %s2610_s11, %s3125_s11   ;;  %s2533_s10 = sphi %s2608_s10, %s3124_s10   ;;  %s2529_s30 = sphi %s2606_s30, %s3123_s30  }
   0x7   : > { %s2631_s15 = sadd.s32 1, %s2541_s12   ;;  %s224_s16 = sadd.s32 1, %s2537_s11 }
   0x8   : > { %s221_s17 = ssub.s32 %s2541_s12, %s2631_s15  ;;  %p234_p0 = scmp.ne.s32.totalorder %s2537_s11, %s2533_s10 }
   0x9   : > { %p222_p1 = scmp.eq.s32.totalorder %s221_s17, 0  ;;  %p235_p2 = scmp.eq.s32.totalorder %s2627_s13, 1 }
   0xa   : > { %p240_p3 = scmp.ne.s32.totalorder %s2533_s10, %s2529_s30  ;;  %p241_p4 = scmp.eq.s32.totalorder %s2007_s14, 1 }
   0xb   : > { %s2642_s18 = scalar_select %p222_p1, %s2537_s11, %s224_s16  }
   0xc   : > { %p2644_p5 = por %p235_p2, %p234_p0  ;;  %p2648_p6 = por %p241_p4, %p240_p3 }
   0xd   : > { %p2008_p7 = scmp.ge.s32.totalorder %s2541_s12, 1  ;;  %p248_p8 = scmp.lt.s32.totalorder %s2541_s12, 3 }
   0xe   : > { %s3119_s20 = scalar_select %p2648_p6, 1, 0 }
   0xf   : > { %p2340_p9 = scmp.eq.s32.totalorder %s2627_s13, 0  ;;  %p2655_p10 = pnand %p2008_p7, %p248_p8 }
  0x10   : > { %s2543_s22 = smov [#allocation3]  }
  0x11   : > { %s264_s23 = sshll.u32 %s2543_s22, 4  ;;  %p2332_p11 = pneg %p2655_p10  ;;  %s265_s23 = int_to_ptr.vmem [resolvable:$true] %s264_s23 }
  0x12   : > { %s2462_s24 = scalar_lea.vmem %s265_s23, 32  ;;  %p2470_p3 = scmp.lt.s32.totalorder %s265_s23, %s265_s23 }
  0x13   : > { %p2333_p12 = pnand %p2340_p9, %p2332_p11  ;;  %p2463_p0 = scmp.ne.s32.totalorder %s265_s23, %s2462_s24 }
  0x14   : > { %p2471_p4 = scmp.lt.s32.totalorder %s2462_s24, %s2462_s24 }
  0x15   : > { %p2453_p13 = pneg %p2333_p12 }
  0x16   : > { %p2472_p6 = por %p2471_p4, %p2470_p3 }
  0x17   : > { %p2465_p1 = pnand %p2463_p0, %p2453_p13 }
  0x19   : > { %p2466_p2 = pneg %p2465_p1 }
  0x1b   : > { %p2473_p7 = pnand %p2472_p6, %p2466_p2 }
  0x1d   : > { %2476 = shalt.err (!%p2473_p7)
}
  0x1e   : > { %2335 = dma.hbm_to_vmem [thread:$0]  (!%p2333_p12), %s3109_s2, 32, %s265_s23, [#allocation4]  }
  0x1f   : > { %302 = sbr.rel (%p2655_p10) target bundleno = 4305 (0x10d1), region = 56 }
  0x24   : > { %2520 = dma.done.wait (%p2340_p9), [#allocation4], 32  }
  0x25   : > { %2522 = vsyncadd (%p2340_p9), [#allocation4], 4294967264  ;;  %p337_p8 = scmp.lt.s32.totalorder %s2627_s13, 1  ;;  %s3121_s0 = sld [smem:[#allocation9_spill]]  ;;  %vm367_vm0 = vcmask 261120   ;;  %v2387_v7 = vld [vmem:[%s3113_s6 + $0x8] sm:$0xff]  }
  0x26   : > { %v2544_v8 = vmov 0.0   ;;  %vm2545_vm1 = vmmov 0   ;;  %v2388_v9 = vld [vmem:[%s3113_s6] sm:$0xff]   ;;  %v2389_v19 = vld [vmem:[%s3114_s7 + $0x38] sm:$0xff]   ;;  %v2390_v21 = vld [vmem:[%s3114_s7 + $0x30] sm:$0xff]   ;;  %s2547_s21 = smov 120  }
  0x27   : > { %s338_s27 = scalar_select %p337_p8, %s2627_s13, 1  ;;  %2190 = vmatprep.subr.bf16.mxu1 %v2544_v8  ;;  %1371 = vst.msk [vmem:[#allocation2] sm:$0xff] %vm367_vm0, %v2544_v8  ;;  %1372 = vst.msk [vmem:[#allocation2 + $0x8] sm:$0xff] %vm367_vm0, %v2544_v8  ;;  %2194 = vmatprep.mubr.msk.bf16.mxu1 %vm2545_vm1, %v2544_v8  ;;  %v2015_v14 = vld [vmem:[%s3108_s1] ss:$0 sm:$0xff]  ;;  %v2391_v22 = vld [vmem:[%s3114_s7 + $0x28] sm:$0xff]  }
  0x28   : > { %1373 = vst.msk [vmem:[#allocation2 + $0x18] sm:$0xff] %vm367_vm0, %v2544_v8  ;;  %2191 = vmatpush3.bf16.msra.mxu1 %v2387_v7  ;;  %2226 = vmatprep.subr.bf16.mxu0 %v2544_v8  ;;  %v2016_v16 = vld [vmem:[%s3108_s1 + $0x1] ss:$0 sm:$0xff]  ;;  %v2393_v24 = vld [vmem:[%s3114_s7 + $0x18] sm:$0xff]   ;;  %v2394_v25 = vld [vmem:[%s3114_s7 + $0x10] sm:$0xff]   ;;  %s2548_s24 = smov 96  }
  0x29   : > { %s2014_s28 = sshll.u32 %s338_s27, 3  ;;  %2192 = vmatprep.subr.bf16.mxu1 %v2544_v8  ;;  %2228 = vmatprep.mubr.msk.bf16.mxu0 %vm2545_vm1, %v2544_v8  ;;  %v2392_v23 = vld [vmem:[%s3114_s7 + $0x20] sm:$0xff]   ;;  %v2395_v26 = vld [vmem:[%s3114_s7 + $0x8] sm:$0xff]   ;;  %s2549_s25 = smov 112   ;;  %vm709_vm2 = vcmask 64512   ;;  %vm973_vm3 = vcmask 1043456  }
  0x2a   : > { %v2396_v27 = vld [vmem:[%s3114_s7] sm:$0xff]   ;;  %v2017_v28 = vld [vmem:[#allocation3] ss:$0 sm:$0xff]  ;;  %s2550_s26 = smov 104   ;;  %s2551_s14 = smov 64   ;;  %vm1189_vm4 = vcmask 130048  }
  0x2b   : > { %s340_s16 = scalar_lea.vmem %s3121_s0, %s2014_s28  ;;  %v2021_v36 = vld [vmem:[%s3108_s1 + $0x2] ss:$0 sm:$0xff]  ;;  %v2397_v50 = vld [vmem:[%s3110_s3 + $0x8] sm:$0xff]   ;;  %v2036_v52 = vld [vmem:[%s3108_s1 + $0x6] ss:$0 sm:$0xff]  ;;  %s2546_s28 = smov 32  }
  0x2c   : > { %v2677_v0 = vld [vmem:[%s340_s16] sm:$0xff]  ;;  %2193 = vmatpush3.bf16.msra.mxu1 %v2388_v9  ;;  %vm1191_vm5 = vcmask 195584   ;;  %vm1374_vm6 = vcmask 260096   ;;  %s334_s16 = sand.u32 1, %s2533_s10  }
  0x2d   : > { %v368_v1 = vsel %vm367_vm0, %v2677_v0, 0.0  ;;  %2198 = vmatprep.subr.bf16.mxu1 %v2544_v8  ;;  %v2398_v51 = vld [vmem:[%s3110_s3] sm:$0xff]   ;;  %1375 = vst.msk [vmem:[#allocation2 + $0x20] sm:$0x7f] %vm1374_vm6, %v2544_v8  ;;  %s2013_s17 = sshll.u32 %s334_s16, 3  ;;  %s1923_s0 = scalar_lea.sflag [#allocation5], %s334_s16 }
  0x2e   : > { %369 = vadd.xlane.f32.xlu0 %v368_v1  ;;  %v2030_v57 = vld [vmem:[%s3108_s1 + $0x3] ss:$0 sm:$0xff]  ;;  %v2031_v59 = vld [vmem:[%s3108_s1 + $0x4] ss:$0 sm:$0xff] }
  0xb7   : > { %v370_v2 = vpop.xlane.xlu0 %369 }
  0xb8   : > { %v372_v3 = vmul.f32 0.03125, %v370_v2 }
  0xba   : > { %v373_v4 = vsub.f32 %v2677_v0, %v372_v3 }
  0xbc   : > { %v374_v5 = vmul.f32 %v373_v4, %v373_v4 }
  0xbe   : > { %v375_v6 = vsel %vm367_vm0, %v374_v5, 0.0 }
  0xbf   : > { %376 = vadd.xlane.f32.xlu0 %v375_v6 }
  0xd5   : > { %651 = vrot.lane.b32.xlu0 %v2036_v52, %s2546_s28 }
 0x148   : > { %v377_v10 = vpop.xlane.xlu0 %376 }
 0x149   : > { %v378_v11 = vmul.f32 0.03125, %v377_v10 }
 0x14b   : > { %v379_v12 = vadd.f32 1e-05, %v378_v11 }
 0x14c   : > { %v652_v63 = vpop.permute.xlu0 %651 }
 0x14d   : > { %2415 = vrsqrt.f32 %v379_v12 }
 0x15a   : > { %v2416_v13 = vpop.eup %2415 }
 0x15b   : > { %v381_v15 = vmul.f32 %v2416_v13, %v373_v4  ;;  %v2035_v4 = vld [vmem:[%s3108_s1 + $0x5] ss:$0 sm:$0xff] }
 0x15d   : > { %v386_v17 = vmul.f32 %v2015_v14, %v381_v15 }
 0x15f   : > { %v391_v18 = vadd.f32 %v2016_v16, %v386_v17 }
 0x161   : > { %v392_v20 = vpack.c.bf16 %v391_v18, %v391_v18  ;;  %v2037_v18 = vld [vmem:[%s3108_s1 + $0x7] ss:$0 sm:$0xff] }
 0x163   : > { %2195 = vmatmul.mubr.msk.bf16.vlgmr.msra.gmra.mxu1 %vm367_vm0, %v392_v20 }
 0x164   : > { %2199 = vmatpush3.bf16.msra.mxu1 %v2389_v19  ;;  %2214 = vmatprep.mubr.msk.bf16.mxu1 %vm2545_vm1, %v2544_v8 }
 0x165   : > { %2200 = vmatprep.subr.bf16.mxu1 %v2544_v8 }
 0x168   : > { %2201 = vmatpush3.bf16.msra.mxu1 %v2390_v21 }
 0x169   : > { %2202 = vmatprep.subr.bf16.mxu1 %v2544_v8 }
 0x16c   : > { %2203 = vmatpush3.bf16.msra.mxu1 %v2391_v22 }
 0x16d   : > { %2204 = vmatprep.subr.bf16.mxu1 %v2544_v8 }
 0x170   : > { %2205 = vmatpush3.bf16.msra.mxu1 %v2392_v23 }
 0x171   : > { %2206 = vmatprep.subr.bf16.mxu1 %v2544_v8 }
 0x174   : > { %2207 = vmatpush3.bf16.msra.mxu1 %v2393_v24 }
 0x175   : > { %2208 = vmatprep.subr.bf16.mxu1 %v2544_v8 }
 0x178   : > { %2209 = vmatpush3.bf16.msra.mxu1 %v2394_v25 }
 0x179   : > { %2210 = vmatprep.subr.bf16.mxu1 %v2544_v8 }
 0x17c   : > { %2211 = vmatpush3.bf16.msra.mxu1 %v2395_v26 }
 0x17d   : > { %2212 = vmatprep.subr.bf16.mxu1 %v2544_v8 }
 0x180   : > { %2213 = vmatpush3.bf16.msra.mxu1 %v2396_v27 }
 0x181   : > { %2218 = vmatprep.subr.bf16.mxu1 %v2544_v8 }
 0x223   : > { %v446_v29 = vpop.f32.mrf.mxu1 }
 0x224   : > { %v447_v30 = vadd.f32 %v2017_v28, %v446_v29 }
 0x225   : > { %v2196_v31 = vpop.f32.mrf.mxu1 }
 0x226   : > { %v452_v32 = vmax.f32 %v447_v30, 0.0 }
 0x227   : > { %v449_v33 = vpop.f32.mrf.mxu1 }
 0x228   : > { %v453_v34 = vpack.c.bf16 %v452_v32, %v452_v32 }
 0x229   : > { %v2197_v35 = vpop.f32.mrf.mxu1 }
 0x22a   : > { %2215 = vmatmul.mubr.bf16.vlgmr.msra.gmra.mxu1 %v453_v34 }
 0x22b   : > { %2222 = vmatprep.mubr.msk.bf16.mxu1 %vm2545_vm1, %v2544_v8  ;;  %2219 = vmatpush3.bf16.msra.mxu1 %v2397_v50 }
 0x22c   : > { %2220 = vmatprep.subr.bf16.mxu1 %v2544_v8 }
 0x22f   : > { %2221 = vmatpush3.bf16.msra.mxu1 %v2398_v51 }
 0x230   : > { %2244 = vmatprep.subr.bf16.mxu1 %v2544_v8 }
 0x2ea   : > { %v540_v37 = vpop.f32.mrf.mxu1 }
 0x2eb   : > { %v541_v38 = vadd.f32 %v2021_v36, %v540_v37 }
 0x2ec   : > { %v2216_v39 = vpop.f32.mrf.mxu1 }
 0x2ed   : > { %v546_v40 = vmul.f32 0.5, %v541_v38 }
 0x2ee   : > { %v543_v41 = vpop.f32.mrf.mxu1 }
 0x2ef   : > { %v2750_v42 = vadd.f32 %v546_v40, %v2677_v0 }
 0x2f0   : > { %v2217_v43 = vpop.f32.mrf.mxu1 }
 0x2f1   : > { %v550_v44 = vsel %vm367_vm0, %v2750_v42, 0.0 }
 0x2f2   : > { %551 = vadd.xlane.f32.xlu1 %v550_v44 }
 0x37b   : > { %v552_v45 = vpop.xlane.xlu1 %551 }
 0x37c   : > { %v553_v46 = vmul.f32 0.03125, %v552_v45 }
 0x37e   : > { %v554_v47 = vsub.f32 %v2750_v42, %v553_v46 }
 0x380   : > { %v555_v48 = vmul.f32 %v554_v47, %v554_v47 }
 0x382   : > { %v556_v49 = vsel %vm367_vm0, %v555_v48, 0.0 }
 0x383   : > { %557 = vadd.xlane.f32.xlu1 %v556_v49 }
 0x40c   : > { %v558_v53 = vpop.xlane.xlu1 %557 }
 0x40d   : > { %v559_v54 = vmul.f32 0.03125, %v558_v53 }
 0x40f   : > { %v560_v55 = vadd.f32 1e-05, %v559_v54 }
 0x411   : > { %2417 = vrsqrt.f32 %v560_v55 }
 0x41e   : > { %v2418_v56 = vpop.eup %2417 }
 0x41f   : > { %v562_v58 = vmul.f32 %v2418_v56, %v554_v47 }
 0x421   : > { %v567_v60 = vmul.f32 %v2030_v57, %v562_v58 }
 0x423   : > { %v572_v61 = vadd.f32 %v2031_v59, %v567_v60 }
 0x425   : > { %v585_v62 = vpack.c.bf16 %v572_v61, %v572_v61 }
 0x427   : > { %2223 = vmatmul.mubr.msk.bf16.vlgmr.msra.gmra.mxu1 %vm367_vm0, %v585_v62 }
 0x428   : > { %2246 = vmatprep.mubr.msk.bf16.mxu1 %vm2545_vm1, %v2544_v8 }
 0x4e7   : > { %v635_v0 = vpop.f32.mrf.mxu1 }
 0x4e8   : > { %v654_v1 = vadd.f32 %v652_v63, %v635_v0  ;;  %v645_v7 = vadd.f32 %v2035_v4, %v635_v0 }
 0x4e9   : > { %v2224_v2 = vpop.f32.mrf.mxu1 }
 0x4ea   : > { %679 = vrot.lane.b32.xlu1 %v654_v1, %s2547_s21  ;;  %v688_v3 = vpack.c.bf16 %v654_v1, %v654_v1  ;;  %v674_v17 = vpack.c.bf16 %v645_v7, %v645_v7 }
 0x4eb   : > { %v638_v5 = vpop.f32.mrf.mxu1 }
 0x4ec   : > { %707 = vrot.lane.b32.xlu0 %v688_v3, %s2548_s24 }
 0x4ed   : > { %v2225_v6 = vpop.f32.mrf.mxu1 }
 0x4ee   : > { %682 = vrot.lane.b32.xlu1 %v654_v1, %s2549_s25 }
 0x4f0   : > { %665 = vrot.lane.b32.xlu0 %v645_v7, %s2547_s21 }
 0x4f2   : > { %685 = vrot.lane.b32.xlu1 %v654_v1, %s2550_s26 }
 0x55c   : > { %v680_v9 = vpop.permute.xlu1 %679 }
 0x55d   : > { %v689_v10 = vpack.c.bf16 %v680_v9, %v680_v9 }
 0x55e   : > { %v708_v11 = vpop.permute.xlu0 %707 }
 0x55f   : > { %757 = vrot.lane.b32.xlu1 %v689_v10, %s2548_s24  ;;  %v714_v12 = vsel %vm709_vm2, %v708_v11, 0 }
 0x560   : > { %v683_v13 = vpop.permute.xlu1 %682  ;;  %2227 = vmatpush3.bf16.xpose.msra.mxu0 %v714_v12 }
 0x561   : > { %v690_v14 = vpack.c.bf16 %v683_v13, %v683_v13  ;;  %2232 = vmatprep.subr.bf16.mxu0 %v2544_v8 }
 0x562   : > { %v666_v21 = vpop.permute.xlu0 %665 }
 0x563   : > { %806 = vrot.lane.b32.xlu1 %v690_v14, %s2548_s24  ;;  %v675_v23 = vpack.c.bf16 %v666_v21, %v666_v21 }
 0x564   : > { %v686_v15 = vpop.permute.xlu1 %685 }
 0x565   : > { %v691_v16 = vpack.c.bf16 %v686_v15, %v686_v15 }
 0x567   : > { %668 = vrot.lane.b32.xlu1 %v645_v7, %s2549_s25  ;;  %855 = vrot.lane.b32.xlu0 %v691_v16, %s2548_s24 }
 0x568   : > { %2229 = vmatmul.mubr.msk.bf16.vlgmr.msra.gmra.mxu0 %vm709_vm2, %v674_v17 }
 0x569   : > { %2234 = vmatprep.mubr.msk.bf16.mxu0 %vm2545_vm1, %v2544_v8 }
 0x56b   : > { %660 = vrot.lane.b32.xlu1 %v2037_v18, %s2551_s14  ;;  %671 = vrot.lane.b32.xlu0 %v645_v7, %s2550_s26 }
 0x5d1   : > { %v758_v19 = vpop.permute.xlu1 %757 }
 0x5d2   : > { %v763_v20 = vsel %vm709_vm2, %v758_v19, 0 }
 0x5d3   : > { %2233 = vmatpush3.bf16.xpose.msra.mxu0 %v763_v20 }
 0x5d4   : > { %2238 = vmatprep.subr.bf16.mxu0 %v2544_v8 }
 0x5d5   : > { %v807_v22 = vpop.permute.xlu1 %806 }
 0x5d6   : > { %v812_v26 = vsel %vm709_vm2, %v807_v22, 0 }
 0x5d9   : > { %v669_v24 = vpop.permute.xlu1 %668  ;;  %v856_v25 = vpop.permute.xlu0 %855 }
 0x5da   : > { %v861_v27 = vsel %vm709_vm2, %v856_v25, 0  ;;  %2235 = vmatmul.mubr.msk.bf16.vlgmr.msra.gmra.mxu0 %vm709_vm2, %v675_v23  ;;  %v676_v31 = vpack.c.bf16 %v669_v24, %v669_v24 }
 0x5db   : > { %2239 = vmatpush3.bf16.xpose.msra.mxu0 %v812_v26  ;;  %2245 = vmatpush3.bf16.xpose.msra.mxu1 %v861_v27 }
 0x5dc   : > { %2240 = vmatprep.mubr.msk.bf16.mxu0 %vm2545_vm1, %v2544_v8  ;;  %2250 = vmatprep.subr.bf16.mxu0 %v2544_v8 }
 0x5dd   : > { %v661_v28 = vpop.permute.xlu1 %660  ;;  %v672_v29 = vpop.permute.xlu0 %671  ;;  %2256 = vmatprep.subr.bf16.mxu1 %v2544_v8 }
 0x5de   : > { %v663_v30 = vadd.f32 %v661_v28, %v635_v0  ;;  %v677_v32 = vpack.c.bf16 %v672_v29, %v672_v29 }
 0x5e0   : > { %696 = vrot.lane.b32.xlu1 %v663_v30, %s2549_s25  ;;  %693 = vrot.lane.b32.xlu0 %v663_v30, %s2547_s21  ;;  %v702_v33 = vpack.c.bf16 %v663_v30, %v663_v30  ;;  %s2552_s21 = smov 8   ;;  %s2553_s25 = smov 24  }
 0x5e2   : > { %2241 = vmatmul.mubr.msk.bf16.vlgmr.msra.gmra.mxu0 %vm709_vm2, %v676_v31  ;;  %2247 = vmatmul.mubr.msk.bf16.vlgmr.msra.gmra.mxu1 %vm709_vm2, %v677_v32 }
 0x5e3   : > { %2252 = vmatprep.mubr.msk.bf16.mxu0 %vm2545_vm1, %v2544_v8  ;;  %2258 = vmatprep.mubr.msk.bf16.mxu1 %vm2545_vm1, %v2544_v8 }
 0x5e4   : > { %968 = vrot.lane.b32.xlu1 %v702_v33, %s2551_s14  ;;  %699 = vrot.lane.b32.xlu0 %v663_v30, %s2550_s26  ;;  %s2554_s26 = smov 16  }
 0x628   : > { %v750_v34 = vpop.f32.mrf.mxu0 }
 0x629   : > { %v903_v35 = vsel %vm709_vm2, %v750_v34, -inf }
 0x62a   : > { %904 = vmax.xlane.f32.xlu1 %v903_v35  ;;  %v2230_v36 = vpop.f32.mrf.mxu0 }
 0x62c   : > { %v753_v37 = vpop.f32.mrf.mxu0 }
 0x62e   : > { %v2231_v38 = vpop.f32.mrf.mxu0 }
 0x652   : > { %v697_v39 = vpop.permute.xlu1 %696  ;;  %v694_v40 = vpop.permute.xlu0 %693 }
 0x653   : > { %v704_v41 = vpack.c.bf16 %v697_v39, %v697_v39  ;;  %v703_v2 = vpack.c.bf16 %v694_v40, %v694_v40 }
 0x655   : > { %1067 = vrot.lane.b32.xlu1 %v704_v41, %s2551_s14 }
 0x656   : > { %v969_v43 = vpop.permute.xlu1 %968  ;;  %v700_v44 = vpop.permute.xlu0 %699 }
 0x657   : > { %v975_v45 = vsel %vm973_vm3, %v969_v43, 0  ;;  %v705_v46 = vpack.c.bf16 %v700_v44, %v700_v44 }
 0x658   : > { %2251 = vmatpush3.bf16.msra.mxu0 %v975_v45 }
 0x659   : > { %1116 = vrot.lane.b32.xlu1 %v705_v46, %s2551_s14  ;;  %2262 = vmatprep.subr.bf16.mxu0 %v2544_v8 }
 0x69a   : > { %v799_v47 = vpop.f32.mrf.mxu0 }
 0x69b   : > { %v906_v48 = vsel %vm709_vm2, %v799_v47, -inf }
 0x69c   : > { %907 = vmax.xlane.f32.xlu0 %v906_v48  ;;  %v2236_v49 = vpop.f32.mrf.mxu0 }
 0x69e   : > { %v802_v50 = vpop.f32.mrf.mxu0 }
 0x6a0   : > { %v2237_v51 = vpop.f32.mrf.mxu0 }
 0x6a2   : > { %v848_v52 = vpop.f32.mrf.mxu0  ;;  %v897_v53 = vpop.f32.mrf.mxu1 }
 0x6a3   : > { %v912_v54 = vsel %vm709_vm2, %v897_v53, -inf  ;;  %v909_v59 = vsel %vm709_vm2, %v848_v52, -inf }
 0x6a4   : > { %v2242_v55 = vpop.f32.mrf.mxu0  ;;  %913 = vmax.xlane.f32.xlu0 %v912_v54  ;;  %v2248_v56 = vpop.f32.mrf.mxu1 }
 0x6a6   : > { %v851_v57 = vpop.f32.mrf.mxu0  ;;  %v900_v58 = vpop.f32.mrf.mxu1 }
 0x6a8   : > { %v2243_v60 = vpop.f32.mrf.mxu0  ;;  %910 = vmax.xlane.f32.xlu0 %v909_v59  ;;  %v2249_v61 = vpop.f32.mrf.mxu1 }
 0x6b3   : > { %v905_v62 = vpop.xlane.xlu1 %904 }
 0x6b4   : > { %v915_v63 = vmax.f32 %v905_v62, -1e+30 }
 0x6b6   : > { %v931_v0 = vsub.f32 %v750_v34, %v915_v63  ;;  %v919_v34 = vsub.f32 -1e+30, %v915_v63 }
 0x6b8   : > { %v935_v1 = vmul.f32 1.442695, %v931_v0  ;;  %v923_v35 = vmul.f32 1.442695, %v919_v34 }
 0x6ba   : > { %2419 = vpow2.f32 %v935_v1 }
 0x6be   : > { %1018 = vrot.lane.b32.xlu0 %v703_v2, %s2551_s14  ;;  %v2399_v2 = vld [vmem:[%s3111_s4 + $0x8] sm:$0xff]  }
 0x6c7   : > { %v1068_v3 = vpop.permute.xlu1 %1067  ;;  %v2420_v4 = vpop.eup %2419 }
 0x6c8   : > { %v1073_v5 = vsel %vm973_vm3, %v1068_v3, 0  ;;  %v963_v6 = vpack.c.bf16 %v2420_v4, %v2420_v4  ;;  %v947_v33 = vsel %vm709_vm2, %v2420_v4, 0.0 }
 0x6ca   : > { %2253 = vmatmul.mubr.msk.bf16.vlgmr.msra.gmra.mxu0 %vm709_vm2, %v963_v6 }
 0x6cb   : > { %2263 = vmatpush3.bf16.msra.mxu0 %v1073_v5  ;;  %2264 = vmatprep.mubr.msk.bf16.mxu0 %vm2545_vm1, %v2544_v8  ;;  %v1117_v23 = vpop.permute.xlu1 %1116 }
 0x6cc   : > { %2274 = vmatprep.subr.bf16.mxu0 %v2544_v8  ;;  %v1122_v26 = vsel %vm973_vm3, %v1117_v23, 0 }
 0x725   : > { %v908_v7 = vpop.xlane.xlu0 %907 }
 0x726   : > { %v916_v9 = vmax.f32 %v908_v7, -1e+30 }
 0x728   : > { %v932_v10 = vsub.f32 %v799_v47, %v916_v9  ;;  %v920_v45 = vsub.f32 -1e+30, %v916_v9 }
 0x72a   : > { %v937_v11 = vmul.f32 1.442695, %v932_v10  ;;  %v925_v47 = vmul.f32 1.442695, %v920_v45  ;;  %v2400_v10 = vld [vmem:[%s3111_s4] sm:$0xff]  }
 0x72c   : > { %2421 = vpow2.f32 %v937_v11 }
 0x72d   : > { %v914_v12 = vpop.xlane.xlu0 %913 }
 0x72e   : > { %v918_v13 = vmax.f32 %v914_v12, -1e+30 }
 0x730   : > { %v934_v14 = vsub.f32 %v897_v53, %v918_v13  ;;  %v922_v50 = vsub.f32 -1e+30, %v918_v13 }
 0x731   : > { %v911_v15 = vpop.xlane.xlu0 %910 }
 0x732   : > { %v941_v16 = vmul.f32 1.442695, %v934_v14  ;;  %v917_v17 = vmax.f32 %v911_v15, -1e+30  ;;  %v929_v51 = vmul.f32 1.442695, %v922_v50 }
 0x734   : > { %v933_v18 = vsub.f32 %v848_v52, %v917_v17  ;;  %2423 = vpow2.f32 %v941_v16  ;;  %v921_v52 = vsub.f32 -1e+30, %v917_v17 }
 0x735   : > { %v1019_v19 = vpop.permute.xlu0 %1018 }
 0x736   : > { %v939_v20 = vmul.f32 1.442695, %v933_v18  ;;  %v1024_v21 = vsel %vm973_vm3, %v1019_v19, 0  ;;  %v927_v53 = vmul.f32 1.442695, %v921_v52 }
 0x737   : > { %2257 = vmatpush3.bf16.msra.mxu1 %v1024_v21 }
 0x738   : > { %2268 = vmatprep.subr.bf16.mxu1 %v2544_v8  ;;  %2425 = vpow2.f32 %v939_v20 }
 0x739   : > { %v2422_v22 = vpop.eup %2421  ;;  %2427 = vpow2.f32 %v923_v35 }
 0x73a   : > { %v950_v24 = vsel %vm709_vm2, %v2422_v22, 0.0  ;;  %v964_v25 = vpack.c.bf16 %v2422_v22, %v2422_v22  ;;  %2429 = vpow2.f32 %v925_v47  ;;  %v2401_v47 = vld [vmem:[%s3112_s5 + $0x8] sm:$0xff]  }
 0x73b   : > { %951 = vadd.xlane.f32.xlu1 %v950_v24 }
 0x73c   : > { %2259 = vmatmul.mubr.msk.bf16.vlgmr.msra.gmra.mxu1 %vm709_vm2, %v964_v25 }
 0x73d   : > { %2269 = vmatpush3.bf16.msra.mxu1 %v1122_v26  ;;  %2270 = vmatprep.mubr.msk.bf16.mxu1 %vm2545_vm1, %v2544_v8 }
 0x73e   : > { %2282 = vmatprep.subr.bf16.mxu1 %v2544_v8 }
 0x741   : > { %v2424_v27 = vpop.eup %2423 }
 0x742   : > { %v966_v28 = vpack.c.bf16 %v2424_v27, %v2424_v27  ;;  %v956_v32 = vsel %vm709_vm2, %v2424_v27, 0.0 }
 0x744   : > { %2271 = vmatmul.mubr.msk.bf16.vlgmr.msra.gmra.mxu1 %vm709_vm2, %v966_v28 }
 0x745   : > { %v2426_v29 = vpop.eup %2425  ;;  %2286 = vmatprep.mubr.msk.bf16.mxu1 %vm2545_vm1, %v2544_v8  ;;  %2283 = vmatpush3.bf16.msra.mxu1 %v2401_v47 }
 0x746   : > { %v953_v30 = vsel %vm709_vm2, %v2426_v29, 0.0  ;;  %v965_v31 = vpack.c.bf16 %v2426_v29, %v2426_v29  ;;  %v2428_v36 = vpop.eup %2427  ;;  %2284 = vmatprep.subr.bf16.mxu1 %v2544_v8 }
 0x747   : > { %954 = vadd.xlane.f32.xlu0 %v953_v30  ;;  %v943_v37 = vmul.f32 0.0, %v2428_v36  ;;  %v2430_v54 = vpop.eup %2429 }
 0x748   : > { %2265 = vmatmul.mubr.msk.bf16.vlgmr.msra.gmra.mxu0 %vm709_vm2, %v965_v31  ;;  %v944_v58 = vmul.f32 0.0, %v2430_v54 }
 0x749   : > { %2278 = vmatprep.mubr.msk.bf16.mxu0 %vm2545_vm1, %v2544_v8  ;;  %2275 = vmatpush3.bf16.msra.mxu0 %v2399_v2 }
 0x74a   : > { %2276 = vmatprep.subr.bf16.mxu0 %v2544_v8 }
 0x74b   : > { %957 = vadd.xlane.f32.xlu0 %v956_v32 }
 0x74d   : > { %2277 = vmatpush3.bf16.msra.mxu0 %v2400_v10 }
 0x74e   : > { %2290 = vmatprep.subr.bf16.mxu0 %v2544_v8 }
 0x74f   : > { %948 = vadd.xlane.f32.xlu0 %v947_v33  ;;  %v2046_v33 = vld [vmem:[%s3108_s1 + $0x8] ss:$0 sm:$0xff] }
 0x78a   : > { %v1011_v38 = vpop.f32.mrf.mxu0 }
 0x78b   : > { %v1164_v39 = vadd.f32 %v1011_v38, %v943_v37 }
 0x78c   : > { %v2254_v40 = vpop.f32.mrf.mxu0 }
 0x78e   : > { %v1014_v41 = vpop.f32.mrf.mxu0 }
 0x790   : > { %v2255_v43 = vpop.f32.mrf.mxu0 }
 0x7c4   : > { %v952_v57 = vpop.xlane.xlu1 %951 }
 0x7c5   : > { %v960_v59 = vadd.f32 %v952_v57, %v944_v58 }
 0x7d0   : > { %v955_v44 = vpop.xlane.xlu0 %954 }
 0x7d4   : > { %v958_v46 = vpop.xlane.xlu0 %957 }
 0x7d8   : > { %v949_v48 = vpop.xlane.xlu0 %948 }
 0x7d9   : > { %v959_v49 = vadd.f32 %v949_v48, %v943_v37  ;;  %v2060_v48 = vld [vmem:[%s3108_s1 + $0xc] ss:$0 sm:$0xff] }
 0x7db   : > { %2431 = vrcp.f32 %v959_v49 }
 0x7dc   : > { %2433 = vpow2.f32 %v929_v51 }
 0x7dd   : > { %2435 = vpow2.f32 %v927_v53  ;;  %v2050_v53 = vld [vmem:[%s3108_s1 + $0x9] ss:$0 sm:$0xff] }
 0x7de   : > { %2437 = vrcp.f32 %v960_v59 }
 0x7e8   : > { %v2432_v55 = vpop.eup %2431 }
 0x7e9   : > { %v1172_v56 = vmul.f32 %v2432_v55, %v1164_v39  ;;  %v2434_v60 = vpop.eup %2433  ;;  %v2051_v55 = vld [vmem:[%s3108_s1 + $0xa] ss:$0 sm:$0xff] }
 0x7ea   : > { %v946_v61 = vmul.f32 0.0, %v2434_v60  ;;  %v2436_v62 = vpop.eup %2435 }
 0x7eb   : > { %v945_v0 = vmul.f32 0.0, %v2436_v62  ;;  %v2438_v5 = vpop.eup %2437 }
 0x7ec   : > { %v962_v63 = vadd.f32 %v958_v46, %v946_v61 }
 0x7ed   : > { %v961_v1 = vadd.f32 %v955_v44, %v945_v0 }
 0x7ee   : > { %2439 = vrcp.f32 %v962_v63 }
 0x7ef   : > { %2441 = vrcp.f32 %v961_v1 }
 0x7fb   : > { %v2440_v14 = vpop.eup %2439 }
 0x7fc   : > { %v1060_v3 = vpop.f32.mrf.mxu1  ;;  %v2442_v20 = vpop.eup %2441 }
 0x7fd   : > { %v1165_v4 = vadd.f32 %v1060_v3, %v944_v58 }
 0x7fe   : > { %v2260_v6 = vpop.f32.mrf.mxu1 }
 0x7ff   : > { %v1173_v7 = vmul.f32 %v2438_v5, %v1165_v4  ;;  %v2403_v5 = vld [vmem:[%s3111_s4 + $0x18] sm:$0xff]   ;;  %v2404_v6 = vld [vmem:[%s3111_s4 + $0x10] sm:$0xff]  }
 0x800   : > { %v1063_v9 = vpop.f32.mrf.mxu1 }
 0x801   : > { %1177 = vrot.lane.b32.xlu1 %v1173_v7, %s2552_s21  ;;  %v1381_v7 = vld [vmem:[#allocation2 + $0x1] sm:$0xff]  ;;  %v2062_v9 = vld [vmem:[%s3115_s8] ss:$0 sm:$0xff] }
 0x802   : > { %v2261_v11 = vpop.f32.mrf.mxu1  ;;  %v1387_v10 = vmul.f32 %v2062_v9, %v1381_v7  ;;  %v2077_v7 = vld [vmem:[%s3115_s8 + $0xf] ss:$0 sm:$0xff] }
 0x803   : > { %v2061_v11 = vld [vmem:[%s3108_s1 + $0xd] ss:$0 sm:$0xff] }
 0x804   : > { %v1158_v12 = vpop.f32.mrf.mxu1 }
 0x805   : > { %v1167_v13 = vadd.f32 %v1158_v12, %v946_v61  ;;  %v1389_v12 = vld [vmem:[#allocation2 + $0x2] sm:$0xff] }
 0x806   : > { %v2272_v15 = vpop.f32.mrf.mxu1 }
 0x807   : > { %v1175_v16 = vmul.f32 %v2440_v14, %v1167_v13  ;;  %v2063_v13 = vld [vmem:[%s3115_s8 + $0x1] ss:$0 sm:$0xff]  ;;  %v1388_v14 = vadd.f32 %v2061_v11, %v1387_v10 }
 0x808   : > { %v1109_v17 = vpop.f32.mrf.mxu0  ;;  %v1161_v18 = vpop.f32.mrf.mxu1  ;;  %v1395_v15 = vmul.f32 %v2063_v13, %v1389_v12  ;;  %v2078_v12 = vld [vmem:[%s3115_s8 + $0x10] ss:$0 sm:$0xff] }
 0x809   : > { %v1166_v19 = vadd.f32 %v1109_v17, %v945_v0  ;;  %1185 = vrot.lane.b32.xlu1 %v1175_v16, %s2553_s25  ;;  %v1397_v16 = vld [vmem:[#allocation2 + $0x3] sm:$0xff]  ;;  %v2064_v17 = vld [vmem:[%s3115_s8 + $0x2] ss:$0 sm:$0xff]  ;;  %s2135_s25 = sshll.u32 %s2627_s13, 7 }
 0x80a   : > { %v2266_v21 = vpop.f32.mrf.mxu0  ;;  %v2273_v22 = vpop.f32.mrf.mxu1  ;;  %v1396_v18 = vadd.f32 %v1395_v15, %v1388_v14  ;;  %s1934_s14 = scalar_lea.hbm %s3116_s9, %s2135_s25 }
 0x80b   : > { %v1174_v23 = vmul.f32 %v2442_v20, %v1166_v19  ;;  %v1403_v19 = vmul.f32 %v2064_v17, %v1397_v16  ;;  %v1405_v20 = vld [vmem:[#allocation2 + $0x4] sm:$0xff]  ;;  %v2065_v21 = vld [vmem:[%s3115_s8 + $0x3] ss:$0 sm:$0xff]  ;;  %v2079_v16 = vld [vmem:[%s3115_s8 + $0x11] ss:$0 sm:$0xff] }
 0x80c   : > { %v1112_v24 = vpop.f32.mrf.mxu0 }
 0x80d   : > { %1181 = vrot.lane.b32.xlu0 %v1174_v23, %s2554_s26  ;;  %v1404_v22 = vadd.f32 %v1403_v19, %v1396_v18  ;;  %v1411_v23 = vmul.f32 %v2065_v21, %v1405_v20  ;;  %v1413_v24 = vld [vmem:[#allocation2 + $0x5] sm:$0xff]  ;;  %v2080_v20 = vld [vmem:[%s3115_s8 + $0x12] ss:$0 sm:$0xff]  ;;  %s336_s26 = scalar_lea.vmem [#allocation6], %s2013_s17 }
 0x80e   : > { %v2267_v25 = vpop.f32.mrf.mxu0  ;;  %s1936_s27 = sshll.u32 %s336_s26, 4  ;;  %s1937_s27 = int_to_ptr.vmem [resolvable:$true] %s1936_s27 }
 0x80f   : > { %v2066_v25 = vld [vmem:[%s3115_s8 + $0x4] ss:$0 sm:$0xff]  ;;  %s2477_s21 = scalar_lea.vmem %s1937_s27, 128 }
 0x810   : > { %p2478_p6 = scmp.ne.s32.totalorder %s1937_s27, %s2477_s21 }
 0x812   : > { %p2479_p9 = pnand %p2478_p6, %p2644_p5 }
 0x814   : > { %p2480_p10 = pneg %p2479_p9 }
 0x873   : > { %v1178_v26 = vpop.permute.xlu1 %1177 }
 0x874   : > { %v1188_v27 = vsel %vm709_vm2, %v1172_v56, %v1178_v26  ;;  %v1412_v26 = vadd.f32 %v1411_v23, %v1404_v22 }
 0x87b   : > { %v1186_v29 = vpop.permute.xlu1 %1185 }
 0x87f   : > { %v1182_v28 = vpop.permute.xlu0 %1181 }
 0x880   : > { %v1190_v30 = vsel %vm1189_vm4, %v1188_v27, %v1182_v28  ;;  %v1419_v27 = vmul.f32 %v2066_v25, %v1413_v24  ;;  %v1421_v28 = vld [vmem:[#allocation2 + $0x6] sm:$0xff]  ;;  %v2081_v25 = vld [vmem:[%s3115_s8 + $0x13] ss:$0 sm:$0xff] }
 0x881   : > { %v1192_v31 = vsel %vm1191_vm5, %v1190_v30, %v1186_v29  ;;  %v2067_v29 = vld [vmem:[%s3115_s8 + $0x5] ss:$0 sm:$0xff]  ;;  %v2059_v30 = vld [vmem:[%s3108_s1 + $0xb] ss:$0 sm:$0xff] }
 0x882   : > { %v1193_v32 = vpack.c.bf16 %v1192_v31, %v1192_v31  ;;  %v1420_v31 = vadd.f32 %v1419_v27, %v1412_v26 }
 0x884   : > { %2279 = vmatmul.mubr.msk.bf16.vlgmr.msra.gmra.mxu0 %vm367_vm0, %v1193_v32  ;;  %v1427_v32 = vmul.f32 %v2067_v29, %v1421_v28  ;;  %v2082_v29 = vld [vmem:[%s3115_s8 + $0x14] ss:$0 sm:$0xff] }
 0x885   : > { %2294 = vmatprep.mubr.msk.bf16.mxu0 %vm2545_vm1, %v2544_v8  ;;  %2291 = vmatpush3.bf16.msra.mxu0 %v2403_v5 }
 0x886   : > { %2292 = vmatprep.subr.bf16.mxu0 %v2544_v8 }
 0x889   : > { %2293 = vmatpush3.bf16.msra.mxu0 %v2404_v6 }
 0x88a   : > { %2306 = vmatprep.subr.bf16.mxu0 %v2544_v8 }
 0x944   : > { %v1247_v34 = vpop.f32.mrf.mxu0 }
 0x945   : > { %v1248_v35 = vadd.f32 %v2046_v33, %v1247_v34  ;;  %v1429_v33 = vld [vmem:[#allocation2 + $0x7] sm:$0xff]  ;;  %v2068_v34 = vld [vmem:[%s3115_s8 + $0x6] ss:$0 sm:$0xff] }
 0x946   : > { %v2280_v36 = vpop.f32.mrf.mxu0 }
 0x947   : > { %v2865_v37 = vadd.f32 %v1248_v35, %v2750_v42  ;;  %v2402_v42 = vld [vmem:[%s3112_s5] sm:$0xff]  }
 0x948   : > { %v1250_v38 = vpop.f32.mrf.mxu0  ;;  %2285 = vmatpush3.bf16.msra.mxu1 %v2402_v42  ;;  %v2071_v42 = vld [vmem:[%s3115_s8 + $0x9] ss:$0 sm:$0xff] }
 0x949   : > { %v1256_v39 = vsel %vm367_vm0, %v2865_v37, 0.0  ;;  %2298 = vmatprep.subr.bf16.mxu1 %v2544_v8  ;;  %v1428_v38 = vadd.f32 %v1427_v32, %v1420_v31 }
 0x94a   : > { %1257 = vadd.xlane.f32.xlu1 %v1256_v39  ;;  %v2281_v40 = vpop.f32.mrf.mxu0  ;;  %v1435_v39 = vmul.f32 %v2068_v34, %v1429_v33  ;;  %v2083_v33 = vld [vmem:[%s3115_s8 + $0x15] ss:$0 sm:$0xff] }
 0x9d3   : > { %v1258_v41 = vpop.xlane.xlu1 %1257 }
 0x9d4   : > { %v1259_v43 = vmul.f32 0.03125, %v1258_v41  ;;  %v1437_v41 = vld [vmem:[#allocation2 + $0x8] sm:$0xff] }
 0x9d6   : > { %v1260_v44 = vsub.f32 %v2865_v37, %v1259_v43  ;;  %v2069_v43 = vld [vmem:[%s3115_s8 + $0x7] ss:$0 sm:$0xff] }
 0x9d8   : > { %v1261_v45 = vmul.f32 %v1260_v44, %v1260_v44 }
 0x9da   : > { %v1262_v46 = vsel %vm367_vm0, %v1261_v45, 0.0  ;;  %v1443_v45 = vmul.f32 %v2069_v43, %v1437_v41 }
 0x9db   : > { %1263 = vadd.xlane.f32.xlu0 %v1262_v46  ;;  %v2070_v46 = vld [vmem:[%s3115_s8 + $0x8] ss:$0 sm:$0xff] }
 0x9f1   : > { %1358 = vrot.lane.b32.xlu0 %v2060_v48, %s2546_s28 }
 0xa64   : > { %v1264_v49 = vpop.xlane.xlu0 %1263 }
 0xa65   : > { %v1265_v50 = vmul.f32 0.03125, %v1264_v49 }
 0xa67   : > { %v1266_v51 = vadd.f32 1e-05, %v1265_v50 }
 0xa68   : > { %v1359_v59 = vpop.permute.xlu0 %1358 }
 0xa69   : > { %2443 = vrsqrt.f32 %v1266_v51  ;;  %v2072_v51 = vld [vmem:[%s3115_s8 + $0xa] ss:$0 sm:$0xff] }
 0xa76   : > { %v2444_v52 = vpop.eup %2443 }
 0xa77   : > { %v1268_v54 = vmul.f32 %v2444_v52, %v1260_v44  ;;  %v1436_v44 = vadd.f32 %v1435_v39, %v1428_v38  ;;  %v1565_v39 = vld [vmem:[#allocation2 + $0x18] sm:$0xff] }
 0xa79   : > { %v1273_v56 = vmul.f32 %v2050_v53, %v1268_v54  ;;  %v1444_v47 = vadd.f32 %v1443_v45, %v1436_v44  ;;  %v1573_v44 = vld [vmem:[#allocation2 + $0x19] sm:$0xff]  ;;  %v2086_v45 = vld [vmem:[%s3115_s8 + $0x18] ss:$0 sm:$0xff] }
 0xa7b   : > { %v1278_v57 = vadd.f32 %v2051_v55, %v1273_v56  ;;  %v2073_v55 = vld [vmem:[%s3115_s8 + $0xb] ss:$0 sm:$0xff] }
 0xa7d   : > { %v1292_v58 = vpack.c.bf16 %v1278_v57, %v1278_v57 }
 0xa7f   : > { %2287 = vmatmul.mubr.msk.bf16.vlgmr.msra.gmra.mxu1 %vm367_vm0, %v1292_v58 }
 0xa80   : > { %2302 = vmatprep.mubr.msk.bf16.mxu1 %vm2545_vm1, %v2544_v8 }
 0xb3f   : > { %v1342_v60 = vpop.f32.mrf.mxu1 }
 0xb40   : > { %v1361_v61 = vadd.f32 %v1359_v59, %v1342_v60  ;;  %v1352_v35 = vadd.f32 %v2059_v30, %v1342_v60  ;;  %v2074_v59 = vld [vmem:[%s3115_s8 + $0xc] ss:$0 sm:$0xff] }
 0xb41   : > { %v2288_v62 = vpop.f32.mrf.mxu1 }
 0xb42   : > { %v1362_v63 = vmul.f32 0.5, %v1361_v61 }
 0xb43   : > { %v1345_v0 = vpop.f32.mrf.mxu1 }
 0xb44   : > { %2445 = vtanh.f32 %v1362_v63  ;;  %v2075_v63 = vld [vmem:[%s3115_s8 + $0xd] ss:$0 sm:$0xff] }
 0xb45   : > { %v2289_v1 = vpop.f32.mrf.mxu1 }
 0xb51   : > { %v2446_v2 = vpop.eup %2445 }
 0xb52   : > { %v1364_v3 = vmul.f32 0.5, %v2446_v2 }
 0xb54   : > { %v1365_v4 = vadd.f32 0.5, %v1364_v3  ;;  %v2076_v3 = vld [vmem:[%s3115_s8 + $0xe] ss:$0 sm:$0xff] }
 0xb56   : > { %1367 = vrot.lane.b32.xlu1 %v1365_v4, %s2548_s24  ;;  %s2555_s24 = smov [#allocation6]  }
 0xb57   : > { %s2481_s22 = sshll.u32 %s2555_s24, 4  ;;  %s2482_s22 = int_to_ptr.vmem [resolvable:$false] %s2481_s22 }
 0xb58   : > { %s2483_s13 = scalar_lea.vmem %s2482_s22, 256  ;;  %p2484_p11 = scmp.lt.s32.totalorder %s1937_s27, %s2482_s22 }
 0xb59   : > { %p2485_p12 = scmp.lt.s32.totalorder %s2483_s13, %s2477_s21 }
 0xb5b   : > { %p2486_p13 = por %p2485_p12, %p2484_p11 }
 0xb5d   : > { %p2487_p0 = pnand %p2486_p13, %p2480_p10 }
 0xbc8   : > { %v1368_v36 = vpop.permute.xlu1 %1367 }
 0xbc9   : > { %v1370_v40 = vmul.f32 %v1368_v36, %v1352_v35  ;;  %v2084_v36 = vld [vmem:[%s3115_s8 + $0x16] ss:$0 sm:$0xff] }
 0xbcb   : > { %1376 = vst.msk [vmem:[#allocation2 + $0x10] sm:$0xff] %vm367_vm0, %v1370_v40  ;;  %v2085_v40 = vld [vmem:[%s3115_s8 + $0x17] ss:$0 sm:$0xff] }
 0xbd2   : > { %v1445_v48 = vld [vmem:[#allocation2 + $0x9] sm:$0xff]  ;;  %v1509_v13 = vld [vmem:[#allocation2 + $0x11] sm:$0xff] }
 0xbd3   : > { %v1453_v49 = vld [vmem:[#allocation2 + $0xa] sm:$0xff]  ;;  %v1451_v50 = vmul.f32 %v2070_v46, %v1445_v48  ;;  %v1517_v17 = vld [vmem:[#allocation2 + $0x12] sm:$0xff]  ;;  %v1515_v19 = vmul.f32 %v2078_v12, %v1509_v13  ;;  %v1581_v48 = vld [vmem:[#allocation2 + $0x1a] sm:$0xff] }
 0xbd4   : > { %v1461_v52 = vld [vmem:[#allocation2 + $0xb] sm:$0xff]  ;;  %v1459_v54 = vmul.f32 %v2071_v42, %v1453_v49  ;;  %v1525_v21 = vld [vmem:[#allocation2 + $0x13] sm:$0xff]  ;;  %v1523_v23 = vmul.f32 %v2079_v16, %v1517_v17  ;;  %v1571_v42 = vmul.f32 %v2085_v40, %v1565_v39 }
 0xbd5   : > { %v1452_v53 = vadd.f32 %v1451_v50, %v1444_v47  ;;  %v1469_v56 = vld [vmem:[#allocation2 + $0xc] sm:$0xff]  ;;  %v1467_v58 = vmul.f32 %v2072_v51, %v1461_v52  ;;  %v1533_v24 = vld [vmem:[#allocation2 + $0x14] sm:$0xff]  ;;  %v1531_v26 = vmul.f32 %v2080_v20, %v1525_v21  ;;  %v1579_v51 = vmul.f32 %v2086_v45, %v1573_v44 }
 0xbd6   : > { %v1477_v60 = vld [vmem:[#allocation2 + $0xd] sm:$0xff]  ;;  %v1475_v62 = vmul.f32 %v2073_v55, %v1469_v56  ;;  %v1541_v28 = vld [vmem:[#allocation2 + $0x15] sm:$0xff]  ;;  %v1539_v31 = vmul.f32 %v2081_v25, %v1533_v24 }
 0xbd7   : > { %v1460_v57 = vadd.f32 %v1459_v54, %v1452_v53  ;;  %v1485_v0 = vld [vmem:[#allocation2 + $0xe] sm:$0xff]  ;;  %v1483_v2 = vmul.f32 %v2074_v59, %v1477_v60  ;;  %v1549_v32 = vld [vmem:[#allocation2 + $0x16] sm:$0xff]  ;;  %v1547_v35 = vmul.f32 %v2082_v29, %v1541_v28 }
 0xbd8   : > { %v1493_v4 = vld [vmem:[#allocation2 + $0xf] sm:$0xff]  ;;  %v1491_v6 = vmul.f32 %v2075_v63, %v1485_v0  ;;  %v1557_v38 = vld [vmem:[#allocation2 + $0x17] sm:$0xff]  ;;  %v1555_v43 = vmul.f32 %v2083_v33, %v1549_v32  ;;  %v2410_v32 = vld [vmem:[%s3114_s7 + $0x60] sm:$0xff]  }
 0xbd9   : > { %v1468_v61 = vadd.f32 %v1467_v58, %v1460_v57  ;;  %v1501_v9 = vld [vmem:[#allocation2 + $0x10] sm:$0xff]  ;;  %v1499_v11 = vmul.f32 %v2076_v3, %v1493_v4  ;;  %v1563_v47 = vmul.f32 %v2084_v36, %v1557_v38  ;;  %v2087_v49 = vld [vmem:[%s3115_s8 + $0x19] ss:$0 sm:$0xff]  ;;  %v1589_v52 = vld [vmem:[#allocation2 + $0x1b] sm:$0xff] }
 0xbda   : > { %v1507_v15 = vmul.f32 %v2077_v7, %v1501_v9  ;;  %v2088_v53 = vld [vmem:[%s3115_s8 + $0x1a] ss:$0 sm:$0xff]  ;;  %v1587_v55 = vmul.f32 %v2087_v49, %v1581_v48  ;;  %v1597_v56 = vld [vmem:[#allocation2 + $0x1c] sm:$0xff]  ;;  %v2089_v57 = vld [vmem:[%s3115_s8 + $0x1b] ss:$0 sm:$0xff] }
 0xbdb   : > { %v1476_v1 = vadd.f32 %v1475_v62, %v1468_v61  ;;  %v1595_v59 = vmul.f32 %v2088_v53, %v1589_v52  ;;  %v1605_v60 = vld [vmem:[#allocation2 + $0x1d] sm:$0xff]  ;;  %v2090_v61 = vld [vmem:[%s3115_s8 + $0x1c] ss:$0 sm:$0xff]  ;;  %v1603_v63 = vmul.f32 %v2089_v57, %v1597_v56  ;;  %v2117_v40 = vld [vmem:[%s3108_s1 + $0xf] ss:$0 sm:$0xff] }
 0xbdc   : > { %v1613_v0 = vld [vmem:[#allocation2 + $0x1e] sm:$0xff]  ;;  %v1611_v3 = vmul.f32 %v2090_v61, %v1605_v60  ;;  %v2119_v48 = vld [vmem:[#allocation3 + $0x1] ss:$0 sm:$0xff]  ;;  %v2123_v56 = vld [vmem:[%s3108_s1 + $0x11] ss:$0 sm:$0xff] }
 0xbdd   : > { %v1484_v5 = vadd.f32 %v1483_v2, %v1476_v1  ;;  %v2091_v1 = vld [vmem:[%s3115_s8 + $0x1d] ss:$0 sm:$0xff]  ;;  %v1621_v4 = vld [vmem:[#allocation2 + $0x1f] sm:$0xff] }
 0xbde   : > { %v1619_v7 = vmul.f32 %v2091_v1, %v1613_v0  ;;  %v2405_v28 = vld [vmem:[%s3113_s6 + $0x18] sm:$0xff]  }
 0xbdf   : > { %v1492_v10 = vadd.f32 %v1491_v6, %v1484_v5  ;;  %v2092_v5 = vld [vmem:[%s3115_s8 + $0x1e] ss:$0 sm:$0xff]  ;;  %2299 = vmatpush3.bf16.msra.mxu1 %v2405_v28 }
 0xbe0   : > { %2300 = vmatprep.subr.bf16.mxu1 %v2544_v8  ;;  %v2407_v29 = vld [vmem:[%s3114_s7 + $0x78] sm:$0xff]  }
 0xbe1   : > { %v1500_v14 = vadd.f32 %v1499_v11, %v1492_v10  ;;  %v1627_v10 = vmul.f32 %v2092_v5, %v1621_v4  ;;  %v2411_v33 = vld [vmem:[%s3114_s7 + $0x58] sm:$0xff]  }
 0xbe3   : > { %v1508_v18 = vadd.f32 %v1507_v15, %v1500_v14  ;;  %v2093_v15 = vld [vmem:[%s3108_s1 + $0xe] ss:$0 sm:$0xff] }
 0xbe5   : > { %v1516_v22 = vadd.f32 %v1515_v19, %v1508_v18 }
 0xbe7   : > { %v1524_v27 = vadd.f32 %v1523_v23, %v1516_v22 }
 0xbe9   : > { %v1532_v30 = vadd.f32 %v1531_v26, %v1524_v27 }
 0xbeb   : > { %v1540_v34 = vadd.f32 %v1539_v31, %v1532_v30  ;;  %v2408_v30 = vld [vmem:[%s3114_s7 + $0x70] sm:$0xff]   ;;  %v2409_v31 = vld [vmem:[%s3114_s7 + $0x68] sm:$0xff]  }
 0xbed   : > { %v1548_v41 = vadd.f32 %v1547_v35, %v1540_v34  ;;  %v2412_v34 = vld [vmem:[%s3114_s7 + $0x50] sm:$0xff]  }
 0xbef   : > { %v1556_v46 = vadd.f32 %v1555_v43, %v1548_v41  ;;  %v2118_v43 = vld [vmem:[%s3108_s1 + $0x10] ss:$0 sm:$0xff] }
 0xbf1   : > { %v1564_v50 = vadd.f32 %v1563_v47, %v1556_v46  ;;  %v2413_v47 = vld [vmem:[%s3114_s7 + $0x48] sm:$0xff]  }
 0xbf3   : > { %v1572_v54 = vadd.f32 %v1571_v42, %v1564_v50  ;;  %v2414_v42 = vld [vmem:[%s3114_s7 + $0x40] sm:$0xff]  }
 0xbf5   : > { %v1580_v58 = vadd.f32 %v1579_v51, %v1572_v54 }
 0xbf7   : > { %v1588_v62 = vadd.f32 %v1587_v55, %v1580_v58 }
 0xbf9   : > { %v1596_v2 = vadd.f32 %v1595_v59, %v1588_v62 }
 0xbfb   : > { %v1604_v6 = vadd.f32 %v1603_v63, %v1596_v2 }
 0xbfd   : > { %v1612_v9 = vadd.f32 %v1611_v3, %v1604_v6 }
 0xbff   : > { %v1620_v11 = vadd.f32 %v1619_v7, %v1612_v9 }
 0xc01   : > { %v1628_v12 = vadd.f32 %v1627_v10, %v1620_v11  ;;  %v2132_v10 = vld [vmem:[%s3108_s1 + $0x12] ss:$0 sm:$0xff] }
 0xc03   : > { %v1629_v13 = vmax.f32 %v1628_v12, 0.0  ;;  %v2133_v12 = vld [vmem:[%s3108_s1 + $0x13] ss:$0 sm:$0xff] }
 0xc05   : > { %v1630_v14 = vpack.c.bf16 %v1629_v13, %v1629_v13 }
 0xc07   : > { %2295 = vmatmul.mubr.msk.bf16.vlgmr.msra.gmra.mxu0 %vm367_vm0, %v1630_v14 }
 0xc08   : > { %2322 = vmatprep.mubr.msk.bf16.mxu0 %vm2545_vm1, %v2544_v8  ;;  %2307 = vmatpush3.bf16.msra.mxu0 %v2407_v29 }
 0xc09   : > { %2308 = vmatprep.subr.bf16.mxu0 %v2544_v8 }
 0xc0c   : > { %2309 = vmatpush3.bf16.msra.mxu0 %v2408_v30 }
 0xc0d   : > { %2310 = vmatprep.subr.bf16.mxu0 %v2544_v8 }
 0xc10   : > { %2311 = vmatpush3.bf16.msra.mxu0 %v2409_v31 }
 0xc11   : > { %2312 = vmatprep.subr.bf16.mxu0 %v2544_v8 }
 0xc14   : > { %2313 = vmatpush3.bf16.msra.mxu0 %v2410_v32 }
 0xc15   : > { %2314 = vmatprep.subr.bf16.mxu0 %v2544_v8 }
 0xc18   : > { %2315 = vmatpush3.bf16.msra.mxu0 %v2411_v33 }
 0xc19   : > { %2316 = vmatprep.subr.bf16.mxu0 %v2544_v8 }
 0xc1c   : > { %2317 = vmatpush3.bf16.msra.mxu0 %v2412_v34 }
 0xc1d   : > { %2318 = vmatprep.subr.bf16.mxu0 %v2544_v8 }
 0xc20   : > { %2319 = vmatpush3.bf16.msra.mxu0 %v2413_v47 }
 0xc21   : > { %2320 = vmatprep.subr.bf16.mxu0 %v2544_v8 }
 0xc24   : > { %2321 = vmatpush3.bf16.msra.mxu0 %v2414_v42 }
 0xcc7   : > { %v1684_v16 = vpop.f32.mrf.mxu0 }
 0xcc8   : > { %v1685_v17 = vadd.f32 %v2093_v15, %v1684_v16 }
 0xcc9   : > { %v2296_v18 = vpop.f32.mrf.mxu0 }
 0xcca   : > { %v3009_v19 = vadd.f32 %v1685_v17, %v2865_v37  ;;  %v2406_v37 = vld [vmem:[%s3113_s6 + $0x10] sm:$0xff]  }
 0xccb   : > { %v1687_v20 = vpop.f32.mrf.mxu0  ;;  %2301 = vmatpush3.bf16.msra.mxu1 %v2406_v37 }
 0xccc   : > { %v1717_v21 = vsel %vm367_vm0, %v3009_v19, 0.0 }
 0xccd   : > { %1718 = vadd.xlane.f32.xlu1 %v1717_v21  ;;  %v2297_v22 = vpop.f32.mrf.mxu0 }
 0xd56   : > { %v1719_v23 = vpop.xlane.xlu1 %1718 }
 0xd57   : > { %v1720_v24 = vmul.f32 0.03125, %v1719_v23 }
 0xd59   : > { %v1721_v25 = vsub.f32 %v3009_v19, %v1720_v24 }
 0xd5b   : > { %v1722_v26 = vmul.f32 %v1721_v25, %v1721_v25 }
 0xd5d   : > { %v1723_v27 = vsel %vm367_vm0, %v1722_v26, 0.0 }
 0xd5e   : > { %1724 = vadd.xlane.f32.xlu0 %v1723_v27 }
 0xde7   : > { %v1725_v35 = vpop.xlane.xlu0 %1724 }
 0xde8   : > { %v1726_v36 = vmul.f32 0.03125, %v1725_v35 }
 0xdea   : > { %v1727_v38 = vadd.f32 1e-05, %v1726_v36 }
 0xdec   : > { %2447 = vrsqrt.f32 %v1727_v38 }
 0xdf9   : > { %v2448_v39 = vpop.eup %2447 }
 0xdfa   : > { %v1729_v41 = vmul.f32 %v2448_v39, %v1721_v25 }
 0xdfc   : > { %v1734_v44 = vmul.f32 %v2117_v40, %v1729_v41 }
 0xdfe   : > { %v1739_v45 = vadd.f32 %v2118_v43, %v1734_v44 }
 0xe00   : > { %v1740_v46 = vpack.c.bf16 %v1739_v45, %v1739_v45 }
 0xe02   : > { %2303 = vmatmul.mubr.msk.bf16.vlgmr.msra.gmra.mxu1 %vm367_vm0, %v1740_v46 }
 0xec2   : > { %v1794_v49 = vpop.f32.mrf.mxu1 }
 0xec3   : > { %v1795_v50 = vadd.f32 %v2119_v48, %v1794_v49 }
 0xec4   : > { %v2304_v51 = vpop.f32.mrf.mxu1 }
 0xec5   : > { %v1800_v52 = vmax.f32 %v1795_v50, 0.0 }
 0xec6   : > { %v1797_v53 = vpop.f32.mrf.mxu1 }
 0xec7   : > { %v1801_v54 = vpack.c.bf16 %v1800_v52, %v1800_v52 }
 0xec8   : > { %v2305_v55 = vpop.f32.mrf.mxu1 }
 0xec9   : > { %2323 = vmatmul.mubr.bf16.vlgmr.msra.gmra.mxu0 %v1801_v54 }
 0xf89   : > { %v1888_v57 = vpop.f32.mrf.mxu0 }
 0xf8a   : > { %v1889_v8 = vadd.f32 %v2123_v56, %v1888_v57 }
 0xf8b   : > { %v2324_v58 = vpop.f32.mrf.mxu0 }
 0xf8c   : > { %v1894_v59 = vmul.f32 0.5, %v1889_v8 }
 0xf8d   : > { %v1891_v60 = vpop.f32.mrf.mxu0 }
 0xf8e   : > { %v1895_v61 = vadd.f32 %v1894_v59, %v3009_v19 }
 0xf8f   : > { %v2325_v62 = vpop.f32.mrf.mxu0 }
 0xf90   : > { %v1898_v63 = vsel %vm367_vm0, %v1895_v61, 0.0 }
 0xf91   : > { %1899 = vadd.xlane.f32.xlu0 %v1898_v63 }
0x101a   : > { %v1900_v0 = vpop.xlane.xlu0 %1899 }
0x101b   : > { %v1901_v1 = vmul.f32 0.03125, %v1900_v0 }
0x101d   : > { %v1902_v2 = vsub.f32 %v1895_v61, %v1901_v1 }
0x101f   : > { %v1903_v3 = vmul.f32 %v1902_v2, %v1902_v2 }
0x1021   : > { %v1904_v4 = vsel %vm367_vm0, %v1903_v3, 0.0 }
0x1022   : > { %1905 = vadd.xlane.f32.xlu1 %v1904_v4 }
0x10ab   : > { %v1906_v5 = vpop.xlane.xlu1 %1905 }
0x10ac   : > { %v1907_v6 = vmul.f32 0.03125, %v1906_v5 }
0x10ae   : > { %v1908_v7 = vadd.f32 1e-05, %v1907_v6 }
0x10b0   : > { %2449 = vrsqrt.f32 %v1908_v7 }
0x10bd   : > { %v2450_v9 = vpop.eup %2449 }
0x10be   : > { %v1910_v11 = vmul.f32 %v2450_v9, %v1902_v2 }
0x10c0   : > { %v1915_v13 = vmul.f32 %v2132_v10, %v1910_v11 }
0x10c2   : > { %v1920_v14 = vadd.f32 %v2133_v12, %v1915_v13 }
0x10c4   : > { %1921 = vst.msk [vmem:[%s336_s26] sm:$0xff] %vm367_vm0, %v1920_v14 }
0x10c5   : > { %2490 = shalt.err (!%p2487_p0)
}
0x10c6   : > { %s2491_s17 = scalar_lea.hbm %s1934_s14, 128  ;;  %s2495_s25 = scalar_lea.hbm %s3116_s9, 256 }
0x10c7   : > { %p2492_p1 = scmp.ne.s32.totalorder %s1934_s14, %s2491_s17  ;;  %p2496_p4 = scmp.lt.s32.totalorder %s1934_s14, %s3116_s9 }
0x10c8   : > { %p2497_p7 = scmp.lt.s32.totalorder %s2495_s25, %s2491_s17 }
0x10c9   : > { %p2493_p2 = pnand %p2492_p1, %p2644_p5 }
0x10ca   : > { %p2498_p8 = por %p2497_p7, %p2496_p4 }
0x10cb   : > { %p2494_p3 = pneg %p2493_p2 }
0x10cd   : > { %p2499_p6 = pnand %p2498_p8, %p2494_p3 }
0x10cf   : > { %2502 = shalt.err (!%p2499_p6)
}
0x10d0   : > { %2330 = dma.vmem_to_hbm [thread:$0]  (%p2644_p5), %s1937_s27, 128, %s1934_s14, %s1923_s0  }
0x10d1 PF: > { %p2342_p9 = scmp.ge.s32.totalorder %s2541_s12, 2  ;;  %s1948_s28 = sand.u32 1, %s2529_s30  }
0x10d2   : > { %p3122_p10 = scmp.ne.s32.totalorder %s3119_s20, 0  ;;  %s1949_s21 = scalar_lea.sflag [#allocation5], %s1948_s28 }
0x10d4   : > { %p2337_p11 = pnand %p2342_p9, %p3122_p10 }
0x10d6   : > { %p2338_p12 = pneg %p2337_p11 }
0x10d8   : > { %2524 = dma.done.wait (%p2338_p12), %s1949_s21, 128  }
0x10d9   : > { %2526 = vsyncadd (%p2338_p12), %s1949_s21, 4294967168  ;;  %p20_p13 = scmp.ge.s32.totalorder %s2631_s15, 4   ;;  %s3123_s30 = smov %s2533_s10 }
0x10da   : > { %s3124_s10 = smov %s2537_s11  ;;  %s3125_s11 = smov %s2642_s18 }
0x10db   : > { %s3126_s12 = smov %s2631_s15  ;;  %22 = sbr.rel (!%p20_p13) target bundleno = 6 (0x6), region = 99 }
0x10e0   :  { %1954 = vsyncpa [#allocation4], 1 }
0x10e1   :  { %1956 = vsyncpa [#allocation4 + $0x1], 1 }
0x10e2   :  { %1957 = vsyncpa [#allocation5], 1 }
0x10e3   :  { %1959 = vsyncpa [#allocation5 + $0x1], 1 }

// kernel: tpu_custom_call.1
= control target key start
LH: loop header
LB: loop body
LE: loop exit
PB: predicated region body
PF: predicated region fallthrough
CT: control target
= control target key end

     0   :  { %s3107_s0 = inlined_call_operand.vmem [shape: f32[2,8,32], index: 0, kind: input, shape index: {}]   ;;  %s3108_s1 = inlined_call_operand.vmem [shape: f32[20,32], index: 1, kind: input, shape index: {}]   ;;  %s3109_s2 = inlined_call_operand.hbm [shape: f32[2,128], index: 2, kind: input, shape index: {}]   ;;  %s3110_s3 = inlined_call_operand.vmem [shape: bf16[32,96], index: 3, kind: input, shape index: {}]   ;;  %s3111_s4 = inlined_call_operand.vmem [shape: bf16[2,32,32], index: 4, kind: input, shape index: {}]   ;;  %s3112_s5 = inlined_call_operand.vmem [shape: bf16[32,64], index: 5, kind: input, shape index: {}]   ;;  %s3113_s6 = inlined_call_operand.vmem [shape: bf16[2,32,128], index: 6, kind: input, shape index: {}]   ;;  %s3114_s7 = inlined_call_operand.vmem [shape: bf16[2,128,32], index: 7, kind: input, shape index: {}]   ;;  %s3115_s8 = inlined_call_operand.vmem [shape: f32[31,32], index: 8, kind: input, shape index: {}]   ;;  %s3116_s9 = inlined_call_operand.hbm [shape: f32[2,8,32], index: 9, kind: output, shape index: {}]  }
   0x1   :  { %3117 = sst [smem:[#allocation9_spill]] %s3107_s0 }
   0x2   :  { %14 = vsyncpa [#allocation4], 0 }
   0x3   :  { %15 = vsyncpa [#allocation5], 0 }
   0x4   :  { %17 = vsyncpa [#allocation5 + $0x1], 0  ;;  %s2606_s30 = smov 0   ;;  %s2608_s10 = smov 0  }
   0x5   :  { %s2610_s11 = smov 0   ;;  %s2612_s12 = smov 0  }
   0x6 LB: > { %s2627_s13 = sadd.s32 4294967295, %s2541_s12   ;;  %s2007_s14 = sadd.s32 4294967294, %s2541_s12   ;;  %s2541_s12 = sphi %s2612_s12, %s3126_s12   ;;  %s2537_s11 = sphi %s2610_s11, %s3125_s11   ;;  %s2533_s10 = sphi %s2608_s10, %s3124_s10   ;;  %s2529_s30 = sphi %s2606_s30, %s3123_s30  }
   0x7   : > { %s2631_s15 = sadd.s32 1, %s2541_s12   ;;  %s224_s16 = sadd.s32 1, %s2537_s11 }
   0x8   : > { %s221_s17 = ssub.s32 %s2541_s12, %s2631_s15  ;;  %p234_p0 = scmp.ne.s32.totalorder %s2537_s11, %s2533_s10 }
   0x9   : > { %p222_p1 = scmp.eq.s32.totalorder %s221_s17, 0  ;;  %p235_p2 = scmp.eq.s32.totalorder %s2627_s13, 1 }
   0xa   : > { %p240_p3 = scmp.ne.s32.totalorder %s2533_s10, %s2529_s30  ;;  %p241_p4 = scmp.eq.s32.totalorder %s2007_s14, 1 }
   0xb   : > { %s2642_s18 = scalar_select %p222_p1, %s2537_s11, %s224_s16  }
   0xc   : > { %p2644_p5 = por %p235_p2, %p234_p0  ;;  %p2648_p6 = por %p241_p4, %p240_p3 }
   0xd   : > { %p2008_p7 = scmp.ge.s32.totalorder %s2541_s12, 1  ;;  %p248_p8 = scmp.lt.s32.totalorder %s2541_s12, 3 }
   0xe   : > { %s3119_s20 = scalar_select %p2648_p6, 1, 0 }
   0xf   : > { %p2340_p9 = scmp.eq.s32.totalorder %s2627_s13, 0  ;;  %p2655_p10 = pnand %p2008_p7, %p248_p8 }
  0x10   : > { %s2543_s22 = smov [#allocation3]  }
  0x11   : > { %s264_s23 = sshll.u32 %s2543_s22, 4  ;;  %p2332_p11 = pneg %p2655_p10  ;;  %s265_s23 = int_to_ptr.vmem [resolvable:$true] %s264_s23 }
  0x12   : > { %s2462_s24 = scalar_lea.vmem %s265_s23, 32  ;;  %p2470_p3 = scmp.lt.s32.totalorder %s265_s23, %s265_s23 }
  0x13   : > { %p2333_p12 = pnand %p2340_p9, %p2332_p11  ;;  %p2463_p0 = scmp.ne.s32.totalorder %s265_s23, %s2462_s24 }
  0x14   : > { %p2471_p4 = scmp.lt.s32.totalorder %s2462_s24, %s2462_s24 }
  0x15   : > { %p2453_p13 = pneg %p2333_p12 }
  0x16   : > { %p2472_p6 = por %p2471_p4, %p2470_p3 }
  0x17   : > { %p2465_p1 = pnand %p2463_p0, %p2453_p13 }
  0x19   : > { %p2466_p2 = pneg %p2465_p1 }
  0x1b   : > { %p2473_p7 = pnand %p2472_p6, %p2466_p2 }
  0x1d   : > { %2476 = shalt.err (!%p2473_p7)
}
  0x1e   : > { %2335 = dma.hbm_to_vmem [thread:$0]  (!%p2333_p12), %s3109_s2, 32, %s265_s23, [#allocation4]  }
  0x1f   : > { %302 = sbr.rel (%p2655_p10) target bundleno = 4305 (0x10d1), region = 56 }
  0x24   : > { %2520 = dma.done.wait (%p2340_p9), [#allocation4], 32  }
  0x25   : > { %2522 = vsyncadd (%p2340_p9), [#allocation4], 4294967264  ;;  %p337_p8 = scmp.lt.s32.totalorder %s2627_s13, 1  ;;  %s3121_s0 = sld [smem:[#allocation9_spill]]  ;;  %vm367_vm0 = vcmask 261120   ;;  %v2387_v7 = vld [vmem:[%s3113_s6 + $0x8] sm:$0xff]  }
  0x26   : > { %v2544_v8 = vmov 0.0   ;;  %vm2545_vm1 = vmmov 0   ;;  %v2388_v9 = vld [vmem:[%s3113_s6] sm:$0xff]   ;;  %v2389_v19 = vld [vmem:[%s3114_s7 + $0x38] sm:$0xff]   ;;  %v2390_v21 = vld [vmem:[%s3114_s7 + $0x30] sm:$0xff]   ;;  %s2547_s21 = smov 120  }
  0x27   : > { %s338_s27 = scalar_select %p337_p8, %s2627_s13, 1  ;;  %2190 = vmatprep.subr.bf16.mxu1 %v2544_v8  ;;  %1371 = vst.msk [vmem:[#allocation2] sm:$0xff] %vm367_vm0, %v2544_v8  ;;  %1372 = vst.msk [vmem:[#allocation2 + $0x8] sm:$0xff] %vm367_vm0, %v2544_v8  ;;  %2194 = vmatprep.mubr.msk.bf16.mxu1 %vm2545_vm1, %v2544_v8  ;;  %v2015_v14 = vld [vmem:[%s3108_s1] ss:$0 sm:$0xff]  ;;  %v2391_v22 = vld [vmem:[%s3114_s7 + $0x28] sm:$0xff]  }
  0x28   : > { %1373 = vst.msk [vmem:[#allocation2 + $0x18] sm:$0xff] %vm367_vm0, %v2544_v8  ;;  %2191 = vmatpush3.bf16.msra.mxu1 %v2387_v7  ;;  %2226 = vmatprep.subr.bf16.mxu0 %v2544_v8  ;;  %v2016_v16 = vld [vmem:[%s3108_s1 + $0x1] ss:$0 sm:$0xff]  ;;  %v2393_v24 = vld [vmem:[%s3114_s7 + $0x18] sm:$0xff]   ;;  %v2394_v25 = vld [vmem:[%s3114_s7 + $0x10] sm:$0xff]   ;;  %s2548_s24 = smov 96  }
  0x29   : > { %s2014_s28 = sshll.u32 %s338_s27, 3  ;;  %2192 = vmatprep.subr.bf16.mxu1 %v2544_v8  ;;  %2228 = vmatprep.mubr.msk.bf16.mxu0 %vm2545_vm1, %v2544_v8  ;;  %v2392_v23 = vld [vmem:[%s3114_s7 + $0x20] sm:$0xff]   ;;  %v2395_v26 = vld [vmem:[%s3114_s7 + $0x8] sm:$0xff]   ;;  %s2549_s25 = smov 112   ;;  %vm709_vm2 = vcmask 64512   ;;  %vm973_vm3 = vcmask 1043456  }
  0x2a   : > { %v2396_v27 = vld [vmem:[%s3114_s7] sm:$0xff]   ;;  %v2017_v28 = vld [vmem:[#allocation3] ss:$0 sm:$0xff]  ;;  %s2550_s26 = smov 104   ;;  %s2551_s14 = smov 64   ;;  %vm1189_vm4 = vcmask 130048  }
  0x2b   : > { %s340_s16 = scalar_lea.vmem %s3121_s0, %s2014_s28  ;;  %v2021_v36 = vld [vmem:[%s3108_s1 + $0x2] ss:$0 sm:$0xff]  ;;  %v2397_v50 = vld [vmem:[%s3110_s3 + $0x8] sm:$0xff]   ;;  %v2036_v52 = vld [vmem:[%s3108_s1 + $0x6] ss:$0 sm:$0xff]  ;;  %s2546_s28 = smov 32  }
  0x2c   : > { %v2677_v0 = vld [vmem:[%s340_s16] sm:$0xff]  ;;  %2193 = vmatpush3.bf16.msra.mxu1 %v2388_v9  ;;  %vm1191_vm5 = vcmask 195584   ;;  %vm1374_vm6 = vcmask 260096   ;;  %s334_s16 = sand.u32 1, %s2533_s10  }
  0x2d   : > { %v368_v1 = vsel %vm367_vm0, %v2677_v0, 0.0  ;;  %2198 = vmatprep.subr.bf16.mxu1 %v2544_v8  ;;  %v2398_v51 = vld [vmem:[%s3110_s3] sm:$0xff]   ;;  %1375 = vst.msk [vmem:[#allocation2 + $0x20] sm:$0x7f] %vm1374_vm6, %v2544_v8  ;;  %s2013_s17 = sshll.u32 %s334_s16, 3  ;;  %s1923_s0 = scalar_lea.sflag [#allocation5], %s334_s16 }
  0x2e   : > { %369 = vadd.xlane.f32.xlu0 %v368_v1  ;;  %v2030_v57 = vld [vmem:[%s3108_s1 + $0x3] ss:$0 sm:$0xff]  ;;  %v2031_v59 = vld [vmem:[%s3108_s1 + $0x4] ss:$0 sm:$0xff] }
  0xb7   : > { %v370_v2 = vpop.xlane.xlu0 %369 }
  0xb8   : > { %v372_v3 = vmul.f32 0.03125, %v370_v2 }
  0xba   : > { %v373_v4 = vsub.f32 %v2677_v0, %v372_v3 }
  0xbc   : > { %v374_v5 = vmul.f32 %v373_v4, %v373_v4 }
  0xbe   : > { %v375_v6 = vsel %vm367_vm0, %v374_v5, 0.0 }
  0xbf   : > { %376 = vadd.xlane.f32.xlu0 %v375_v6 }
  0xd5   : > { %651 = vrot.lane.b32.xlu0 %v2036_v52, %s2546_s28 }
 0x148   : > { %v377_v10 = vpop.xlane.xlu0 %376 }
 0x149   : > { %v378_v11 = vmul.f32 0.03125, %v377_v10 }
 0x14b   : > { %v379_v12 = vadd.f32 1e-05, %v378_v11 }
 0x14c   : > { %v652_v63 = vpop.permute.xlu0 %651 }
 0x14d   : > { %2415 = vrsqrt.f32 %v379_v12 }
 0x15a   : > { %v2416_v13 = vpop.eup %2415 }
 0x15b   : > { %v381_v15 = vmul.f32 %v2416_v13, %v373_v4  ;;  %v2035_v4 = vld [vmem:[%s3108_s1 + $0x5] ss:$0 sm:$0xff] }
 0x15d   : > { %v386_v17 = vmul.f32 %v2015_v14, %v381_v15 }
 0x15f   : > { %v391_v18 = vadd.f32 %v2016_v16, %v386_v17 }
 0x161   : > { %v392_v20 = vpack.c.bf16 %v391_v18, %v391_v18  ;;  %v2037_v18 = vld [vmem:[%s3108_s1 + $0x7] ss:$0 sm:$0xff] }
 0x163   : > { %2195 = vmatmul.mubr.msk.bf16.vlgmr.msra.gmra.mxu1 %vm367_vm0, %v392_v20 }
 0x164   : > { %2199 = vmatpush3.bf16.msra.mxu1 %v2389_v19  ;;  %2214 = vmatprep.mubr.msk.bf16.mxu1 %vm2545_vm1, %v2544_v8 }
 0x165   : > { %2200 = vmatprep.subr.bf16.mxu1 %v2544_v8 }
 0x168   : > { %2201 = vmatpush3.bf16.msra.mxu1 %v2390_v21 }
 0x169   : > { %2202 = vmatprep.subr.bf16.mxu1 %v2544_v8 }
 0x16c   : > { %2203 = vmatpush3.bf16.msra.mxu1 %v2391_v22 }
 0x16d   : > { %2204 = vmatprep.subr.bf16.mxu1 %v2544_v8 }
 0x170   : > { %2205 = vmatpush3.bf16.msra.mxu1 %v2392_v23 }
 0x171   : > { %2206 = vmatprep.subr.bf16.mxu1 %v2544_v8 }
 0x174   : > { %2207 = vmatpush3.bf16.msra.mxu1 %v2393_v24 }
 0x175   : > { %2208 = vmatprep.subr.bf16.mxu1 %v2544_v8 }
 0x178   : > { %2209 = vmatpush3.bf16.msra.mxu1 %v2394_v25 }
 0x179   : > { %2210 = vmatprep.subr.bf16.mxu1 %v2544_v8 }
 0x17c   : > { %2211 = vmatpush3.bf16.msra.mxu1 %v2395_v26 }
 0x17d   : > { %2212 = vmatprep.subr.bf16.mxu1 %v2544_v8 }
 0x180   : > { %2213 = vmatpush3.bf16.msra.mxu1 %v2396_v27 }
 0x181   : > { %2218 = vmatprep.subr.bf16.mxu1 %v2544_v8 }
 0x223   : > { %v446_v29 = vpop.f32.mrf.mxu1 }
 0x224   : > { %v447_v30 = vadd.f32 %v2017_v28, %v446_v29 }
 0x225   : > { %v2196_v31 = vpop.f32.mrf.mxu1 }
 0x226   : > { %v452_v32 = vmax.f32 %v447_v30, 0.0 }
 0x227   : > { %v449_v33 = vpop.f32.mrf.mxu1 }
 0x228   : > { %v453_v34 = vpack.c.bf16 %v452_v32, %v452_v32 }
 0x229   : > { %v2197_v35 = vpop.f32.mrf.mxu1 }
 0x22a   : > { %2215 = vmatmul.mubr.bf16.vlgmr.msra.gmra.mxu1 %v453_v34 }
 0x22b   : > { %2222 = vmatprep.mubr.msk.bf16.mxu1 %vm2545_vm1, %v2544_v8  ;;  %2219 = vmatpush3.bf16.msra.mxu1 %v2397_v50 }
 0x22c   : > { %2220 = vmatprep.subr.bf16.mxu1 %v2544_v8 }
 0x22f   : > { %2221 = vmatpush3.bf16.msra.mxu1 %v2398_v51 }
 0x230   : > { %2244 = vmatprep.subr.bf16.mxu1 %v2544_v8 }
 0x2ea   : > { %v540_v37 = vpop.f32.mrf.mxu1 }
 0x2eb   : > { %v541_v38 = vadd.f32 %v2021_v36, %v540_v37 }
 0x2ec   : > { %v2216_v39 = vpop.f32.mrf.mxu1 }
 0x2ed   : > { %v546_v40 = vmul.f32 0.5, %v541_v38 }
 0x2ee   : > { %v543_v41 = vpop.f32.mrf.mxu1 }
 0x2ef   : > { %v2750_v42 = vadd.f32 %v546_v40, %v2677_v0 }
 0x2f0   : > { %v2217_v43 = vpop.f32.mrf.mxu1 }
 0x2f1   : > { %v550_v44 = vsel %vm367_vm0, %v2750_v42, 0.0 }
 0x2f2   : > { %551 = vadd.xlane.f32.xlu1 %v550_v44 }
 0x37b   : > { %v552_v45 = vpop.xlane.xlu1 %551 }
 0x37c   : > { %v553_v46 = vmul.f32 0.03125, %v552_v45 }
 0x37e   : > { %v554_v47 = vsub.f32 %v2750_v42, %v553_v46 }
 0x380   : > { %v555_v48 = vmul.f32 %v554_v47, %v554_v47 }
 0x382   : > { %v556_v49 = vsel %vm367_vm0, %v555_v48, 0.0 }
 0x383   : > { %557 = vadd.xlane.f32.xlu1 %v556_v49 }
 0x40c   : > { %v558_v53 = vpop.xlane.xlu1 %557 }
 0x40d   : > { %v559_v54 = vmul.f32 0.03125, %v558_v53 }
 0x40f   : > { %v560_v55 = vadd.f32 1e-05, %v559_v54 }
 0x411   : > { %2417 = vrsqrt.f32 %v560_v55 }
 0x41e   : > { %v2418_v56 = vpop.eup %2417 }
 0x41f   : > { %v562_v58 = vmul.f32 %v2418_v56, %v554_v47 }
 0x421   : > { %v567_v60 = vmul.f32 %v2030_v57, %v562_v58 }
 0x423   : > { %v572_v61 = vadd.f32 %v2031_v59, %v567_v60 }
 0x425   : > { %v585_v62 = vpack.c.bf16 %v572_v61, %v572_v61 }
 0x427   : > { %2223 = vmatmul.mubr.msk.bf16.vlgmr.msra.gmra.mxu1 %vm367_vm0, %v585_v62 }
 0x428   : > { %2246 = vmatprep.mubr.msk.bf16.mxu1 %vm2545_vm1, %v2544_v8 }
 0x4e7   : > { %v635_v0 = vpop.f32.mrf.mxu1 }
 0x4e8   : > { %v654_v1 = vadd.f32 %v652_v63, %v635_v0  ;;  %v645_v7 = vadd.f32 %v2035_v4, %v635_v0 }
 0x4e9   : > { %v2224_v2 = vpop.f32.mrf.mxu1 }
 0x4ea   : > { %679 = vrot.lane.b32.xlu1 %v654_v1, %s2547_s21  ;;  %v688_v3 = vpack.c.bf16 %v654_v1, %v654_v1  ;;  %v674_v17 = vpack.c.bf16 %v645_v7, %v645_v7 }
 0x4eb   : > { %v638_v5 = vpop.f32.mrf.mxu1 }
 0x4ec   : > { %707 = vrot.lane.b32.xlu0 %v688_v3, %s2548_s24 }
 0x4ed   : > { %v2225_v6 = vpop.f32.mrf.mxu1 }
 0x4ee   : > { %682 = vrot.lane.b32.xlu1 %v654_v1, %s2549_s25 }
 0x4f0   : > { %665 = vrot.lane.b32.xlu0 %v645_v7, %s2547_s21 }
 0x4f2   : > { %685 = vrot.lane.b32.xlu1 %v654_v1, %s2550_s26 }
 0x55c   : > { %v680_v9 = vpop.permute.xlu1 %679 }
 0x55d   : > { %v689_v10 = vpack.c.bf16 %v680_v9, %v680_v9 }
 0x55e   : > { %v708_v11 = vpop.permute.xlu0 %707 }
 0x55f   : > { %757 = vrot.lane.b32.xlu1 %v689_v10, %s2548_s24  ;;  %v714_v12 = vsel %vm709_vm2, %v708_v11, 0 }
 0x560   : > { %v683_v13 = vpop.permute.xlu1 %682  ;;  %2227 = vmatpush3.bf16.xpose.msra.mxu0 %v714_v12 }
 0x561   : > { %v690_v14 = vpack.c.bf16 %v683_v13, %v683_v13  ;;  %2232 = vmatprep.subr.bf16.mxu0 %v2544_v8 }
 0x562   : > { %v666_v21 = vpop.permute.xlu0 %665 }
 0x563   : > { %806 = vrot.lane.b32.xlu1 %v690_v14, %s2548_s24  ;;  %v675_v23 = vpack.c.bf16 %v666_v21, %v666_v21 }
 0x564   : > { %v686_v15 = vpop.permute.xlu1 %685 }
 0x565   : > { %v691_v16 = vpack.c.bf16 %v686_v15, %v686_v15 }
 0x567   : > { %668 = vrot.lane.b32.xlu1 %v645_v7, %s2549_s25  ;;  %855 = vrot.lane.b32.xlu0 %v691_v16, %s2548_s24 }
 0x568   : > { %2229 = vmatmul.mubr.msk.bf16.vlgmr.msra.gmra.mxu0 %vm709_vm2, %v674_v17 }
 0x569   : > { %2234 = vmatprep.mubr.msk.bf16.mxu0 %vm2545_vm1, %v2544_v8 }
 0x56b   : > { %660 = vrot.lane.b32.xlu1 %v2037_v18, %s2551_s14  ;;  %671 = vrot.lane.b32.xlu0 %v645_v7, %s2550_s26 }
 0x5d1   : > { %v758_v19 = vpop.permute.xlu1 %757 }
 0x5d2   : > { %v763_v20 = vsel %vm709_vm2, %v758_v19, 0 }
 0x5d3   : > { %2233 = vmatpush3.bf16.xpose.msra.mxu0 %v763_v20 }
 0x5d4   : > { %2238 = vmatprep.subr.bf16.mxu0 %v2544_v8 }
 0x5d5   : > { %v807_v22 = vpop.permute.xlu1 %806 }
 0x5d6   : > { %v812_v26 = vsel %vm709_vm2, %v807_v22, 0 }
 0x5d9   : > { %v669_v24 = vpop.permute.xlu1 %668  ;;  %v856_v25 = vpop.permute.xlu0 %855 }
 0x5da   : > { %v861_v27 = vsel %vm709_vm2, %v856_v25, 0  ;;  %2235 = vmatmul.mubr.msk.bf16.vlgmr.msra.gmra.mxu0 %vm709_vm2, %v675_v23  ;;  %v676_v31 = vpack.c.bf16 %v669_v24, %v669_v24 }
 0x5db   : > { %2239 = vmatpush3.bf16.xpose.msra.mxu0 %v812_v26  ;;  %2245 = vmatpush3.bf16.xpose.msra.mxu1 %v861_v27 }
 0x5dc   : > { %2240 = vmatprep.mubr.msk.bf16.mxu0 %vm2545_vm1, %v2544_v8  ;;  %2250 = vmatprep.subr.bf16.mxu0 %v2544_v8 }
 0x5dd   : > { %v661_v28 = vpop.permute.xlu1 %660  ;;  %v672_v29 = vpop.permute.xlu0 %671  ;;  %2256 = vmatprep.subr.bf16.mxu1 %v2544_v8 }
 0x5de   : > { %v663_v30 = vadd.f32 %v661_v28, %v635_v0  ;;  %v677_v32 = vpack.c.bf16 %v672_v29, %v672_v29 }
 0x5e0   : > { %696 = vrot.lane.b32.xlu1 %v663_v30, %s2549_s25  ;;  %693 = vrot.lane.b32.xlu0 %v663_v30, %s2547_s21  ;;  %v702_v33 = vpack.c.bf16 %v663_v30, %v663_v30  ;;  %s2552_s21 = smov 8   ;;  %s2553_s25 = smov 24  }
 0x5e2   : > { %2241 = vmatmul.mubr.msk.bf16.vlgmr.msra.gmra.mxu0 %vm709_vm2, %v676_v31  ;;  %2247 = vmatmul.mubr.msk.bf16.vlgmr.msra.gmra.mxu1 %vm709_vm2, %v677_v32 }
 0x5e3   : > { %2252 = vmatprep.mubr.msk.bf16.mxu0 %vm2545_vm1, %v2544_v8  ;;  %2258 = vmatprep.mubr.msk.bf16.mxu1 %vm2545_vm1, %v2544_v8 }
 0x5e4   : > { %968 = vrot.lane.b32.xlu1 %v702_v33, %s2551_s14  ;;  %699 = vrot.lane.b32.xlu0 %v663_v30, %s2550_s26  ;;  %s2554_s26 = smov 16  }
 0x628   : > { %v750_v34 = vpop.f32.mrf.mxu0 }
 0x629   : > { %v903_v35 = vsel %vm709_vm2, %v750_v34, -inf }
 0x62a   : > { %904 = vmax.xlane.f32.xlu1 %v903_v35  ;;  %v2230_v36 = vpop.f32.mrf.mxu0 }
 0x62c   : > { %v753_v37 = vpop.f32.mrf.mxu0 }
 0x62e   : > { %v2231_v38 = vpop.f32.mrf.mxu0 }
 0x652   : > { %v697_v39 = vpop.permute.xlu1 %696  ;;  %v694_v40 = vpop.permute.xlu0 %693 }
 0x653   : > { %v704_v41 = vpack.c.bf16 %v697_v39, %v697_v39  ;;  %v703_v2 = vpack.c.bf16 %v694_v40, %v694_v40 }
 0x655   : > { %1067 = vrot.lane.b32.xlu1 %v704_v41, %s2551_s14 }
 0x656   : > { %v969_v43 = vpop.permute.xlu1 %968  ;;  %v700_v44 = vpop.permute.xlu0 %699 }
 0x657   : > { %v975_v45 = vsel %vm973_vm3, %v969_v43, 0  ;;  %v705_v46 = vpack.c.bf16 %v700_v44, %v700_v44 }
 0x658   : > { %2251 = vmatpush3.bf16.msra.mxu0 %v975_v45 }
 0x659   : > { %1116 = vrot.lane.b32.xlu1 %v705_v46, %s2551_s14  ;;  %2262 = vmatprep.subr.bf16.mxu0 %v2544_v8 }
 0x69a   : > { %v799_v47 = vpop.f32.mrf.mxu0 }
 0x69b   : > { %v906_v48 = vsel %vm709_vm2, %v799_v47, -inf }
 0x69c   : > { %907 = vmax.xlane.f32.xlu0 %v906_v48  ;;  %v2236_v49 = vpop.f32.mrf.mxu0 }
 0x69e   : > { %v802_v50 = vpop.f32.mrf.mxu0 }
 0x6a0   : > { %v2237_v51 = vpop.f32.mrf.mxu0 }
 0x6a2   : > { %v848_v52 = vpop.f32.mrf.mxu0  ;;  %v897_v53 = vpop.f32.mrf.mxu1 }
 0x6a3   : > { %v912_v54 = vsel %vm709_vm2, %v897_v53, -inf  ;;  %v909_v59 = vsel %vm709_vm2, %v848_v52, -inf }
 0x6a4   : > { %v2242_v55 = vpop.f32.mrf.mxu0  ;;  %913 = vmax.xlane.f32.xlu0 %v912_v54  ;;  %v2248_v56 = vpop.f32.mrf.mxu1 }
 0x6a6   : > { %v851_v57 = vpop.f32.mrf.mxu0  ;;  %v900_v58 = vpop.f32.mrf.mxu1 }
 0x6a8   : > { %v2243_v60 = vpop.f32.mrf.mxu0  ;;  %910 = vmax.xlane.f32.xlu0 %v909_v59  ;;  %v2249_v61 = vpop.f32.mrf.mxu1 }
 0x6b3   : > { %v905_v62 = vpop.xlane.xlu1 %904 }
 0x6b4   : > { %v915_v63 = vmax.f32 %v905_v62, -1e+30 }
 0x6b6   : > { %v931_v0 = vsub.f32 %v750_v34, %v915_v63  ;;  %v919_v34 = vsub.f32 -1e+30, %v915_v63 }
 0x6b8   : > { %v935_v1 = vmul.f32 1.442695, %v931_v0  ;;  %v923_v35 = vmul.f32 1.442695, %v919_v34 }
 0x6ba   : > { %2419 = vpow2.f32 %v935_v1 }
 0x6be   : > { %1018 = vrot.lane.b32.xlu0 %v703_v2, %s2551_s14  ;;  %v2399_v2 = vld [vmem:[%s3111_s4 + $0x8] sm:$0xff]  }
 0x6c7   : > { %v1068_v3 = vpop.permute.xlu1 %1067  ;;  %v2420_v4 = vpop.eup %2419 }
 0x6c8   : > { %v1073_v5 = vsel %vm973_vm3, %v1068_v3, 0  ;;  %v963_v6 = vpack.c.bf16 %v2420_v4, %v2420_v4  ;;  %v947_v33 = vsel %vm709_vm2, %v2420_v4, 0.0 }
 0x6ca   : > { %2253 = vmatmul.mubr.msk.bf16.vlgmr.msra.gmra.mxu0 %vm709_vm2, %v963_v6 }
 0x6cb   : > { %2263 = vmatpush3.bf16.msra.mxu0 %v1073_v5  ;;  %2264 = vmatprep.mubr.msk.bf16.mxu0 %vm2545_vm1, %v2544_v8  ;;  %v1117_v23 = vpop.permute.xlu1 %1116 }
 0x6cc   : > { %2274 = vmatprep.subr.bf16.mxu0 %v2544_v8  ;;  %v1122_v26 = vsel %vm973_vm3, %v1117_v23, 0 }
 0x725   : > { %v908_v7 = vpop.xlane.xlu0 %907 }
 0x726   : > { %v916_v9 = vmax.f32 %v908_v7, -1e+30 }
 0x728   : > { %v932_v10 = vsub.f32 %v799_v47, %v916_v9  ;;  %v920_v45 = vsub.f32 -1e+30, %v916_v9 }
 0x72a   : > { %v937_v11 = vmul.f32 1.442695, %v932_v10  ;;  %v925_v47 = vmul.f32 1.442695, %v920_v45  ;;  %v2400_v10 = vld [vmem:[%s3111_s4] sm:$0xff]  }
 0x72c   : > { %2421 = vpow2.f32 %v937_v11 }
 0x72d   : > { %v914_v12 = vpop.xlane.xlu0 %913 }
 0x72e   : > { %v918_v13 = vmax.f32 %v914_v12, -1e+30 }
 0x730   : > { %v934_v14 = vsub.f32 %v897_v53, %v918_v13  ;;  %v922_v50 = vsub.f32 -1e+30, %v918_v13 }
 0x731   : > { %v911_v15 = vpop.xlane.xlu0 %910 }
 0x732   : > { %v941_v16 = vmul.f32 1.442695, %v934_v14  ;;  %v917_v17 = vmax.f32 %v911_v15, -1e+30  ;;  %v929_v51 = vmul.f32 1.442695, %v922_v50 }
 0x734   : > { %v933_v18 = vsub.f32 %v848_v52, %v917_v17  ;;  %2423 = vpow2.f32 %v941_v16  ;;  %v921_v52 = vsub.f32 -1e+30, %v917_v17 }
 0x735   : > { %v1019_v19 = vpop.permute.xlu0 %1018 }
 0x736   : > { %v939_v20 = vmul.f32 1.442695, %v933_v18  ;;  %v1024_v21 = vsel %vm973_vm3, %v1019_v19, 0  ;;  %v927_v53 = vmul.f32 1.442695, %v921_v52 }
 0x737   : > { %2257 = vmatpush3.bf16.msra.mxu1 %v1024_v21 }
 0x738   : > { %2268 = vmatprep.subr.bf16.mxu1 %v2544_v8  ;;  %2425 = vpow2.f32 %v939_v20 }
 0x739   : > { %v2422_v22 = vpop.eup %2421  ;;  %2427 = vpow2.f32 %v923_v35 }
 0x73a   : > { %v950_v24 = vsel %vm709_vm2, %v2422_v22, 0.0  ;;  %v964_v25 = vpack.c.bf16 %v2422_v22, %v2422_v22  ;;  %2429 = vpow2.f32 %v925_v47  ;;  %v2401_v47 = vld [vmem:[%s3112_s5 + $0x8] sm:$0xff]  }
 0x73b   : > { %951 = vadd.xlane.f32.xlu1 %v950_v24 }
 0x73c   : > { %2259 = vmatmul.mubr.msk.bf16.vlgmr.msra.gmra.mxu1 %vm709_vm2, %v964_v25 }
 0x73d   : > { %2269 = vmatpush3.bf16.msra.mxu1 %v1122_v26  ;;  %2270 = vmatprep.mubr.msk.bf16.mxu1 %vm2545_vm1, %v2544_v8 }
 0x73e   : > { %2282 = vmatprep.subr.bf16.mxu1 %v2544_v8 }
 0x741   : > { %v2424_v27 = vpop.eup %2423 }
 0x742   : > { %v966_v28 = vpack.c.bf16 %v2424_v27, %v2424_v27  ;;  %v956_v32 = vsel %vm709_vm2, %v2424_v27, 0.0 }
 0x744   : > { %2271 = vmatmul.mubr.msk.bf16.vlgmr.msra.gmra.mxu1 %vm709_vm2, %v966_v28 }
 0x745   : > { %v2426_v29 = vpop.eup %2425  ;;  %2286 = vmatprep.mubr.msk.bf16.mxu1 %vm2545_vm1, %v2544_v8  ;;  %2283 = vmatpush3.bf16.msra.mxu1 %v2401_v47 }
 0x746   : > { %v953_v30 = vsel %vm709_vm2, %v2426_v29, 0.0  ;;  %v965_v31 = vpack.c.bf16 %v2426_v29, %v2426_v29  ;;  %v2428_v36 = vpop.eup %2427  ;;  %2284 = vmatprep.subr.bf16.mxu1 %v2544_v8 }
 0x747   : > { %954 = vadd.xlane.f32.xlu0 %v953_v30  ;;  %v943_v37 = vmul.f32 0.0, %v2428_v36  ;;  %v2430_v54 = vpop.eup %2429 }
 0x748   : > { %2265 = vmatmul.mubr.msk.bf16.vlgmr.msra.gmra.mxu0 %vm709_vm2, %v965_v31  ;;  %v944_v58 = vmul.f32 0.0, %v2430_v54 }
 0x749   : > { %2278 = vmatprep.mubr.msk.bf16.mxu0 %vm2545_vm1, %v2544_v8  ;;  %2275 = vmatpush3.bf16.msra.mxu0 %v2399_v2 }
 0x74a   : > { %2276 = vmatprep.subr.bf16.mxu0 %v2544_v8 }
 0x74b   : > { %957 = vadd.xlane.f32.xlu0 %v956_v32 }
 0x74d   : > { %2277 = vmatpush3.bf16.msra.mxu0 %v2400_v10 }
 0x74e   : > { %2290 = vmatprep.subr.bf16.mxu0 %v2544_v8 }
 0x74f   : > { %948 = vadd.xlane.f32.xlu0 %v947_v33  ;;  %v2046_v33 = vld [vmem:[%s3108_s1 + $0x8] ss:$0 sm:$0xff] }
 0x78a   : > { %v1011_v38 = vpop.f32.mrf.mxu0 }
 0x78b   : > { %v1164_v39 = vadd.f32 %v1011_v38, %v943_v37 }
 0x78c   : > { %v2254_v40 = vpop.f32.mrf.mxu0 }
 0x78e   : > { %v1014_v41 = vpop.f32.mrf.mxu0 }
 0x790   : > { %v2255_v43 = vpop.f32.mrf.mxu0 }
 0x7c4   : > { %v952_v57 = vpop.xlane.xlu1 %951 }
 0x7c5   : > { %v960_v59 = vadd.f32 %v952_v57, %v944_v58 }
 0x7d0   : > { %v955_v44 = vpop.xlane.xlu0 %954 }
 0x7d4   : > { %v958_v46 = vpop.xlane.xlu0 %957 }
 0x7d8   : > { %v949_v48 = vpop.xlane.xlu0 %948 }
 0x7d9   : > { %v959_v49 = vadd.f32 %v949_v48, %v943_v37  ;;  %v2060_v48 = vld [vmem:[%s3108_s1 + $0xc] ss:$0 sm:$0xff] }
 0x7db   : > { %2431 = vrcp.f32 %v959_v49 }
 0x7dc   : > { %2433 = vpow2.f32 %v929_v51 }
 0x7dd   : > { %2435 = vpow2.f32 %v927_v53  ;;  %v2050_v53 = vld [vmem:[%s3108_s1 + $0x9] ss:$0 sm:$0xff] }
 0x7de   : > { %2437 = vrcp.f32 %v960_v59 }
 0x7e8   : > { %v2432_v55 = vpop.eup %2431 }
 0x7e9   : > { %v1172_v56 = vmul.f32 %v2432_v55, %v1164_v39  ;;  %v2434_v60 = vpop.eup %2433  ;;  %v2051_v55 = vld [vmem:[%s3108_s1 + $0xa] ss:$0 sm:$0xff] }
 0x7ea   : > { %v946_v61 = vmul.f32 0.0, %v2434_v60  ;;  %v2436_v62 = vpop.eup %2435 }
 0x7eb   : > { %v945_v0 = vmul.f32 0.0, %v2436_v62  ;;  %v2438_v5 = vpop.eup %2437 }
 0x7ec   : > { %v962_v63 = vadd.f32 %v958_v46, %v946_v61 }
 0x7ed   : > { %v961_v1 = vadd.f32 %v955_v44, %v945_v0 }
 0x7ee   : > { %2439 = vrcp.f32 %v962_v63 }
 0x7ef   : > { %2441 = vrcp.f32 %v961_v1 }
 0x7fb   : > { %v2440_v14 = vpop.eup %2439 }
 0x7fc   : > { %v1060_v3 = vpop.f32.mrf.mxu1  ;;  %v2442_v20 = vpop.eup %2441 }
 0x7fd   : > { %v1165_v4 = vadd.f32 %v1060_v3, %v944_v58 }
 0x7fe   : > { %v2260_v6 = vpop.f32.mrf.mxu1 }
 0x7ff   : > { %v1173_v7 = vmul.f32 %v2438_v5, %v1165_v4  ;;  %v2403_v5 = vld [vmem:[%s3111_s4 + $0x18] sm:$0xff]   ;;  %v2404_v6 = vld [vmem:[%s3111_s4 + $0x10] sm:$0xff]  }
 0x800   : > { %v1063_v9 = vpop.f32.mrf.mxu1 }
 0x801   : > { %1177 = vrot.lane.b32.xlu1 %v1173_v7, %s2552_s21  ;;  %v1381_v7 = vld [vmem:[#allocation2 + $0x1] sm:$0xff]  ;;  %v2062_v9 = vld [vmem:[%s3115_s8] ss:$0 sm:$0xff] }
 0x802   : > { %v2261_v11 = vpop.f32.mrf.mxu1  ;;  %v1387_v10 = vmul.f32 %v2062_v9, %v1381_v7  ;;  %v2077_v7 = vld [vmem:[%s3115_s8 + $0xf] ss:$0 sm:$0xff] }
 0x803   : > { %v2061_v11 = vld [vmem:[%s3108_s1 + $0xd] ss:$0 sm:$0xff] }
 0x804   : > { %v1158_v12 = vpop.f32.mrf.mxu1 }
 0x805   : > { %v1167_v13 = vadd.f32 %v1158_v12, %v946_v61  ;;  %v1389_v12 = vld [vmem:[#allocation2 + $0x2] sm:$0xff] }
 0x806   : > { %v2272_v15 = vpop.f32.mrf.mxu1 }
 0x807   : > { %v1175_v16 = vmul.f32 %v2440_v14, %v1167_v13  ;;  %v2063_v13 = vld [vmem:[%s3115_s8 + $0x1] ss:$0 sm:$0xff]  ;;  %v1388_v14 = vadd.f32 %v2061_v11, %v1387_v10 }
 0x808   : > { %v1109_v17 = vpop.f32.mrf.mxu0  ;;  %v1161_v18 = vpop.f32.mrf.mxu1  ;;  %v1395_v15 = vmul.f32 %v2063_v13, %v1389_v12  ;;  %v2078_v12 = vld [vmem:[%s3115_s8 + $0x10] ss:$0 sm:$0xff] }
 0x809   : > { %v1166_v19 = vadd.f32 %v1109_v17, %v945_v0  ;;  %1185 = vrot.lane.b32.xlu1 %v1175_v16, %s2553_s25  ;;  %v1397_v16 = vld [vmem:[#allocation2 + $0x3] sm:$0xff]  ;;  %v2064_v17 = vld [vmem:[%s3115_s8 + $0x2] ss:$0 sm:$0xff]  ;;  %s2135_s25 = sshll.u32 %s2627_s13, 7 }
 0x80a   : > { %v2266_v21 = vpop.f32.mrf.mxu0  ;;  %v2273_v22 = vpop.f32.mrf.mxu1  ;;  %v1396_v18 = vadd.f32 %v1395_v15, %v1388_v14  ;;  %s1934_s14 = scalar_lea.hbm %s3116_s9, %s2135_s25 }
 0x80b   : > { %v1174_v23 = vmul.f32 %v2442_v20, %v1166_v19  ;;  %v1403_v19 = vmul.f32 %v2064_v17, %v1397_v16  ;;  %v1405_v20 = vld [vmem:[#allocation2 + $0x4] sm:$0xff]  ;;  %v2065_v21 = vld [vmem:[%s3115_s8 + $0x3] ss:$0 sm:$0xff]  ;;  %v2079_v16 = vld [vmem:[%s3115_s8 + $0x11] ss:$0 sm:$0xff] }
 0x80c   : > { %v1112_v24 = vpop.f32.mrf.mxu0 }
 0x80d   : > { %1181 = vrot.lane.b32.xlu0 %v1174_v23, %s2554_s26  ;;  %v1404_v22 = vadd.f32 %v1403_v19, %v1396_v18  ;;  %v1411_v23 = vmul.f32 %v2065_v21, %v1405_v20  ;;  %v1413_v24 = vld [vmem:[#allocation2 + $0x5] sm:$0xff]  ;;  %v2080_v20 = vld [vmem:[%s3115_s8 + $0x12] ss:$0 sm:$0xff]  ;;  %s336_s26 = scalar_lea.vmem [#allocation6], %s2013_s17 }
 0x80e   : > { %v2267_v25 = vpop.f32.mrf.mxu0  ;;  %s1936_s27 = sshll.u32 %s336_s26, 4  ;;  %s1937_s27 = int_to_ptr.vmem [resolvable:$true] %s1936_s27 }
 0x80f   : > { %v2066_v25 = vld [vmem:[%s3115_s8 + $0x4] ss:$0 sm:$0xff]  ;;  %s2477_s21 = scalar_lea.vmem %s1937_s27, 128 }
 0x810   : > { %p2478_p6 = scmp.ne.s32.totalorder %s1937_s27, %s2477_s21 }
 0x812   : > { %p2479_p9 = pnand %p2478_p6, %p2644_p5 }
 0x814   : > { %p2480_p10 = pneg %p2479_p9 }
 0x873   : > { %v1178_v26 = vpop.permute.xlu1 %1177 }
 0x874   : > { %v1188_v27 = vsel %vm709_vm2, %v1172_v56, %v1178_v26  ;;  %v1412_v26 = vadd.f32 %v1411_v23, %v1404_v22 }
 0x87b   : > { %v1186_v29 = vpop.permute.xlu1 %1185 }
 0x87f   : > { %v1182_v28 = vpop.permute.xlu0 %1181 }
 0x880   : > { %v1190_v30 = vsel %vm1189_vm4, %v1188_v27, %v1182_v28  ;;  %v1419_v27 = vmul.f32 %v2066_v25, %v1413_v24  ;;  %v1421_v28 = vld [vmem:[#allocation2 + $0x6] sm:$0xff]  ;;  %v2081_v25 = vld [vmem:[%s3115_s8 + $0x13] ss:$0 sm:$0xff] }
 0x881   : > { %v1192_v31 = vsel %vm1191_vm5, %v1190_v30, %v1186_v29  ;;  %v2067_v29 = vld [vmem:[%s3115_s8 + $0x5] ss:$0 sm:$0xff]  ;;  %v2059_v30 = vld [vmem:[%s3108_s1 + $0xb] ss:$0 sm:$0xff] }
 0x882   : > { %v1193_v32 = vpack.c.bf16 %v1192_v31, %v1192_v31  ;;  %v1420_v31 = vadd.f32 %v1419_v27, %v1412_v26 }
 0x884   : > { %2279 = vmatmul.mubr.msk.bf16.vlgmr.msra.gmra.mxu0 %vm367_vm0, %v1193_v32  ;;  %v1427_v32 = vmul.f32 %v2067_v29, %v1421_v28  ;;  %v2082_v29 = vld [vmem:[%s3115_s8 + $0x14] ss:$0 sm:$0xff] }
 0x885   : > { %2294 = vmatprep.mubr.msk.bf16.mxu0 %vm2545_vm1, %v2544_v8  ;;  %2291 = vmatpush3.bf16.msra.mxu0 %v2403_v5 }
 0x886   : > { %2292 = vmatprep.subr.bf16.mxu0 %v2544_v8 }
 0x889   : > { %2293 = vmatpush3.bf16.msra.mxu0 %v2404_v6 }
 0x88a   : > { %2306 = vmatprep.subr.bf16.mxu0 %v2544_v8 }
 0x944   : > { %v1247_v34 = vpop.f32.mrf.mxu0 }
 0x945   : > { %v1248_v35 = vadd.f32 %v2046_v33, %v1247_v34  ;;  %v1429_v33 = vld [vmem:[#allocation2 + $0x7] sm:$0xff]  ;;  %v2068_v34 = vld [vmem:[%s3115_s8 + $0x6] ss:$0 sm:$0xff] }
 0x946   : > { %v2280_v36 = vpop.f32.mrf.mxu0 }
 0x947   : > { %v2865_v37 = vadd.f32 %v1248_v35, %v2750_v42  ;;  %v2402_v42 = vld [vmem:[%s3112_s5] sm:$0xff]  }
 0x948   : > { %v1250_v38 = vpop.f32.mrf.mxu0  ;;  %2285 = vmatpush3.bf16.msra.mxu1 %v2402_v42  ;;  %v2071_v42 = vld [vmem:[%s3115_s8 + $0x9] ss:$0 sm:$0xff] }
 0x949   : > { %v1256_v39 = vsel %vm367_vm0, %v2865_v37, 0.0  ;;  %2298 = vmatprep.subr.bf16.mxu1 %v2544_v8  ;;  %v1428_v38 = vadd.f32 %v1427_v32, %v1420_v31 }
 0x94a   : > { %1257 = vadd.xlane.f32.xlu1 %v1256_v39  ;;  %v2281_v40 = vpop.f32.mrf.mxu0  ;;  %v1435_v39 = vmul.f32 %v2068_v34, %v1429_v33  ;;  %v2083_v33 = vld [vmem:[%s3115_s8 + $0x15] ss:$0 sm:$0xff] }
 0x9d3   : > { %v1258_v41 = vpop.xlane.xlu1 %1257 }
 0x9d4   : > { %v1259_v43 = vmul.f32 0.03125, %v1258_v41  ;;  %v1437_v41 = vld [vmem:[#allocation2 + $0x8] sm:$0xff] }
 0x9d6   : > { %v1260_v44 = vsub.f32 %v2865_v37, %v1259_v43  ;;  %v2069_v43 = vld [vmem:[%s3115_s8 + $0x7] ss:$0 sm:$0xff] }
 0x9d8   : > { %v1261_v45 = vmul.f32 %v1260_v44, %v1260_v44 }
 0x9da   : > { %v1262_v46 = vsel %vm367_vm0, %v1261_v45, 0.0  ;;  %v1443_v45 = vmul.f32 %v2069_v43, %v1437_v41 }
 0x9db   : > { %1263 = vadd.xlane.f32.xlu0 %v1262_v46  ;;  %v2070_v46 = vld [vmem:[%s3115_s8 + $0x8] ss:$0 sm:$0xff] }
 0x9f1   : > { %1358 = vrot.lane.b32.xlu0 %v2060_v48, %s2546_s28 }
 0xa64   : > { %v1264_v49 = vpop.xlane.xlu0 %1263 }
 0xa65   : > { %v1265_v50 = vmul.f32 0.03125, %v1264_v49 }
 0xa67   : > { %v1266_v51 = vadd.f32 1e-05, %v1265_v50 }
 0xa68   : > { %v1359_v59 = vpop.permute.xlu0 %1358 }
 0xa69   : > { %2443 = vrsqrt.f32 %v1266_v51  ;;  %v2072_v51 = vld [vmem:[%s3115_s8 + $0xa] ss:$0 sm:$0xff] }
 0xa76   : > { %v2444_v52 = vpop.eup %2443 }
 0xa77   : > { %v1268_v54 = vmul.f32 %v2444_v52, %v1260_v44  ;;  %v1436_v44 = vadd.f32 %v1435_v39, %v1428_v38  ;;  %v1565_v39 = vld [vmem:[#allocation2 + $0x18] sm:$0xff] }
 0xa79   : > { %v1273_v56 = vmul.f32 %v2050_v53, %v1268_v54  ;;  %v1444_v47 = vadd.f32 %v1443_v45, %v1436_v44  ;;  %v1573_v44 = vld [vmem:[#allocation2 + $0x19] sm:$0xff]  ;;  %v2086_v45 = vld [vmem:[%s3115_s8 + $0x18] ss:$0 sm:$0xff] }
 0xa7b   : > { %v1278_v57 = vadd.f32 %v2051_v55, %v1273_v56  ;;  %v2073_v55 = vld [vmem:[%s3115_s8 + $0xb] ss:$0 sm:$0xff] }
 0xa7d   : > { %v1292_v58 = vpack.c.bf16 %v1278_v57, %v1278_v57 }
 0xa7f   : > { %2287 = vmatmul.mubr.msk.bf16.vlgmr.msra.gmra.mxu1 %vm367_vm0, %v1292_v58 }
 0xa80   : > { %2302 = vmatprep.mubr.msk.bf16.mxu1 %vm2545_vm1, %v2544_v8 }
 0xb3f   : > { %v1342_v60 = vpop.f32.mrf.mxu1 }
 0xb40   : > { %v1361_v61 = vadd.f32 %v1359_v59, %v1342_v60  ;;  %v1352_v35 = vadd.f32 %v2059_v30, %v1342_v60  ;;  %v2074_v59 = vld [vmem:[%s3115_s8 + $0xc] ss:$0 sm:$0xff] }
 0xb41   : > { %v2288_v62 = vpop.f32.mrf.mxu1 }
 0xb42   : > { %v1362_v63 = vmul.f32 0.5, %v1361_v61 }
 0xb43   : > { %v1345_v0 = vpop.f32.mrf.mxu1 }
 0xb44   : > { %2445 = vtanh.f32 %v1362_v63  ;;  %v2075_v63 = vld [vmem:[%s3115_s8 + $0xd] ss:$0 sm:$0xff] }
 0xb45   : > { %v2289_v1 = vpop.f32.mrf.mxu1 }
 0xb51   : > { %v2446_v2 = vpop.eup %2445 }
 0xb52   : > { %v1364_v3 = vmul.f32 0.5, %v2446_v2 }
 0xb54   : > { %v1365_v4 = vadd.f32 0.5, %v1364_v3  ;;  %v2076_v3 = vld [vmem:[%s3115_s8 + $0xe] ss:$0 sm:$0xff] }
 0xb56   : > { %1367 = vrot.lane.b32.xlu1 %v1365_v4, %s2548_s24  ;;  %s2555_s24 = smov [#allocation6]  }
 0xb57   : > { %s2481_s22 = sshll.u32 %s2555_s24, 4  ;;  %s2482_s22 = int_to_ptr.vmem [resolvable:$false] %s2481_s22 }
 0xb58   : > { %s2483_s13 = scalar_lea.vmem %s2482_s22, 256  ;;  %p2484_p11 = scmp.lt.s32.totalorder %s1937_s27, %s2482_s22 }
 0xb59   : > { %p2485_p12 = scmp.lt.s32.totalorder %s2483_s13, %s2477_s21 }
 0xb5b   : > { %p2486_p13 = por %p2485_p12, %p2484_p11 }
 0xb5d   : > { %p2487_p0 = pnand %p2486_p13, %p2480_p10 }
 0xbc8   : > { %v1368_v36 = vpop.permute.xlu1 %1367 }
 0xbc9   : > { %v1370_v40 = vmul.f32 %v1368_v36, %v1352_v35  ;;  %v2084_v36 = vld [vmem:[%s3115_s8 + $0x16] ss:$0 sm:$0xff] }
 0xbcb   : > { %1376 = vst.msk [vmem:[#allocation2 + $0x10] sm:$0xff] %vm367_vm0, %v1370_v40  ;;  %v2085_v40 = vld [vmem:[%s3115_s8 + $0x17] ss:$0 sm:$0xff] }
 0xbd2   : > { %v1445_v48 = vld [vmem:[#allocation2 + $0x9] sm:$0xff]  ;;  %v1509_v13 = vld [vmem:[#allocation2 + $0x11] sm:$0xff] }
 0xbd3   : > { %v1453_v49 = vld [vmem:[#allocation2 + $0xa] sm:$0xff]  ;;  %v1451_v50 = vmul.f32 %v2070_v46, %v1445_v48  ;;  %v1517_v17 = vld [vmem:[#allocation2 + $0x12] sm:$0xff]  ;;  %v1515_v19 = vmul.f32 %v2078_v12, %v1509_v13  ;;  %v1581_v48 = vld [vmem:[#allocation2 + $0x1a] sm:$0xff] }
 0xbd4   : > { %v1461_v52 = vld [vmem:[#allocation2 + $0xb] sm:$0xff]  ;;  %v1459_v54 = vmul.f32 %v2071_v42, %v1453_v49  ;;  %v1525_v21 = vld [vmem:[#allocation2 + $0x13] sm:$0xff]  ;;  %v1523_v23 = vmul.f32 %v2079_v16, %v1517_v17  ;;  %v1571_v42 = vmul.f32 %v2085_v40, %v1565_v39 }
 0xbd5   : > { %v1452_v53 = vadd.f32 %v1451_v50, %v1444_v47  ;;  %v1469_v56 = vld [vmem:[#allocation2 + $0xc] sm:$0xff]  ;;  %v1467_v58 = vmul.f32 %v2072_v51, %v1461_v52  ;;  %v1533_v24 = vld [vmem:[#allocation2 + $0x14] sm:$0xff]  ;;  %v1531_v26 = vmul.f32 %v2080_v20, %v1525_v21  ;;  %v1579_v51 = vmul.f32 %v2086_v45, %v1573_v44 }
 0xbd6   : > { %v1477_v60 = vld [vmem:[#allocation2 + $0xd] sm:$0xff]  ;;  %v1475_v62 = vmul.f32 %v2073_v55, %v1469_v56  ;;  %v1541_v28 = vld [vmem:[#allocation2 + $0x15] sm:$0xff]  ;;  %v1539_v31 = vmul.f32 %v2081_v25, %v1533_v24 }
 0xbd7   : > { %v1460_v57 = vadd.f32 %v1459_v54, %v1452_v53  ;;  %v1485_v0 = vld [vmem:[#allocation2 + $0xe] sm:$0xff]  ;;  %v1483_v2 = vmul.f32 %v2074_v59, %v1477_v60  ;;  %v1549_v32 = vld [vmem:[#allocation2 + $0x16] sm:$0xff]  ;;  %v1547_v35 = vmul.f32 %v2082_v29, %v1541_v28 }
 0xbd8   : > { %v1493_v4 = vld [vmem:[#allocation2 + $0xf] sm:$0xff]  ;;  %v1491_v6 = vmul.f32 %v2075_v63, %v1485_v0  ;;  %v1557_v38 = vld [vmem:[#allocation2 + $0x17] sm:$0xff]  ;;  %v1555_v43 = vmul.f32 %v2083_v33, %v1549_v32  ;;  %v2410_v32 = vld [vmem:[%s3114_s7 + $0x60] sm:$0xff]  }
 0xbd9   : > { %v1468_v61 = vadd.f32 %v1467_v58, %v1460_v57  ;;  %v1501_v9 = vld [vmem:[#allocation2 + $0x10] sm:$0xff]  ;;  %v1499_v11 = vmul.f32 %v2076_v3, %v1493_v4  ;;  %v1563_v47 = vmul.f32 %v2084_v36, %v1557_v38  ;;  %v2087_v49 = vld [vmem:[%s3115_s8 + $0x19] ss:$0 sm:$0xff]  ;;  %v1589_v52 = vld [vmem:[#allocation2 + $0x1b] sm:$0xff] }
 0xbda   : > { %v1507_v15 = vmul.f32 %v2077_v7, %v1501_v9  ;;  %v2088_v53 = vld [vmem:[%s3115_s8 + $0x1a] ss:$0 sm:$0xff]  ;;  %v1587_v55 = vmul.f32 %v2087_v49, %v1581_v48  ;;  %v1597_v56 = vld [vmem:[#allocation2 + $0x1c] sm:$0xff]  ;;  %v2089_v57 = vld [vmem:[%s3115_s8 + $0x1b] ss:$0 sm:$0xff] }
 0xbdb   : > { %v1476_v1 = vadd.f32 %v1475_v62, %v1468_v61  ;;  %v1595_v59 = vmul.f32 %v2088_v53, %v1589_v52  ;;  %v1605_v60 = vld [vmem:[#allocation2 + $0x1d] sm:$0xff]  ;;  %v2090_v61 = vld [vmem:[%s3115_s8 + $0x1c] ss:$0 sm:$0xff]  ;;  %v1603_v63 = vmul.f32 %v2089_v57, %v1597_v56  ;;  %v2117_v40 = vld [vmem:[%s3108_s1 + $0xf] ss:$0 sm:$0xff] }
 0xbdc   : > { %v1613_v0 = vld [vmem:[#allocation2 + $0x1e] sm:$0xff]  ;;  %v1611_v3 = vmul.f32 %v2090_v61, %v1605_v60  ;;  %v2119_v48 = vld [vmem:[#allocation3 + $0x1] ss:$0 sm:$0xff]  ;;  %v2123_v56 = vld [vmem:[%s3108_s1 + $0x11] ss:$0 sm:$0xff] }
 0xbdd   : > { %v1484_v5 = vadd.f32 %v1483_v2, %v1476_v1  ;;  %v2091_v1 = vld [vmem:[%s3115_s8 + $0x1d] ss:$0 sm:$0xff]  ;;  %v1621_v4 = vld [vmem:[#allocation2 + $0x1f] sm:$0xff] }
 0xbde   : > { %v1619_v7 = vmul.f32 %v2091_v1, %v1613_v0  ;;  %v2405_v28 = vld [vmem:[%s3113_s6 + $0x18] sm:$0xff]  }
 0xbdf   : > { %v1492_v10 = vadd.f32 %v1491_v6, %v1484_v5  ;;  %v2092_v5 = vld [vmem:[%s3115_s8 + $0x1e] ss:$0 sm:$0xff]  ;;  %2299 = vmatpush3.bf16.msra.mxu1 %v2405_v28 }
 0xbe0   : > { %2300 = vmatprep.subr.bf16.mxu1 %v2544_v8  ;;  %v2407_v29 = vld [vmem:[%s3114_s7 + $0x78] sm:$0xff]  }
 0xbe1   : > { %v1500_v14 = vadd.f32 %v1499_v11, %v1492_v10  ;;  %v1627_v10 = vmul.f32 %v2092_v5, %v1621_v4  ;;  %v2411_v33 = vld [vmem:[%s3114_s7 + $0x58] sm:$0xff]  }
 0xbe3   : > { %v1508_v18 = vadd.f32 %v1507_v15, %v1500_v14  ;;  %v2093_v15 = vld [vmem:[%s3108_s1 + $0xe] ss:$0 sm:$0xff] }
 0xbe5   : > { %v1516_v22 = vadd.f32 %v1515_v19, %v1508_v18 }
 0xbe7   : > { %v1524_v27 = vadd.f32 %v1523_v23, %v1516_v22 }
 0xbe9   : > { %v1532_v30 = vadd.f32 %v1531_v26, %v1524_v27 }
 0xbeb   : > { %v1540_v34 = vadd.f32 %v1539_v31, %v1532_v30  ;;  %v2408_v30 = vld [vmem:[%s3114_s7 + $0x70] sm:$0xff]   ;;  %v2409_v31 = vld [vmem:[%s3114_s7 + $0x68] sm:$0xff]  }
 0xbed   : > { %v1548_v41 = vadd.f32 %v1547_v35, %v1540_v34  ;;  %v2412_v34 = vld [vmem:[%s3114_s7 + $0x50] sm:$0xff]  }
 0xbef   : > { %v1556_v46 = vadd.f32 %v1555_v43, %v1548_v41  ;;  %v2118_v43 = vld [vmem:[%s3108_s1 + $0x10] ss:$0 sm:$0xff] }
 0xbf1   : > { %v1564_v50 = vadd.f32 %v1563_v47, %v1556_v46  ;;  %v2413_v47 = vld [vmem:[%s3114_s7 + $0x48] sm:$0xff]  }
 0xbf3   : > { %v1572_v54 = vadd.f32 %v1571_v42, %v1564_v50  ;;  %v2414_v42 = vld [vmem:[%s3114_s7 + $0x40] sm:$0xff]  }
 0xbf5   : > { %v1580_v58 = vadd.f32 %v1579_v51, %v1572_v54 }
 0xbf7   : > { %v1588_v62 = vadd.f32 %v1587_v55, %v1580_v58 }
 0xbf9   : > { %v1596_v2 = vadd.f32 %v1595_v59, %v1588_v62 }
 0xbfb   : > { %v1604_v6 = vadd.f32 %v1603_v63, %v1596_v2 }
 0xbfd   : > { %v1612_v9 = vadd.f32 %v1611_v3, %v1604_v6 }
 0xbff   : > { %v1620_v11 = vadd.f32 %v1619_v7, %v1612_v9 }
 0xc01   : > { %v1628_v12 = vadd.f32 %v1627_v10, %v1620_v11  ;;  %v2132_v10 = vld [vmem:[%s3108_s1 + $0x12] ss:$0 sm:$0xff] }
 0xc03   : > { %v1629_v13 = vmax.f32 %v1628_v12, 0.0  ;;  %v2133_v12 = vld [vmem:[%s3108_s1 + $0x13] ss:$0 sm:$0xff] }
 0xc05   : > { %v1630_v14 = vpack.c.bf16 %v1629_v13, %v1629_v13 }
 0xc07   : > { %2295 = vmatmul.mubr.msk.bf16.vlgmr.msra.gmra.mxu0 %vm367_vm0, %v1630_v14 }
 0xc08   : > { %2322 = vmatprep.mubr.msk.bf16.mxu0 %vm2545_vm1, %v2544_v8  ;;  %2307 = vmatpush3.bf16.msra.mxu0 %v2407_v29 }
 0xc09   : > { %2308 = vmatprep.subr.bf16.mxu0 %v2544_v8 }
 0xc0c   : > { %2309 = vmatpush3.bf16.msra.mxu0 %v2408_v30 }
 0xc0d   : > { %2310 = vmatprep.subr.bf16.mxu0 %v2544_v8 }
 0xc10   : > { %2311 = vmatpush3.bf16.msra.mxu0 %v2409_v31 }
 0xc11   : > { %2312 = vmatprep.subr.bf16.mxu0 %v2544_v8 }
 0xc14   : > { %2313 = vmatpush3.bf16.msra.mxu0 %v2410_v32 }
 0xc15   : > { %2314 = vmatprep.subr.bf16.mxu0 %v2544_v8 }
 0xc18   : > { %2315 = vmatpush3.bf16.msra.mxu0 %v2411_v33 }
 0xc19   : > { %2316 = vmatprep.subr.bf16.mxu0 %v2544_v8 }
 0xc1c   : > { %2317 = vmatpush3.bf16.msra.mxu0 %v2412_v34 }
 0xc1d   : > { %2318 = vmatprep.subr.bf16.mxu0 %v2544_v8 }
 0xc20   : > { %2319 = vmatpush3.bf16.msra.mxu0 %v2413_v47 }
 0xc21   : > { %2320 = vmatprep.subr.bf16.mxu0 %v2544_v8 }
 0xc24   : > { %2321 = vmatpush3.bf16.msra.mxu0 %v2414_v42 }
 0xcc7   : > { %v1684_v16 = vpop.f32.mrf.mxu0 }
 0xcc8   : > { %v1685_v17 = vadd.f32 %v2093_v15, %v1684_v16 }
 0xcc9   : > { %v2296_v18 = vpop.f32.mrf.mxu0 }
 0xcca   : > { %v3009_v19 = vadd.f32 %v1685_v17, %v2865_v37  ;;  %v2406_v37 = vld [vmem:[%s3113_s6 + $0x10] sm:$0xff]  }
 0xccb   : > { %v1687_v20 = vpop.f32.mrf.mxu0  ;;  %2301 = vmatpush3.bf16.msra.mxu1 %v2406_v37 }
 0xccc   : > { %v1717_v21 = vsel %vm367_vm0, %v3009_v19, 0.0 }
 0xccd   : > { %1718 = vadd.xlane.f32.xlu1 %v1717_v21  ;;  %v2297_v22 = vpop.f32.mrf.mxu0 }
 0xd56   : > { %v1719_v23 = vpop.xlane.xlu1 %1718 }
 0xd57   : > { %v1720_v24 = vmul.f32 0.03125, %v1719_v23 }
 0xd59   : > { %v1721_v25 = vsub.f32 %v3009_v19, %v1720_v24 }
 0xd5b   : > { %v1722_v26 = vmul.f32 %v1721_v25, %v1721_v25 }
 0xd5d   : > { %v1723_v27 = vsel %vm367_vm0, %v1722_v26, 0.0 }
 0xd5e   : > { %1724 = vadd.xlane.f32.xlu0 %v1723_v27 }
 0xde7   : > { %v1725_v35 = vpop.xlane.xlu0 %1724 }
 0xde8   : > { %v1726_v36 = vmul.f32 0.03125, %v1725_v35 }
 0xdea   : > { %v1727_v38 = vadd.f32 1e-05, %v1726_v36 }
 0xdec   : > { %2447 = vrsqrt.f32 %v1727_v38 }
 0xdf9   : > { %v2448_v39 = vpop.eup %2447 }
 0xdfa   : > { %v1729_v41 = vmul.f32 %v2448_v39, %v1721_v25 }
 0xdfc   : > { %v1734_v44 = vmul.f32 %v2117_v40, %v1729_v41 }
 0xdfe   : > { %v1739_v45 = vadd.f32 %v2118_v43, %v1734_v44 }
 0xe00   : > { %v1740_v46 = vpack.c.bf16 %v1739_v45, %v1739_v45 }
 0xe02   : > { %2303 = vmatmul.mubr.msk.bf16.vlgmr.msra.gmra.mxu1 %vm367_vm0, %v1740_v46 }
 0xec2   : > { %v1794_v49 = vpop.f32.mrf.mxu1 }
 0xec3   : > { %v1795_v50 = vadd.f32 %v2119_v48, %v1794_v49 }
 0xec4   : > { %v2304_v51 = vpop.f32.mrf.mxu1 }
 0xec5   : > { %v1800_v52 = vmax.f32 %v1795_v50, 0.0 }
 0xec6   : > { %v1797_v53 = vpop.f32.mrf.mxu1 }
 0xec7   : > { %v1801_v54 = vpack.c.bf16 %v1800_v52, %v1800_v52 }
 0xec8   : > { %v2305_v55 = vpop.f32.mrf.mxu1 }
 0xec9   : > { %2323 = vmatmul.mubr.bf16.vlgmr.msra.gmra.mxu0 %v1801_v54 }
 0xf89   : > { %v1888_v57 = vpop.f32.mrf.mxu0 }
 0xf8a   : > { %v1889_v8 = vadd.f32 %v2123_v56, %v1888_v57 }
 0xf8b   : > { %v2324_v58 = vpop.f32.mrf.mxu0 }
 0xf8c   : > { %v1894_v59 = vmul.f32 0.5, %v1889_v8 }
 0xf8d   : > { %v1891_v60 = vpop.f32.mrf.mxu0 }
 0xf8e   : > { %v1895_v61 = vadd.f32 %v1894_v59, %v3009_v19 }
 0xf8f   : > { %v2325_v62 = vpop.f32.mrf.mxu0 }
 0xf90   : > { %v1898_v63 = vsel %vm367_vm0, %v1895_v61, 0.0 }
 0xf91   : > { %1899 = vadd.xlane.f32.xlu0 %v1898_v63 }
0x101a   : > { %v1900_v0 = vpop.xlane.xlu0 %1899 }
0x101b   : > { %v1901_v1 = vmul.f32 0.03125, %v1900_v0 }
0x101d   : > { %v1902_v2 = vsub.f32 %v1895_v61, %v1901_v1 }
0x101f   : > { %v1903_v3 = vmul.f32 %v1902_v2, %v1902_v2 }
0x1021   : > { %v1904_v4 = vsel %vm367_vm0, %v1903_v3, 0.0 }
0x1022   : > { %1905 = vadd.xlane.f32.xlu1 %v1904_v4 }
0x10ab   : > { %v1906_v5 = vpop.xlane.xlu1 %1905 }
0x10ac   : > { %v1907_v6 = vmul.f32 0.03125, %v1906_v5 }
0x10ae   : > { %v1908_v7 = vadd.f32 1e-05, %v1907_v6 }
0x10b0   : > { %2449 = vrsqrt.f32 %v1908_v7 }
0x10bd   : > { %v2450_v9 = vpop.eup %2449 }
0x10be   : > { %v1910_v11 = vmul.f32 %v2450_v9, %v1902_v2 }
0x10c0   : > { %v1915_v13 = vmul.f32 %v2132_v10, %v1910_v11 }
0x10c2   : > { %v1920_v14 = vadd.f32 %v2133_v12, %v1915_v13 }
0x10c4   : > { %1921 = vst.msk [vmem:[%s336_s26] sm:$0xff] %vm367_vm0, %v1920_v14 }
0x10c5   : > { %2490 = shalt.err (!%p2487_p0)
}
0x10c6   : > { %s2491_s17 = scalar_lea.hbm %s1934_s14, 128  ;;  %s2495_s25 = scalar_lea.hbm %s3116_s9, 256 }
0x10c7   : > { %p2492_p1 = scmp.ne.s32.totalorder %s1934_s14, %s2491_s17  ;;  %p2496_p4 = scmp.lt.s32.totalorder %s1934_s14, %s3116_s9 }
0x10c8   : > { %p2497_p7 = scmp.lt.s32.totalorder %s2495_s25, %s2491_s17 }
0x10c9   : > { %p2493_p2 = pnand %p2492_p1, %p2644_p5 }
0x10ca   : > { %p2498_p8 = por %p2497_p7, %p2496_p4 }
0x10cb   : > { %p2494_p3 = pneg %p2493_p2 }
0x10cd   : > { %p2499_p6 = pnand %p2498_p8, %p2494_p3 }
0x10cf   : > { %2502 = shalt.err (!%p2499_p6)
}
0x10d0   : > { %2330 = dma.vmem_to_hbm [thread:$0]  (%p2644_p5), %s1937_s27, 128, %s1934_s14, %s1923_s0  }
0x10d1 PF: > { %p2342_p9 = scmp.ge.s32.totalorder %s2541_s12, 2  ;;  %s1948_s28 = sand.u32 1, %s2529_s30  }
0x10d2   : > { %p3122_p10 = scmp.ne.s32.totalorder %s3119_s20, 0  ;;  %s1949_s21 = scalar_lea.sflag [#allocation5], %s1948_s28 }
0x10d4   : > { %p2337_p11 = pnand %p2342_p9, %p3122_p10 }
0x10d6   : > { %p2338_p12 = pneg %p2337_p11 }
0x10d8   : > { %2524 = dma.done.wait (%p2338_p12), %s1949_s21, 128  }
0x10d9   : > { %2526 = vsyncadd (%p2338_p12), %s1949_s21, 4294967168  ;;  %p20_p13 = scmp.ge.s32.totalorder %s2631_s15, 4   ;;  %s3123_s30 = smov %s2533_s10 }
0x10da   : > { %s3124_s10 = smov %s2537_s11  ;;  %s3125_s11 = smov %s2642_s18 }
0x10db   : > { %s3126_s12 = smov %s2631_s15  ;;  %22 = sbr.rel (!%p20_p13) target bundleno = 6 (0x6), region = 99 }
0x10e0   :  { %1954 = vsyncpa [#allocation4], 1 }
0x10e1   :  { %1956 = vsyncpa [#allocation4 + $0x1], 1 }
0x10e2   :  { %1957 = vsyncpa [#allocation5], 1 }
0x10e3   :  { %1959 = vsyncpa [#allocation5 + $0x1], 1 }

</bundles_post_ra>
